<compile_context>
chip_gen: v7x
topology: tpu7x:2x2x1
jax: 0.10.0
libtpu: 0.0.40
codegen_flags: <defaults>
</compile_context>

<pallas_src>
import functools
import math

import jax
import jax.numpy as jnp
import numpy as np
from jax.experimental import pallas as pl
from jax.experimental.pallas import tpu as pltpu

NUM_HEADS = 8
LN_EPS = 1e-5


def cross_attn_kernel(q_ref, k_ref, v_ref, mask_ref,
                      wq_ref, wk_ref, wv_ref,
                      bq_ref, bk_ref, bv_ref,
                      wo_ref, bo_ref,
                      lnw_ref, lnb_ref,
                      o_ref,
                      *, num_heads, b_block, lq, lk):
    rows_q, e = q_ref.shape
    d = e // num_heads

    # Residual / LayerNorm source stays f32; one-time bf16 cast for the MXU.
    x_q = q_ref[...]                                   # (b_block*Lq, E) f32
    xq_b = x_q.astype(jnp.bfloat16)
    k_in = k_ref[...]                                  # (b_block*Lk, E) bf16 (wrapper cast)
    v_in = v_ref[...]                                  # (b_block*Lk, E) bf16

    # Additive key-padding mask kept (b_block, 1, Lk); the score add broadcasts.
    mask_b = mask_ref[...][:, None, :]

    # Per-head attention.  Weights arrive pre-sliced per head, so there is no
    # lane slicing of activations and no narrow masked store; the concat-heads +
    # Wo step is folded into an accumulated ctx_h @ Wo_h sum (f32 registers).
    attn_out = jnp.zeros((rows_q, e), jnp.float32)
    for h in range(num_heads):
        q_h = jnp.dot(xq_b, wq_ref[h],
                      preferred_element_type=jnp.float32) + bq_ref[h]    # (Rq, d)
        k_h = jnp.dot(k_in, wk_ref[h],
                      preferred_element_type=jnp.float32) + bk_ref[h]    # (Rk, d)
        v_h = jnp.dot(v_in, wv_ref[h],
                      preferred_element_type=jnp.float32) + bv_ref[h]    # (Rk, d)

        q3 = q_h.reshape(b_block, lq, d).astype(jnp.bfloat16)
        k3 = k_h.reshape(b_block, lk, d).astype(jnp.bfloat16)
        v3 = v_h.reshape(b_block, lk, d).astype(jnp.bfloat16)

        # Batched contractions over the batch block, no transposes (the 1/sqrt(d)
        # softmax scale was folded into Wq / bq in the wrapper).
        s = jnp.einsum("bqd,bkd->bqk", q3, k3,
                       preferred_element_type=jnp.float32)               # (b, Lq, Lk)
        s = s + mask_b
        s = s - jnp.max(s, axis=-1, keepdims=True)
        p = jnp.exp(s)
        p = p * pl.reciprocal(jnp.sum(p, axis=-1, keepdims=True), approx=True)

        ctx_h = jnp.einsum("bqk,bkd->bqd", p.astype(jnp.bfloat16), v3,
                           preferred_element_type=jnp.float32)           # (b, Lq, d)

        # This head's contribution to the output projection: (Rq, d) @ (d, E).
        attn_out = attn_out + jnp.dot(
            ctx_h.reshape(rows_q, d).astype(jnp.bfloat16), wo_ref[h],
            preferred_element_type=jnp.float32)

    attn_out = attn_out + bo_ref[...]

    # Residual + LayerNorm over the feature axis, all in f32; lane-dense 2-D store.
    res = x_q + attn_out
    mean = jnp.mean(res, axis=-1, keepdims=True)
    cent = res - mean
    var = jnp.mean(cent * cent, axis=-1, keepdims=True)
    normed = cent * jax.lax.rsqrt(var + LN_EPS)
    o_ref[...] = (normed * lnw_ref[...] + lnb_ref[...]).astype(o_ref.dtype)


def cross_attention(query, key, value, key_padding_mask, params, *, b_block=None):
    """query/key/value: (B, L, E) float32; key_padding_mask: (B, Lk) bool (True = pad)."""
    B, Lq, E = query.shape
    Lk = key.shape[1]
    assert E % NUM_HEADS == 0
    d = E // NUM_HEADS

    if b_block is None:
        # One big step for single-TC chips (v5e/v6e).  Split into >=2 "parallel"
        # steps only when each step still keeps >=512 rows of work (v7x 2 TCs;
        # ~0.35us per-step overhead), with 8-row alignment for clean sublanes.
        b_block = B
        if B * Lq >= 2 * 512:
            for cand in range(B // 2, 0, -1):
                if B % cand == 0 and cand % 8 == 0 and cand * Lq >= 512:
                    b_block = cand
                    break
    assert B % b_block == 0, "B must be divisible by b_block"
    grid = (B // b_block,)

    # ---- wrapper-side (one-time, free) prep --------------------------------
    q2 = query.reshape(B * Lq, E)                                   # f32 (residual source)
    k2 = key.astype(jnp.bfloat16).reshape(B * Lk, E)                # bf16: halves DMA bytes
    v2 = value.astype(jnp.bfloat16).reshape(B * Lk, E)
    add_mask = jnp.where(key_padding_mask, jnp.float32(-1e9), jnp.float32(0.0))  # (B, Lk)

    (wq, wk, wv, bq, bk, bv, wo, bo, lnw, lnb) = params
    scale = 1.0 / math.sqrt(d)
    # Per-head weight slabs: (H, E, d) input projections (softmax scale folded
    # into Wq / bq), (H, d, E) output projection.  bf16 matmul operands.
    wq_h = (wq.T * scale).reshape(E, NUM_HEADS, d).transpose(1, 0, 2).astype(jnp.bfloat16)
    wk_h = wk.T.reshape(E, NUM_HEADS, d).transpose(1, 0, 2).astype(jnp.bfloat16)
    wv_h = wv.T.reshape(E, NUM_HEADS, d).transpose(1, 0, 2).astype(jnp.bfloat16)
    wo_h = wo.T.reshape(NUM_HEADS, d, E).astype(jnp.bfloat16)
    bq_h = (bq * scale).reshape(NUM_HEADS, 1, d).astype(jnp.float32)
    bk_h = bk.reshape(NUM_HEADS, 1, d).astype(jnp.float32)
    bv_h = bv.reshape(NUM_HEADS, 1, d).astype(jnp.float32)
    bo2 = bo.astype(jnp.float32)
    lnw2 = lnw.astype(jnp.float32)
    lnb2 = lnb.astype(jnp.float32)

    kernel = functools.partial(cross_attn_kernel, num_heads=NUM_HEADS,
                               b_block=b_block, lq=Lq, lk=Lk)

    # Cost estimate: q/k/v projections + scores + ctx + output projection.
    flops = int(2 * B * (Lq + 2 * Lk) * E * E          # input projections
                + 4 * B * Lq * Lk * E                  # scores + ctx (all heads)
                + 2 * B * Lq * E * E)                  # output projection
    transcendentals = int(B * NUM_HEADS * Lq * Lk + B * NUM_HEADS * Lq + B * Lq)
    bytes_accessed = int(4 * B * Lq * E + 2 * (2 * B * Lk * E) + 4 * B * Lk
                         + 4 * B * Lq * E + 2 * 4 * E * E + 4 * 8 * E)
    cost = pl.CostEstimate(flops=flops, transcendentals=transcendentals,
                           bytes_accessed=bytes_accessed)

    # Explicit VMEM budget (v7x: 64 MiB physical / 32 MiB scoped default):
    # double-buffered activation tiles + single-buffered weight slabs + headroom.
    act_bytes = 2 * (b_block * Lq * E * 4 + 2 * b_block * Lk * E * 2
                     + b_block * Lk * 4 + b_block * Lq * E * 4)
    wgt_bytes = 4 * E * E * 2 + 8 * E * 4
    vmem_limit = int(min(max(2 * (act_bytes + wgt_bytes), 16 << 20), 64 << 20))

    def make_call(single_buffer_consts):
        def const_spec(shape):
            idx_map = lambda b, _s=shape: (0,) * len(_s)
            if single_buffer_consts:
                # Grid-invariant params: no point double-buffering them.
                return pl.BlockSpec(shape, idx_map, pipeline_mode=pl.Buffered(1))
            return pl.BlockSpec(shape, idx_map)

        grid_spec = pltpu.PrefetchScalarGridSpec(
            num_scalar_prefetch=0,
            grid=grid,
            in_specs=[
                pl.BlockSpec((b_block * Lq, E), lambda b: (b, 0)),   # query (f32)
                pl.BlockSpec((b_block * Lk, E), lambda b: (b, 0)),   # key   (bf16)
                pl.BlockSpec((b_block * Lk, E), lambda b: (b, 0)),   # value (bf16)
                pl.BlockSpec((b_block, Lk), lambda b: (b, 0)),       # additive mask
                const_spec((NUM_HEADS, E, d)),                       # Wq^T * scale, per head
                const_spec((NUM_HEADS, E, d)),                       # Wk^T, per head
                const_spec((NUM_HEADS, E, d)),                       # Wv^T, per head
                const_spec((NUM_HEADS, 1, d)),                       # bq * scale
                const_spec((NUM_HEADS, 1, d)),                       # bk
                const_spec((NUM_HEADS, 1, d)),                       # bv
                const_spec((NUM_HEADS, d, E)),                       # Wo^T, per head
                const_spec((1, E)),                                  # bo
                const_spec((1, E)),                                  # LN weight
                const_spec((1, E)),                                  # LN bias
            ],
            out_specs=pl.BlockSpec((b_block * Lq, E), lambda b: (b, 0)),
        )
        return pl.pallas_call(
            kernel,
            out_shape=jax.ShapeDtypeStruct((B * Lq, E), jnp.float32),
            grid_spec=grid_spec,
            compiler_params=pltpu.CompilerParams(
                dimension_semantics=("parallel",),
                vmem_limit_bytes=vmem_limit),
            cost_estimate=cost,
        )

    args = (q2, k2, v2, add_mask, wq_h, wk_h, wv_h, bq_h, bk_h, bv_h,
            wo_h, bo2, lnw2, lnb2)
    try:
        out2 = jax.block_until_ready(make_call(True)(*args))
    except Exception:
        # Fallback for jax versions without BlockSpec.pipeline_mode / pl.Buffered(1).
        out2 = jax.block_until_ready(make_call(False)(*args))
    return out2.reshape(B, Lq, E)


def reference_cross_attention(query, key, value, key_padding_mask, params):
    """Pure-JAX f32 reference matching PyTorch MultiheadAttention + residual + LayerNorm."""
    (wq, wk, wv, bq, bk, bv, wo, bo, lnw, lnb) = params
    B, Lq, E = query.shape
    Lk = key.shape[1]
    d = E // NUM_HEADS

    q = query @ wq.T + bq
    k = key @ wk.T + bk
    v = value @ wv.T + bv

    q = q.reshape(B, Lq, NUM_HEADS, d).transpose(0, 2, 1, 3)
    k = k.reshape(B, Lk, NUM_HEADS, d).transpose(0, 2, 1, 3)
    v = v.reshape(B, Lk, NUM_HEADS, d).transpose(0, 2, 1, 3)

    scores = jnp.einsum("bhqd,bhkd->bhqk", q, k) / jnp.sqrt(jnp.float32(d))
    add_mask = jnp.where(key_padding_mask, -1e9, 0.0)[:, None, None, :]
    scores = scores + add_mask
    attn = jax.nn.softmax(scores, axis=-1)
    ctx = jnp.einsum("bhqk,bhkd->bhqd", attn, v)
    ctx = ctx.transpose(0, 2, 1, 3).reshape(B, Lq, E)

    attn_out = ctx @ wo.T + bo
    res = query + attn_out
    mean = jnp.mean(res, axis=-1, keepdims=True)
    var = jnp.mean((res - mean) ** 2, axis=-1, keepdims=True)
    return (res - mean) / jnp.sqrt(var + LN_EPS) * lnw + lnb


def init_params(rng, hidden_size):
    """Deterministic synthetic parameters (shapes follow nn.MultiheadAttention / LayerNorm)."""
    ks = jax.random.split(rng, 8)
    s = 0.1
    wq = jax.random.normal(ks[0], (hidden_size, hidden_size), jnp.float32) * s
    wk = jax.random.normal(ks[1], (hidden_size, hidden_size), jnp.float32) * s
    wv = jax.random.normal(ks[2], (hidden_size, hidden_size), jnp.float32) * s
    bq = jax.random.normal(ks[3], (1, hidden_size), jnp.float32) * s
    bk = jax.random.normal(ks[4], (1, hidden_size), jnp.float32) * s
    bv = jax.random.normal(ks[5], (1, hidden_size), jnp.float32) * s
    wo = jax.random.normal(ks[6], (hidden_size, hidden_size), jnp.float32) * s
    bo = jax.random.normal(ks[7], (1, hidden_size), jnp.float32) * s
    lnw = jnp.ones((1, hidden_size), jnp.float32)
    lnb = jnp.zeros((1, hidden_size), jnp.float32)
    return (wq, wk, wv, bq, bk, bv, wo, bo, lnw, lnb)


if __name__ == "__main__":
    B, Lq, Lk, E = 2, 8, 8, 32   # hidden=32, num_heads=8 -> head_dim=4

    root = jax.random.PRNGKey(0)
    kq, kk, kv, kp = jax.random.split(root, 4)
    query = jax.random.normal(kq, (B, Lq, E), jnp.float32)
    key = jax.random.normal(kk, (B, Lk, E), jnp.float32)
    value = jax.random.normal(kv, (B, Lk, E), jnp.float32)
    # key_padding_mask: True = position is padding (ignored). Pad the last 2 keys of batch 1.
    key_padding_mask = jnp.zeros((B, Lk), dtype=bool).at[1, -2:].set(True)

    params = init_params(kp, E)

    out = cross_attention(query, key, value, key_padding_mask, params)
    out = jax.block_until_ready(out)

    ref = reference_cross_attention(query, key, value, key_padding_mask, params)
    # bf16 matmul operands (and bf16 key/value inputs) with f32 accumulation ->
    # compare against the f32 reference with a bf16-appropriate tolerance.
    np.testing.assert_allclose(np.asarray(out), np.asarray(ref), rtol=3e-2, atol=3e-2)

    print("KERNEL_OK")
</pallas_src>

<mosaic_0001>
module attributes {stable_mosaic.version = 11 : i64} {
  func.func @cross_attn_kernel(%arg0: i32, %arg1: memref<16x32xf32, #tpu.memory_space<vmem>>, %arg2: memref<16x32xbf16, #tpu.memory_space<vmem>>, %arg3: memref<16x32xbf16, #tpu.memory_space<vmem>>, %arg4: memref<2x8xf32, #tpu.memory_space<vmem>>, %arg5: memref<8x32x4xbf16, #tpu.memory_space<vmem>>, %arg6: memref<8x32x4xbf16, #tpu.memory_space<vmem>>, %arg7: memref<8x32x4xbf16, #tpu.memory_space<vmem>>, %arg8: memref<8x1x4xf32, #tpu.memory_space<vmem>>, %arg9: memref<8x1x4xf32, #tpu.memory_space<vmem>>, %arg10: memref<8x1x4xf32, #tpu.memory_space<vmem>>, %arg11: memref<8x4x32xbf16, #tpu.memory_space<vmem>>, %arg12: memref<1x32xf32, #tpu.memory_space<vmem>>, %arg13: memref<1x32xf32, #tpu.memory_space<vmem>>, %arg14: memref<1x32xf32, #tpu.memory_space<vmem>>, %arg15: memref<16x32xf32, #tpu.memory_space<vmem>>) attributes {dimension_semantics = [#tpu.dimension_semantics<parallel>], iteration_bounds = array<i64: 1>, scalar_prefetch = 0 : i64, scratch_operands = 0 : i64, tpu.core_type = #tpu.core_type<tc>, window_params = [{transform_indices = @transform_0, window_bounds = array<i64: 16, 32>}, {transform_indices = @transform_1, window_bounds = array<i64: 16, 32>}, {transform_indices = @transform_2, window_bounds = array<i64: 16, 32>}, {transform_indices = @transform_3, window_bounds = array<i64: 2, 8>}, {pipeline_mode = #tpu.pipeline_mode<synchronous>, transform_indices = @transform_4, window_bounds = array<i64: 8, 32, 4>}, {pipeline_mode = #tpu.pipeline_mode<synchronous>, transform_indices = @transform_5, window_bounds = array<i64: 8, 32, 4>}, {pipeline_mode = #tpu.pipeline_mode<synchronous>, transform_indices = @transform_6, window_bounds = array<i64: 8, 32, 4>}, {pipeline_mode = #tpu.pipeline_mode<synchronous>, transform_indices = @transform_7, window_bounds = array<i64: 8, 1, 4>}, {pipeline_mode = #tpu.pipeline_mode<synchronous>, transform_indices = @transform_8, window_bounds = array<i64: 8, 1, 4>}, {pipeline_mode = #tpu.pipeline_mode<synchronous>, transform_indices = @transform_9, window_bounds = array<i64: 8, 1, 4>}, {pipeline_mode = #tpu.pipeline_mode<synchronous>, transform_indices = @transform_10, window_bounds = array<i64: 8, 4, 32>}, {pipeline_mode = #tpu.pipeline_mode<synchronous>, transform_indices = @transform_11, window_bounds = array<i64: 1, 32>}, {pipeline_mode = #tpu.pipeline_mode<synchronous>, transform_indices = @transform_12, window_bounds = array<i64: 1, 32>}, {pipeline_mode = #tpu.pipeline_mode<synchronous>, transform_indices = @transform_13, window_bounds = array<i64: 1, 32>}, {transform_indices = @transform_14, window_bounds = array<i64: 16, 32>}]} {
    %c0 = arith.constant 0 : index
    %c0_0 = arith.constant 0 : index
    %0 = vector.load %arg1[%c0, %c0_0] : memref<16x32xf32, #tpu.memory_space<vmem>>, vector<16x32xf32>
    %1 = arith.truncf %0 : vector<16x32xf32> to vector<16x32xbf16>
    %c0_1 = arith.constant 0 : index
    %c0_2 = arith.constant 0 : index
    %2 = vector.load %arg2[%c0_1, %c0_2] : memref<16x32xbf16, #tpu.memory_space<vmem>>, vector<16x32xbf16>
    %c0_3 = arith.constant 0 : index
    %c0_4 = arith.constant 0 : index
    %3 = vector.load %arg3[%c0_3, %c0_4] : memref<16x32xbf16, #tpu.memory_space<vmem>>, vector<16x32xbf16>
    %c0_5 = arith.constant 0 : index
    %c0_6 = arith.constant 0 : index
    %4 = vector.load %arg4[%c0_5, %c0_6] : memref<2x8xf32, #tpu.memory_space<vmem>>, vector<2x8xf32>
    %5 = vector.shape_cast %4 : vector<2x8xf32> to vector<2x1x8xf32>
    %cst = arith.constant 0.000000e+00 : f32
    %6 = vector.broadcast %cst : f32 to vector<16x32xf32>
    %c0_7 = arith.constant 0 : index
    %c0_8 = arith.constant 0 : index
    %c0_9 = arith.constant 0 : index
    %7 = vector.load %arg5[%c0_7, %c0_8, %c0_9] : memref<8x32x4xbf16, #tpu.memory_space<vmem>>, vector<1x32x4xbf16>
    %8 = vector.shape_cast %7 : vector<1x32x4xbf16> to vector<32x4xbf16>
    %cst_10 = arith.constant dense<0.000000e+00> : vector<16x4xf32>
    %9 = tpu.matmul %1, %8, %cst_10 {dimension_numbers = #tpu.dot_dimension_numbers<[1], [0], [0], [1], [0, 0, 1, 1], [], []>} : vector<16x32xbf16>, vector<32x4xbf16>, vector<16x4xf32> -> vector<16x4xf32>
    %c0_11 = arith.constant 0 : index
    %c0_12 = arith.constant 0 : index
    %c0_13 = arith.constant 0 : index
    %10 = vector.load %arg8[%c0_11, %c0_12, %c0_13] : memref<8x1x4xf32, #tpu.memory_space<vmem>>, vector<1x1x4xf32>
    %11 = vector.shape_cast %10 : vector<1x1x4xf32> to vector<1x4xf32>
    %12 = vector.broadcast %11 : vector<1x4xf32> to vector<16x4xf32>
    %13 = arith.addf %9, %12 : vector<16x4xf32>
    %c0_14 = arith.constant 0 : index
    %c0_15 = arith.constant 0 : index
    %c0_16 = arith.constant 0 : index
    %14 = vector.load %arg6[%c0_14, %c0_15, %c0_16] : memref<8x32x4xbf16, #tpu.memory_space<vmem>>, vector<1x32x4xbf16>
    %15 = vector.shape_cast %14 : vector<1x32x4xbf16> to vector<32x4xbf16>
    %cst_17 = arith.constant dense<0.000000e+00> : vector<16x4xf32>
    %16 = tpu.matmul %2, %15, %cst_17 {dimension_numbers = #tpu.dot_dimension_numbers<[1], [0], [0], [1], [0, 0, 1, 1], [], []>} : vector<16x32xbf16>, vector<32x4xbf16>, vector<16x4xf32> -> vector<16x4xf32>
    %c0_18 = arith.constant 0 : index
    %c0_19 = arith.constant 0 : index
    %c0_20 = arith.constant 0 : index
    %17 = vector.load %arg9[%c0_18, %c0_19, %c0_20] : memref<8x1x4xf32, #tpu.memory_space<vmem>>, vector<1x1x4xf32>
    %18 = vector.shape_cast %17 : vector<1x1x4xf32> to vector<1x4xf32>
    %19 = vector.broadcast %18 : vector<1x4xf32> to vector<16x4xf32>
    %20 = arith.addf %16, %19 : vector<16x4xf32>
    %c0_21 = arith.constant 0 : index
    %c0_22 = arith.constant 0 : index
    %c0_23 = arith.constant 0 : index
    %21 = vector.load %arg7[%c0_21, %c0_22, %c0_23] : memref<8x32x4xbf16, #tpu.memory_space<vmem>>, vector<1x32x4xbf16>
    %22 = vector.shape_cast %21 : vector<1x32x4xbf16> to vector<32x4xbf16>
    %cst_24 = arith.constant dense<0.000000e+00> : vector<16x4xf32>
    %23 = tpu.matmul %3, %22, %cst_24 {dimension_numbers = #tpu.dot_dimension_numbers<[1], [0], [0], [1], [0, 0, 1, 1], [], []>} : vector<16x32xbf16>, vector<32x4xbf16>, vector<16x4xf32> -> vector<16x4xf32>
    %c0_25 = arith.constant 0 : index
    %c0_26 = arith.constant 0 : index
    %c0_27 = arith.constant 0 : index
    %24 = vector.load %arg10[%c0_25, %c0_26, %c0_27] : memref<8x1x4xf32, #tpu.memory_space<vmem>>, vector<1x1x4xf32>
    %25 = vector.shape_cast %24 : vector<1x1x4xf32> to vector<1x4xf32>
    %26 = vector.broadcast %25 : vector<1x4xf32> to vector<16x4xf32>
    %27 = arith.addf %23, %26 : vector<16x4xf32>
    %28 = vector.shape_cast %13 : vector<16x4xf32> to vector<2x8x4xf32>
    %29 = arith.truncf %28 : vector<2x8x4xf32> to vector<2x8x4xbf16>
    %30 = vector.shape_cast %20 : vector<16x4xf32> to vector<2x8x4xf32>
    %31 = arith.truncf %30 : vector<2x8x4xf32> to vector<2x8x4xbf16>
    %32 = vector.shape_cast %27 : vector<16x4xf32> to vector<2x8x4xf32>
    %33 = arith.truncf %32 : vector<2x8x4xf32> to vector<2x8x4xbf16>
    "tpu.trace_start"() <{level = 10 : i32, message = "bqd,bkd->bqk"}> : () -> ()
    %cst_28 = arith.constant dense<0.000000e+00> : vector<2x8x8xf32>
    %34 = tpu.matmul %29, %31, %cst_28 {dimension_numbers = #tpu.dot_dimension_numbers<[2], [2], [1], [1], [0, 0, 0, 1, 1, 1], [0], [0]>} : vector<2x8x4xbf16>, vector<2x8x4xbf16>, vector<2x8x8xf32> -> vector<2x8x8xf32>
    "tpu.trace_stop"() : () -> ()
    %35 = vector.broadcast %5 : vector<2x1x8xf32> to vector<2x8x8xf32>
    %36 = arith.addf %34, %35 : vector<2x8x8xf32>
    %cst_29 = arith.constant dense<0xFF800000> : vector<2x8xf32>
    %37 = vector.multi_reduction <maximumf>, %36, %cst_29 [2] : vector<2x8x8xf32> to vector<2x8xf32>
    %38 = vector.shape_cast %37 : vector<2x8xf32> to vector<2x8x1xf32>
    %39 = vector.broadcast %38 : vector<2x8x1xf32> to vector<2x8x8xf32>
    %40 = arith.subf %36, %39 : vector<2x8x8xf32>
    %41 = math.exp %40 : vector<2x8x8xf32>
    %cst_30 = arith.constant dense<0.000000e+00> : vector<2x8xf32>
    %42 = vector.multi_reduction <add>, %41, %cst_30 [2] : vector<2x8x8xf32> to vector<2x8xf32>
    %43 = vector.shape_cast %42 : vector<2x8xf32> to vector<2x8x1xf32>
    %44 = tpu.reciprocal %43 {approx = true} : vector<2x8x1xf32> -> vector<2x8x1xf32>
    %45 = vector.broadcast %44 : vector<2x8x1xf32> to vector<2x8x8xf32>
    %46 = arith.mulf %41, %45 : vector<2x8x8xf32>
    %47 = arith.truncf %46 : vector<2x8x8xf32> to vector<2x8x8xbf16>
    "tpu.trace_start"() <{level = 10 : i32, message = "bqk,bkd->bqd"}> : () -> ()
    %cst_31 = arith.constant dense<0.000000e+00> : vector<2x8x4xf32>
    %48 = tpu.matmul %47, %33, %cst_31 {dimension_numbers = #tpu.dot_dimension_numbers<[2], [1], [1], [2], [0, 0, 0, 1, 1, 2], [0], [0]>} : vector<2x8x8xbf16>, vector<2x8x4xbf16>, vector<2x8x4xf32> -> vector<2x8x4xf32>
    "tpu.trace_stop"() : () -> ()
    %49 = vector.shape_cast %48 : vector<2x8x4xf32> to vector<16x4xf32>
    %50 = arith.truncf %49 : vector<16x4xf32> to vector<16x4xbf16>
    %c0_32 = arith.constant 0 : index
    %c0_33 = arith.constant 0 : index
    %c0_34 = arith.constant 0 : index
    %51 = vector.load %arg11[%c0_32, %c0_33, %c0_34] : memref<8x4x32xbf16, #tpu.memory_space<vmem>>, vector<1x4x32xbf16>
    %52 = vector.shape_cast %51 : vector<1x4x32xbf16> to vector<4x32xbf16>
    %cst_35 = arith.constant dense<0.000000e+00> : vector<16x32xf32>
    %53 = tpu.matmul %50, %52, %cst_35 {dimension_numbers = #tpu.dot_dimension_numbers<[1], [0], [0], [1], [0, 0, 1, 1], [], []>} : vector<16x4xbf16>, vector<4x32xbf16>, vector<16x32xf32> -> vector<16x32xf32>
    %54 = arith.addf %6, %53 : vector<16x32xf32>
    %c1 = arith.constant 1 : index
    %c0_36 = arith.constant 0 : index
    %c0_37 = arith.constant 0 : index
    %55 = vector.load %arg5[%c1, %c0_36, %c0_37] : memref<8x32x4xbf16, #tpu.memory_space<vmem>>, vector<1x32x4xbf16>
    %56 = vector.shape_cast %55 : vector<1x32x4xbf16> to vector<32x4xbf16>
    %cst_38 = arith.constant dense<0.000000e+00> : vector<16x4xf32>
    %57 = tpu.matmul %1, %56, %cst_38 {dimension_numbers = #tpu.dot_dimension_numbers<[1], [0], [0], [1], [0, 0, 1, 1], [], []>} : vector<16x32xbf16>, vector<32x4xbf16>, vector<16x4xf32> -> vector<16x4xf32>
    %c1_39 = arith.constant 1 : index
    %c0_40 = arith.constant 0 : index
    %c0_41 = arith.constant 0 : index
    %58 = vector.load %arg8[%c1_39, %c0_40, %c0_41] : memref<8x1x4xf32, #tpu.memory_space<vmem>>, vector<1x1x4xf32>
    %59 = vector.shape_cast %58 : vector<1x1x4xf32> to vector<1x4xf32>
    %60 = vector.broadcast %59 : vector<1x4xf32> to vector<16x4xf32>
    %61 = arith.addf %57, %60 : vector<16x4xf32>
    %c1_42 = arith.constant 1 : index
    %c0_43 = arith.constant 0 : index
    %c0_44 = arith.constant 0 : index
    %62 = vector.load %arg6[%c1_42, %c0_43, %c0_44] : memref<8x32x4xbf16, #tpu.memory_space<vmem>>, vector<1x32x4xbf16>
    %63 = vector.shape_cast %62 : vector<1x32x4xbf16> to vector<32x4xbf16>
    %cst_45 = arith.constant dense<0.000000e+00> : vector<16x4xf32>
    %64 = tpu.matmul %2, %63, %cst_45 {dimension_numbers = #tpu.dot_dimension_numbers<[1], [0], [0], [1], [0, 0, 1, 1], [], []>} : vector<16x32xbf16>, vector<32x4xbf16>, vector<16x4xf32> -> vector<16x4xf32>
    %c1_46 = arith.constant 1 : index
    %c0_47 = arith.constant 0 : index
    %c0_48 = arith.constant 0 : index
    %65 = vector.load %arg9[%c1_46, %c0_47, %c0_48] : memref<8x1x4xf32, #tpu.memory_space<vmem>>, vector<1x1x4xf32>
    %66 = vector.shape_cast %65 : vector<1x1x4xf32> to vector<1x4xf32>
    %67 = vector.broadcast %66 : vector<1x4xf32> to vector<16x4xf32>
    %68 = arith.addf %64, %67 : vector<16x4xf32>
    %c1_49 = arith.constant 1 : index
    %c0_50 = arith.constant 0 : index
    %c0_51 = arith.constant 0 : index
    %69 = vector.load %arg7[%c1_49, %c0_50, %c0_51] : memref<8x32x4xbf16, #tpu.memory_space<vmem>>, vector<1x32x4xbf16>
    %70 = vector.shape_cast %69 : vector<1x32x4xbf16> to vector<32x4xbf16>
    %cst_52 = arith.constant dense<0.000000e+00> : vector<16x4xf32>
    %71 = tpu.matmul %3, %70, %cst_52 {dimension_numbers = #tpu.dot_dimension_numbers<[1], [0], [0], [1], [0, 0, 1, 1], [], []>} : vector<16x32xbf16>, vector<32x4xbf16>, vector<16x4xf32> -> vector<16x4xf32>
    %c1_53 = arith.constant 1 : index
    %c0_54 = arith.constant 0 : index
    %c0_55 = arith.constant 0 : index
    %72 = vector.load %arg10[%c1_53, %c0_54, %c0_55] : memref<8x1x4xf32, #tpu.memory_space<vmem>>, vector<1x1x4xf32>
    %73 = vector.shape_cast %72 : vector<1x1x4xf32> to vector<1x4xf32>
    %74 = vector.broadcast %73 : vector<1x4xf32> to vector<16x4xf32>
    %75 = arith.addf %71, %74 : vector<16x4xf32>
    %76 = vector.shape_cast %61 : vector<16x4xf32> to vector<2x8x4xf32>
    %77 = arith.truncf %76 : vector<2x8x4xf32> to vector<2x8x4xbf16>
    %78 = vector.shape_cast %68 : vector<16x4xf32> to vector<2x8x4xf32>
    %79 = arith.truncf %78 : vector<2x8x4xf32> to vector<2x8x4xbf16>
    %80 = vector.shape_cast %75 : vector<16x4xf32> to vector<2x8x4xf32>
    %81 = arith.truncf %80 : vector<2x8x4xf32> to vector<2x8x4xbf16>
    "tpu.trace_start"() <{level = 10 : i32, message = "bqd,bkd->bqk"}> : () -> ()
    %cst_56 = arith.constant dense<0.000000e+00> : vector<2x8x8xf32>
    %82 = tpu.matmul %77, %79, %cst_56 {dimension_numbers = #tpu.dot_dimension_numbers<[2], [2], [1], [1], [0, 0, 0, 1, 1, 1], [0], [0]>} : vector<2x8x4xbf16>, vector<2x8x4xbf16>, vector<2x8x8xf32> -> vector<2x8x8xf32>
    "tpu.trace_stop"() : () -> ()
    %83 = vector.broadcast %5 : vector<2x1x8xf32> to vector<2x8x8xf32>
    %84 = arith.addf %82, %83 : vector<2x8x8xf32>
    %cst_57 = arith.constant dense<0xFF800000> : vector<2x8xf32>
    %85 = vector.multi_reduction <maximumf>, %84, %cst_57 [2] : vector<2x8x8xf32> to vector<2x8xf32>
    %86 = vector.shape_cast %85 : vector<2x8xf32> to vector<2x8x1xf32>
    %87 = vector.broadcast %86 : vector<2x8x1xf32> to vector<2x8x8xf32>
    %88 = arith.subf %84, %87 : vector<2x8x8xf32>
    %89 = math.exp %88 : vector<2x8x8xf32>
    %cst_58 = arith.constant dense<0.000000e+00> : vector<2x8xf32>
    %90 = vector.multi_reduction <add>, %89, %cst_58 [2] : vector<2x8x8xf32> to vector<2x8xf32>
    %91 = vector.shape_cast %90 : vector<2x8xf32> to vector<2x8x1xf32>
    %92 = tpu.reciprocal %91 {approx = true} : vector<2x8x1xf32> -> vector<2x8x1xf32>
    %93 = vector.broadcast %92 : vector<2x8x1xf32> to vector<2x8x8xf32>
    %94 = arith.mulf %89, %93 : vector<2x8x8xf32>
    %95 = arith.truncf %94 : vector<2x8x8xf32> to vector<2x8x8xbf16>
    "tpu.trace_start"() <{level = 10 : i32, message = "bqk,bkd->bqd"}> : () -> ()
    %cst_59 = arith.constant dense<0.000000e+00> : vector<2x8x4xf32>
    %96 = tpu.matmul %95, %81, %cst_59 {dimension_numbers = #tpu.dot_dimension_numbers<[2], [1], [1], [2], [0, 0, 0, 1, 1, 2], [0], [0]>} : vector<2x8x8xbf16>, vector<2x8x4xbf16>, vector<2x8x4xf32> -> vector<2x8x4xf32>
    "tpu.trace_stop"() : () -> ()
    %97 = vector.shape_cast %96 : vector<2x8x4xf32> to vector<16x4xf32>
    %98 = arith.truncf %97 : vector<16x4xf32> to vector<16x4xbf16>
    %c1_60 = arith.constant 1 : index
    %c0_61 = arith.constant 0 : index
    %c0_62 = arith.constant 0 : index
    %99 = vector.load %arg11[%c1_60, %c0_61, %c0_62] : memref<8x4x32xbf16, #tpu.memory_space<vmem>>, vector<1x4x32xbf16>
    %100 = vector.shape_cast %99 : vector<1x4x32xbf16> to vector<4x32xbf16>
    %cst_63 = arith.constant dense<0.000000e+00> : vector<16x32xf32>
    %101 = tpu.matmul %98, %100, %cst_63 {dimension_numbers = #tpu.dot_dimension_numbers<[1], [0], [0], [1], [0, 0, 1, 1], [], []>} : vector<16x4xbf16>, vector<4x32xbf16>, vector<16x32xf32> -> vector<16x32xf32>
    %102 = arith.addf %54, %101 : vector<16x32xf32>
    %c2 = arith.constant 2 : index
    %c0_64 = arith.constant 0 : index
    %c0_65 = arith.constant 0 : index
    %103 = vector.load %arg5[%c2, %c0_64, %c0_65] : memref<8x32x4xbf16, #tpu.memory_space<vmem>>, vector<1x32x4xbf16>
    %104 = vector.shape_cast %103 : vector<1x32x4xbf16> to vector<32x4xbf16>
    %cst_66 = arith.constant dense<0.000000e+00> : vector<16x4xf32>
    %105 = tpu.matmul %1, %104, %cst_66 {dimension_numbers = #tpu.dot_dimension_numbers<[1], [0], [0], [1], [0, 0, 1, 1], [], []>} : vector<16x32xbf16>, vector<32x4xbf16>, vector<16x4xf32> -> vector<16x4xf32>
    %c2_67 = arith.constant 2 : index
    %c0_68 = arith.constant 0 : index
    %c0_69 = arith.constant 0 : index
    %106 = vector.load %arg8[%c2_67, %c0_68, %c0_69] : memref<8x1x4xf32, #tpu.memory_space<vmem>>, vector<1x1x4xf32>
    %107 = vector.shape_cast %106 : vector<1x1x4xf32> to vector<1x4xf32>
    %108 = vector.broadcast %107 : vector<1x4xf32> to vector<16x4xf32>
    %109 = arith.addf %105, %108 : vector<16x4xf32>
    %c2_70 = arith.constant 2 : index
    %c0_71 = arith.constant 0 : index
    %c0_72 = arith.constant 0 : index
    %110 = vector.load %arg6[%c2_70, %c0_71, %c0_72] : memref<8x32x4xbf16, #tpu.memory_space<vmem>>, vector<1x32x4xbf16>
    %111 = vector.shape_cast %110 : vector<1x32x4xbf16> to vector<32x4xbf16>
    %cst_73 = arith.constant dense<0.000000e+00> : vector<16x4xf32>
    %112 = tpu.matmul %2, %111, %cst_73 {dimension_numbers = #tpu.dot_dimension_numbers<[1], [0], [0], [1], [0, 0, 1, 1], [], []>} : vector<16x32xbf16>, vector<32x4xbf16>, vector<16x4xf32> -> vector<16x4xf32>
    %c2_74 = arith.constant 2 : index
    %c0_75 = arith.constant 0 : index
    %c0_76 = arith.constant 0 : index
    %113 = vector.load %arg9[%c2_74, %c0_75, %c0_76] : memref<8x1x4xf32, #tpu.memory_space<vmem>>, vector<1x1x4xf32>
    %114 = vector.shape_cast %113 : vector<1x1x4xf32> to vector<1x4xf32>
    %115 = vector.broadcast %114 : vector<1x4xf32> to vector<16x4xf32>
    %116 = arith.addf %112, %115 : vector<16x4xf32>
    %c2_77 = arith.constant 2 : index
    %c0_78 = arith.constant 0 : index
    %c0_79 = arith.constant 0 : index
    %117 = vector.load %arg7[%c2_77, %c0_78, %c0_79] : memref<8x32x4xbf16, #tpu.memory_space<vmem>>, vector<1x32x4xbf16>
    %118 = vector.shape_cast %117 : vector<1x32x4xbf16> to vector<32x4xbf16>
    %cst_80 = arith.constant dense<0.000000e+00> : vector<16x4xf32>
    %119 = tpu.matmul %3, %118, %cst_80 {dimension_numbers = #tpu.dot_dimension_numbers<[1], [0], [0], [1], [0, 0, 1, 1], [], []>} : vector<16x32xbf16>, vector<32x4xbf16>, vector<16x4xf32> -> vector<16x4xf32>
    %c2_81 = arith.constant 2 : index
    %c0_82 = arith.constant 0 : index
    %c0_83 = arith.constant 0 : index
    %120 = vector.load %arg10[%c2_81, %c0_82, %c0_83] : memref<8x1x4xf32, #tpu.memory_space<vmem>>, vector<1x1x4xf32>
    %121 = vector.shape_cast %120 : vector<1x1x4xf32> to vector<1x4xf32>
    %122 = vector.broadcast %121 : vector<1x4xf32> to vector<16x4xf32>
    %123 = arith.addf %119, %122 : vector<16x4xf32>
    %124 = vector.shape_cast %109 : vector<16x4xf32> to vector<2x8x4xf32>
    %125 = arith.truncf %124 : vector<2x8x4xf32> to vector<2x8x4xbf16>
    %126 = vector.shape_cast %116 : vector<16x4xf32> to vector<2x8x4xf32>
    %127 = arith.truncf %126 : vector<2x8x4xf32> to vector<2x8x4xbf16>
    %128 = vector.shape_cast %123 : vector<16x4xf32> to vector<2x8x4xf32>
    %129 = arith.truncf %128 : vector<2x8x4xf32> to vector<2x8x4xbf16>
    "tpu.trace_start"() <{level = 10 : i32, message = "bqd,bkd->bqk"}> : () -> ()
    %cst_84 = arith.constant dense<0.000000e+00> : vector<2x8x8xf32>
    %130 = tpu.matmul %125, %127, %cst_84 {dimension_numbers = #tpu.dot_dimension_numbers<[2], [2], [1], [1], [0, 0, 0, 1, 1, 1], [0], [0]>} : vector<2x8x4xbf16>, vector<2x8x4xbf16>, vector<2x8x8xf32> -> vector<2x8x8xf32>
    "tpu.trace_stop"() : () -> ()
    %131 = vector.broadcast %5 : vector<2x1x8xf32> to vector<2x8x8xf32>
    %132 = arith.addf %130, %131 : vector<2x8x8xf32>
    %cst_85 = arith.constant dense<0xFF800000> : vector<2x8xf32>
    %133 = vector.multi_reduction <maximumf>, %132, %cst_85 [2] : vector<2x8x8xf32> to vector<2x8xf32>
    %134 = vector.shape_cast %133 : vector<2x8xf32> to vector<2x8x1xf32>
    %135 = vector.broadcast %134 : vector<2x8x1xf32> to vector<2x8x8xf32>
    %136 = arith.subf %132, %135 : vector<2x8x8xf32>
    %137 = math.exp %136 : vector<2x8x8xf32>
    %cst_86 = arith.constant dense<0.000000e+00> : vector<2x8xf32>
    %138 = vector.multi_reduction <add>, %137, %cst_86 [2] : vector<2x8x8xf32> to vector<2x8xf32>
    %139 = vector.shape_cast %138 : vector<2x8xf32> to vector<2x8x1xf32>
    %140 = tpu.reciprocal %139 {approx = true} : vector<2x8x1xf32> -> vector<2x8x1xf32>
    %141 = vector.broadcast %140 : vector<2x8x1xf32> to vector<2x8x8xf32>
    %142 = arith.mulf %137, %141 : vector<2x8x8xf32>
    %143 = arith.truncf %142 : vector<2x8x8xf32> to vector<2x8x8xbf16>
    "tpu.trace_start"() <{level = 10 : i32, message = "bqk,bkd->bqd"}> : () -> ()
    %cst_87 = arith.constant dense<0.000000e+00> : vector<2x8x4xf32>
    %144 = tpu.matmul %143, %129, %cst_87 {dimension_numbers = #tpu.dot_dimension_numbers<[2], [1], [1], [2], [0, 0, 0, 1, 1, 2], [0], [0]>} : vector<2x8x8xbf16>, vector<2x8x4xbf16>, vector<2x8x4xf32> -> vector<2x8x4xf32>
    "tpu.trace_stop"() : () -> ()
    %145 = vector.shape_cast %144 : vector<2x8x4xf32> to vector<16x4xf32>
    %146 = arith.truncf %145 : vector<16x4xf32> to vector<16x4xbf16>
    %c2_88 = arith.constant 2 : index
    %c0_89 = arith.constant 0 : index
    %c0_90 = arith.constant 0 : index
    %147 = vector.load %arg11[%c2_88, %c0_89, %c0_90] : memref<8x4x32xbf16, #tpu.memory_space<vmem>>, vector<1x4x32xbf16>
    %148 = vector.shape_cast %147 : vector<1x4x32xbf16> to vector<4x32xbf16>
    %cst_91 = arith.constant dense<0.000000e+00> : vector<16x32xf32>
    %149 = tpu.matmul %146, %148, %cst_91 {dimension_numbers = #tpu.dot_dimension_numbers<[1], [0], [0], [1], [0, 0, 1, 1], [], []>} : vector<16x4xbf16>, vector<4x32xbf16>, vector<16x32xf32> -> vector<16x32xf32>
    %150 = arith.addf %102, %149 : vector<16x32xf32>
    %c3 = arith.constant 3 : index
    %c0_92 = arith.constant 0 : index
    %c0_93 = arith.constant 0 : index
    %151 = vector.load %arg5[%c3, %c0_92, %c0_93] : memref<8x32x4xbf16, #tpu.memory_space<vmem>>, vector<1x32x4xbf16>
    %152 = vector.shape_cast %151 : vector<1x32x4xbf16> to vector<32x4xbf16>
    %cst_94 = arith.constant dense<0.000000e+00> : vector<16x4xf32>
    %153 = tpu.matmul %1, %152, %cst_94 {dimension_numbers = #tpu.dot_dimension_numbers<[1], [0], [0], [1], [0, 0, 1, 1], [], []>} : vector<16x32xbf16>, vector<32x4xbf16>, vector<16x4xf32> -> vector<16x4xf32>
    %c3_95 = arith.constant 3 : index
    %c0_96 = arith.constant 0 : index
    %c0_97 = arith.constant 0 : index
    %154 = vector.load %arg8[%c3_95, %c0_96, %c0_97] : memref<8x1x4xf32, #tpu.memory_space<vmem>>, vector<1x1x4xf32>
    %155 = vector.shape_cast %154 : vector<1x1x4xf32> to vector<1x4xf32>
    %156 = vector.broadcast %155 : vector<1x4xf32> to vector<16x4xf32>
    %157 = arith.addf %153, %156 : vector<16x4xf32>
    %c3_98 = arith.constant 3 : index
    %c0_99 = arith.constant 0 : index
    %c0_100 = arith.constant 0 : index
    %158 = vector.load %arg6[%c3_98, %c0_99, %c0_100] : memref<8x32x4xbf16, #tpu.memory_space<vmem>>, vector<1x32x4xbf16>
    %159 = vector.shape_cast %158 : vector<1x32x4xbf16> to vector<32x4xbf16>
    %cst_101 = arith.constant dense<0.000000e+00> : vector<16x4xf32>
    %160 = tpu.matmul %2, %159, %cst_101 {dimension_numbers = #tpu.dot_dimension_numbers<[1], [0], [0], [1], [0, 0, 1, 1], [], []>} : vector<16x32xbf16>, vector<32x4xbf16>, vector<16x4xf32> -> vector<16x4xf32>
    %c3_102 = arith.constant 3 : index
    %c0_103 = arith.constant 0 : index
    %c0_104 = arith.constant 0 : index
    %161 = vector.load %arg9[%c3_102, %c0_103, %c0_104] : memref<8x1x4xf32, #tpu.memory_space<vmem>>, vector<1x1x4xf32>
    %162 = vector.shape_cast %161 : vector<1x1x4xf32> to vector<1x4xf32>
    %163 = vector.broadcast %162 : vector<1x4xf32> to vector<16x4xf32>
    %164 = arith.addf %160, %163 : vector<16x4xf32>
    %c3_105 = arith.constant 3 : index
    %c0_106 = arith.constant 0 : index
    %c0_107 = arith.constant 0 : index
    %165 = vector.load %arg7[%c3_105, %c0_106, %c0_107] : memref<8x32x4xbf16, #tpu.memory_space<vmem>>, vector<1x32x4xbf16>
    %166 = vector.shape_cast %165 : vector<1x32x4xbf16> to vector<32x4xbf16>
    %cst_108 = arith.constant dense<0.000000e+00> : vector<16x4xf32>
    %167 = tpu.matmul %3, %166, %cst_108 {dimension_numbers = #tpu.dot_dimension_numbers<[1], [0], [0], [1], [0, 0, 1, 1], [], []>} : vector<16x32xbf16>, vector<32x4xbf16>, vector<16x4xf32> -> vector<16x4xf32>
    %c3_109 = arith.constant 3 : index
    %c0_110 = arith.constant 0 : index
    %c0_111 = arith.constant 0 : index
    %168 = vector.load %arg10[%c3_109, %c0_110, %c0_111] : memref<8x1x4xf32, #tpu.memory_space<vmem>>, vector<1x1x4xf32>
    %169 = vector.shape_cast %168 : vector<1x1x4xf32> to vector<1x4xf32>
    %170 = vector.broadcast %169 : vector<1x4xf32> to vector<16x4xf32>
    %171 = arith.addf %167, %170 : vector<16x4xf32>
    %172 = vector.shape_cast %157 : vector<16x4xf32> to vector<2x8x4xf32>
    %173 = arith.truncf %172 : vector<2x8x4xf32> to vector<2x8x4xbf16>
    %174 = vector.shape_cast %164 : vector<16x4xf32> to vector<2x8x4xf32>
    %175 = arith.truncf %174 : vector<2x8x4xf32> to vector<2x8x4xbf16>
    %176 = vector.shape_cast %171 : vector<16x4xf32> to vector<2x8x4xf32>
    %177 = arith.truncf %176 : vector<2x8x4xf32> to vector<2x8x4xbf16>
    "tpu.trace_start"() <{level = 10 : i32, message = "bqd,bkd->bqk"}> : () -> ()
    %cst_112 = arith.constant dense<0.000000e+00> : vector<2x8x8xf32>
    %178 = tpu.matmul %173, %175, %cst_112 {dimension_numbers = #tpu.dot_dimension_numbers<[2], [2], [1], [1], [0, 0, 0, 1, 1, 1], [0], [0]>} : vector<2x8x4xbf16>, vector<2x8x4xbf16>, vector<2x8x8xf32> -> vector<2x8x8xf32>
    "tpu.trace_stop"() : () -> ()
    %179 = vector.broadcast %5 : vector<2x1x8xf32> to vector<2x8x8xf32>
    %180 = arith.addf %178, %179 : vector<2x8x8xf32>
    %cst_113 = arith.constant dense<0xFF800000> : vector<2x8xf32>
    %181 = vector.multi_reduction <maximumf>, %180, %cst_113 [2] : vector<2x8x8xf32> to vector<2x8xf32>
    %182 = vector.shape_cast %181 : vector<2x8xf32> to vector<2x8x1xf32>
    %183 = vector.broadcast %182 : vector<2x8x1xf32> to vector<2x8x8xf32>
    %184 = arith.subf %180, %183 : vector<2x8x8xf32>
    %185 = math.exp %184 : vector<2x8x8xf32>
    %cst_114 = arith.constant dense<0.000000e+00> : vector<2x8xf32>
    %186 = vector.multi_reduction <add>, %185, %cst_114 [2] : vector<2x8x8xf32> to vector<2x8xf32>
    %187 = vector.shape_cast %186 : vector<2x8xf32> to vector<2x8x1xf32>
    %188 = tpu.reciprocal %187 {approx = true} : vector<2x8x1xf32> -> vector<2x8x1xf32>
    %189 = vector.broadcast %188 : vector<2x8x1xf32> to vector<2x8x8xf32>
    %190 = arith.mulf %185, %189 : vector<2x8x8xf32>
    %191 = arith.truncf %190 : vector<2x8x8xf32> to vector<2x8x8xbf16>
    "tpu.trace_start"() <{level = 10 : i32, message = "bqk,bkd->bqd"}> : () -> ()
    %cst_115 = arith.constant dense<0.000000e+00> : vector<2x8x4xf32>
    %192 = tpu.matmul %191, %177, %cst_115 {dimension_numbers = #tpu.dot_dimension_numbers<[2], [1], [1], [2], [0, 0, 0, 1, 1, 2], [0], [0]>} : vector<2x8x8xbf16>, vector<2x8x4xbf16>, vector<2x8x4xf32> -> vector<2x8x4xf32>
    "tpu.trace_stop"() : () -> ()
    %193 = vector.shape_cast %192 : vector<2x8x4xf32> to vector<16x4xf32>
    %194 = arith.truncf %193 : vector<16x4xf32> to vector<16x4xbf16>
    %c3_116 = arith.constant 3 : index
    %c0_117 = arith.constant 0 : index
    %c0_118 = arith.constant 0 : index
    %195 = vector.load %arg11[%c3_116, %c0_117, %c0_118] : memref<8x4x32xbf16, #tpu.memory_space<vmem>>, vector<1x4x32xbf16>
    %196 = vector.shape_cast %195 : vector<1x4x32xbf16> to vector<4x32xbf16>
    %cst_119 = arith.constant dense<0.000000e+00> : vector<16x32xf32>
    %197 = tpu.matmul %194, %196, %cst_119 {dimension_numbers = #tpu.dot_dimension_numbers<[1], [0], [0], [1], [0, 0, 1, 1], [], []>} : vector<16x4xbf16>, vector<4x32xbf16>, vector<16x32xf32> -> vector<16x32xf32>
    %198 = arith.addf %150, %197 : vector<16x32xf32>
    %c4 = arith.constant 4 : index
    %c0_120 = arith.constant 0 : index
    %c0_121 = arith.constant 0 : index
    %199 = vector.load %arg5[%c4, %c0_120, %c0_121] : memref<8x32x4xbf16, #tpu.memory_space<vmem>>, vector<1x32x4xbf16>
    %200 = vector.shape_cast %199 : vector<1x32x4xbf16> to vector<32x4xbf16>
    %cst_122 = arith.constant dense<0.000000e+00> : vector<16x4xf32>
    %201 = tpu.matmul %1, %200, %cst_122 {dimension_numbers = #tpu.dot_dimension_numbers<[1], [0], [0], [1], [0, 0, 1, 1], [], []>} : vector<16x32xbf16>, vector<32x4xbf16>, vector<16x4xf32> -> vector<16x4xf32>
    %c4_123 = arith.constant 4 : index
    %c0_124 = arith.constant 0 : index
    %c0_125 = arith.constant 0 : index
    %202 = vector.load %arg8[%c4_123, %c0_124, %c0_125] : memref<8x1x4xf32, #tpu.memory_space<vmem>>, vector<1x1x4xf32>
    %203 = vector.shape_cast %202 : vector<1x1x4xf32> to vector<1x4xf32>
    %204 = vector.broadcast %203 : vector<1x4xf32> to vector<16x4xf32>
    %205 = arith.addf %201, %204 : vector<16x4xf32>
    %c4_126 = arith.constant 4 : index
    %c0_127 = arith.constant 0 : index
    %c0_128 = arith.constant 0 : index
    %206 = vector.load %arg6[%c4_126, %c0_127, %c0_128] : memref<8x32x4xbf16, #tpu.memory_space<vmem>>, vector<1x32x4xbf16>
    %207 = vector.shape_cast %206 : vector<1x32x4xbf16> to vector<32x4xbf16>
    %cst_129 = arith.constant dense<0.000000e+00> : vector<16x4xf32>
    %208 = tpu.matmul %2, %207, %cst_129 {dimension_numbers = #tpu.dot_dimension_numbers<[1], [0], [0], [1], [0, 0, 1, 1], [], []>} : vector<16x32xbf16>, vector<32x4xbf16>, vector<16x4xf32> -> vector<16x4xf32>
    %c4_130 = arith.constant 4 : index
    %c0_131 = arith.constant 0 : index
    %c0_132 = arith.constant 0 : index
    %209 = vector.load %arg9[%c4_130, %c0_131, %c0_132] : memref<8x1x4xf32, #tpu.memory_space<vmem>>, vector<1x1x4xf32>
    %210 = vector.shape_cast %209 : vector<1x1x4xf32> to vector<1x4xf32>
    %211 = vector.broadcast %210 : vector<1x4xf32> to vector<16x4xf32>
    %212 = arith.addf %208, %211 : vector<16x4xf32>
    %c4_133 = arith.constant 4 : index
    %c0_134 = arith.constant 0 : index
    %c0_135 = arith.constant 0 : index
    %213 = vector.load %arg7[%c4_133, %c0_134, %c0_135] : memref<8x32x4xbf16, #tpu.memory_space<vmem>>, vector<1x32x4xbf16>
    %214 = vector.shape_cast %213 : vector<1x32x4xbf16> to vector<32x4xbf16>
    %cst_136 = arith.constant dense<0.000000e+00> : vector<16x4xf32>
    %215 = tpu.matmul %3, %214, %cst_136 {dimension_numbers = #tpu.dot_dimension_numbers<[1], [0], [0], [1], [0, 0, 1, 1], [], []>} : vector<16x32xbf16>, vector<32x4xbf16>, vector<16x4xf32> -> vector<16x4xf32>
    %c4_137 = arith.constant 4 : index
    %c0_138 = arith.constant 0 : index
    %c0_139 = arith.constant 0 : index
    %216 = vector.load %arg10[%c4_137, %c0_138, %c0_139] : memref<8x1x4xf32, #tpu.memory_space<vmem>>, vector<1x1x4xf32>
    %217 = vector.shape_cast %216 : vector<1x1x4xf32> to vector<1x4xf32>
    %218 = vector.broadcast %217 : vector<1x4xf32> to vector<16x4xf32>
    %219 = arith.addf %215, %218 : vector<16x4xf32>
    %220 = vector.shape_cast %205 : vector<16x4xf32> to vector<2x8x4xf32>
    %221 = arith.truncf %220 : vector<2x8x4xf32> to vector<2x8x4xbf16>
    %222 = vector.shape_cast %212 : vector<16x4xf32> to vector<2x8x4xf32>
    %223 = arith.truncf %222 : vector<2x8x4xf32> to vector<2x8x4xbf16>
    %224 = vector.shape_cast %219 : vector<16x4xf32> to vector<2x8x4xf32>
    %225 = arith.truncf %224 : vector<2x8x4xf32> to vector<2x8x4xbf16>
    "tpu.trace_start"() <{level = 10 : i32, message = "bqd,bkd->bqk"}> : () -> ()
    %cst_140 = arith.constant dense<0.000000e+00> : vector<2x8x8xf32>
    %226 = tpu.matmul %221, %223, %cst_140 {dimension_numbers = #tpu.dot_dimension_numbers<[2], [2], [1], [1], [0, 0, 0, 1, 1, 1], [0], [0]>} : vector<2x8x4xbf16>, vector<2x8x4xbf16>, vector<2x8x8xf32> -> vector<2x8x8xf32>
    "tpu.trace_stop"() : () -> ()
    %227 = vector.broadcast %5 : vector<2x1x8xf32> to vector<2x8x8xf32>
    %228 = arith.addf %226, %227 : vector<2x8x8xf32>
    %cst_141 = arith.constant dense<0xFF800000> : vector<2x8xf32>
    %229 = vector.multi_reduction <maximumf>, %228, %cst_141 [2] : vector<2x8x8xf32> to vector<2x8xf32>
    %230 = vector.shape_cast %229 : vector<2x8xf32> to vector<2x8x1xf32>
    %231 = vector.broadcast %230 : vector<2x8x1xf32> to vector<2x8x8xf32>
    %232 = arith.subf %228, %231 : vector<2x8x8xf32>
    %233 = math.exp %232 : vector<2x8x8xf32>
    %cst_142 = arith.constant dense<0.000000e+00> : vector<2x8xf32>
    %234 = vector.multi_reduction <add>, %233, %cst_142 [2] : vector<2x8x8xf32> to vector<2x8xf32>
    %235 = vector.shape_cast %234 : vector<2x8xf32> to vector<2x8x1xf32>
    %236 = tpu.reciprocal %235 {approx = true} : vector<2x8x1xf32> -> vector<2x8x1xf32>
    %237 = vector.broadcast %236 : vector<2x8x1xf32> to vector<2x8x8xf32>
    %238 = arith.mulf %233, %237 : vector<2x8x8xf32>
    %239 = arith.truncf %238 : vector<2x8x8xf32> to vector<2x8x8xbf16>
    "tpu.trace_start"() <{level = 10 : i32, message = "bqk,bkd->bqd"}> : () -> ()
    %cst_143 = arith.constant dense<0.000000e+00> : vector<2x8x4xf32>
    %240 = tpu.matmul %239, %225, %cst_143 {dimension_numbers = #tpu.dot_dimension_numbers<[2], [1], [1], [2], [0, 0, 0, 1, 1, 2], [0], [0]>} : vector<2x8x8xbf16>, vector<2x8x4xbf16>, vector<2x8x4xf32> -> vector<2x8x4xf32>
    "tpu.trace_stop"() : () -> ()
    %241 = vector.shape_cast %240 : vector<2x8x4xf32> to vector<16x4xf32>
    %242 = arith.truncf %241 : vector<16x4xf32> to vector<16x4xbf16>
    %c4_144 = arith.constant 4 : index
    %c0_145 = arith.constant 0 : index
    %c0_146 = arith.constant 0 : index
    %243 = vector.load %arg11[%c4_144, %c0_145, %c0_146] : memref<8x4x32xbf16, #tpu.memory_space<vmem>>, vector<1x4x32xbf16>
    %244 = vector.shape_cast %243 : vector<1x4x32xbf16> to vector<4x32xbf16>
    %cst_147 = arith.constant dense<0.000000e+00> : vector<16x32xf32>
    %245 = tpu.matmul %242, %244, %cst_147 {dimension_numbers = #tpu.dot_dimension_numbers<[1], [0], [0], [1], [0, 0, 1, 1], [], []>} : vector<16x4xbf16>, vector<4x32xbf16>, vector<16x32xf32> -> vector<16x32xf32>
    %246 = arith.addf %198, %245 : vector<16x32xf32>
    %c5 = arith.constant 5 : index
    %c0_148 = arith.constant 0 : index
    %c0_149 = arith.constant 0 : index
    %247 = vector.load %arg5[%c5, %c0_148, %c0_149] : memref<8x32x4xbf16, #tpu.memory_space<vmem>>, vector<1x32x4xbf16>
    %248 = vector.shape_cast %247 : vector<1x32x4xbf16> to vector<32x4xbf16>
    %cst_150 = arith.constant dense<0.000000e+00> : vector<16x4xf32>
    %249 = tpu.matmul %1, %248, %cst_150 {dimension_numbers = #tpu.dot_dimension_numbers<[1], [0], [0], [1], [0, 0, 1, 1], [], []>} : vector<16x32xbf16>, vector<32x4xbf16>, vector<16x4xf32> -> vector<16x4xf32>
    %c5_151 = arith.constant 5 : index
    %c0_152 = arith.constant 0 : index
    %c0_153 = arith.constant 0 : index
    %250 = vector.load %arg8[%c5_151, %c0_152, %c0_153] : memref<8x1x4xf32, #tpu.memory_space<vmem>>, vector<1x1x4xf32>
    %251 = vector.shape_cast %250 : vector<1x1x4xf32> to vector<1x4xf32>
    %252 = vector.broadcast %251 : vector<1x4xf32> to vector<16x4xf32>
    %253 = arith.addf %249, %252 : vector<16x4xf32>
    %c5_154 = arith.constant 5 : index
    %c0_155 = arith.constant 0 : index
    %c0_156 = arith.constant 0 : index
    %254 = vector.load %arg6[%c5_154, %c0_155, %c0_156] : memref<8x32x4xbf16, #tpu.memory_space<vmem>>, vector<1x32x4xbf16>
    %255 = vector.shape_cast %254 : vector<1x32x4xbf16> to vector<32x4xbf16>
    %cst_157 = arith.constant dense<0.000000e+00> : vector<16x4xf32>
    %256 = tpu.matmul %2, %255, %cst_157 {dimension_numbers = #tpu.dot_dimension_numbers<[1], [0], [0], [1], [0, 0, 1, 1], [], []>} : vector<16x32xbf16>, vector<32x4xbf16>, vector<16x4xf32> -> vector<16x4xf32>
    %c5_158 = arith.constant 5 : index
    %c0_159 = arith.constant 0 : index
    %c0_160 = arith.constant 0 : index
    %257 = vector.load %arg9[%c5_158, %c0_159, %c0_160] : memref<8x1x4xf32, #tpu.memory_space<vmem>>, vector<1x1x4xf32>
    %258 = vector.shape_cast %257 : vector<1x1x4xf32> to vector<1x4xf32>
    %259 = vector.broadcast %258 : vector<1x4xf32> to vector<16x4xf32>
    %260 = arith.addf %256, %259 : vector<16x4xf32>
    %c5_161 = arith.constant 5 : index
    %c0_162 = arith.constant 0 : index
    %c0_163 = arith.constant 0 : index
    %261 = vector.load %arg7[%c5_161, %c0_162, %c0_163] : memref<8x32x4xbf16, #tpu.memory_space<vmem>>, vector<1x32x4xbf16>
    %262 = vector.shape_cast %261 : vector<1x32x4xbf16> to vector<32x4xbf16>
    %cst_164 = arith.constant dense<0.000000e+00> : vector<16x4xf32>
    %263 = tpu.matmul %3, %262, %cst_164 {dimension_numbers = #tpu.dot_dimension_numbers<[1], [0], [0], [1], [0, 0, 1, 1], [], []>} : vector<16x32xbf16>, vector<32x4xbf16>, vector<16x4xf32> -> vector<16x4xf32>
    %c5_165 = arith.constant 5 : index
    %c0_166 = arith.constant 0 : index
    %c0_167 = arith.constant 0 : index
    %264 = vector.load %arg10[%c5_165, %c0_166, %c0_167] : memref<8x1x4xf32, #tpu.memory_space<vmem>>, vector<1x1x4xf32>
    %265 = vector.shape_cast %264 : vector<1x1x4xf32> to vector<1x4xf32>
    %266 = vector.broadcast %265 : vector<1x4xf32> to vector<16x4xf32>
    %267 = arith.addf %263, %266 : vector<16x4xf32>
    %268 = vector.shape_cast %253 : vector<16x4xf32> to vector<2x8x4xf32>
    %269 = arith.truncf %268 : vector<2x8x4xf32> to vector<2x8x4xbf16>
    %270 = vector.shape_cast %260 : vector<16x4xf32> to vector<2x8x4xf32>
    %271 = arith.truncf %270 : vector<2x8x4xf32> to vector<2x8x4xbf16>
    %272 = vector.shape_cast %267 : vector<16x4xf32> to vector<2x8x4xf32>
    %273 = arith.truncf %272 : vector<2x8x4xf32> to vector<2x8x4xbf16>
    "tpu.trace_start"() <{level = 10 : i32, message = "bqd,bkd->bqk"}> : () -> ()
    %cst_168 = arith.constant dense<0.000000e+00> : vector<2x8x8xf32>
    %274 = tpu.matmul %269, %271, %cst_168 {dimension_numbers = #tpu.dot_dimension_numbers<[2], [2], [1], [1], [0, 0, 0, 1, 1, 1], [0], [0]>} : vector<2x8x4xbf16>, vector<2x8x4xbf16>, vector<2x8x8xf32> -> vector<2x8x8xf32>
    "tpu.trace_stop"() : () -> ()
    %275 = vector.broadcast %5 : vector<2x1x8xf32> to vector<2x8x8xf32>
    %276 = arith.addf %274, %275 : vector<2x8x8xf32>
    %cst_169 = arith.constant dense<0xFF800000> : vector<2x8xf32>
    %277 = vector.multi_reduction <maximumf>, %276, %cst_169 [2] : vector<2x8x8xf32> to vector<2x8xf32>
    %278 = vector.shape_cast %277 : vector<2x8xf32> to vector<2x8x1xf32>
    %279 = vector.broadcast %278 : vector<2x8x1xf32> to vector<2x8x8xf32>
    %280 = arith.subf %276, %279 : vector<2x8x8xf32>
    %281 = math.exp %280 : vector<2x8x8xf32>
    %cst_170 = arith.constant dense<0.000000e+00> : vector<2x8xf32>
    %282 = vector.multi_reduction <add>, %281, %cst_170 [2] : vector<2x8x8xf32> to vector<2x8xf32>
    %283 = vector.shape_cast %282 : vector<2x8xf32> to vector<2x8x1xf32>
    %284 = tpu.reciprocal %283 {approx = true} : vector<2x8x1xf32> -> vector<2x8x1xf32>
    %285 = vector.broadcast %284 : vector<2x8x1xf32> to vector<2x8x8xf32>
    %286 = arith.mulf %281, %285 : vector<2x8x8xf32>
    %287 = arith.truncf %286 : vector<2x8x8xf32> to vector<2x8x8xbf16>
    "tpu.trace_start"() <{level = 10 : i32, message = "bqk,bkd->bqd"}> : () -> ()
    %cst_171 = arith.constant dense<0.000000e+00> : vector<2x8x4xf32>
    %288 = tpu.matmul %287, %273, %cst_171 {dimension_numbers = #tpu.dot_dimension_numbers<[2], [1], [1], [2], [0, 0, 0, 1, 1, 2], [0], [0]>} : vector<2x8x8xbf16>, vector<2x8x4xbf16>, vector<2x8x4xf32> -> vector<2x8x4xf32>
    "tpu.trace_stop"() : () -> ()
    %289 = vector.shape_cast %288 : vector<2x8x4xf32> to vector<16x4xf32>
    %290 = arith.truncf %289 : vector<16x4xf32> to vector<16x4xbf16>
    %c5_172 = arith.constant 5 : index
    %c0_173 = arith.constant 0 : index
    %c0_174 = arith.constant 0 : index
    %291 = vector.load %arg11[%c5_172, %c0_173, %c0_174] : memref<8x4x32xbf16, #tpu.memory_space<vmem>>, vector<1x4x32xbf16>
    %292 = vector.shape_cast %291 : vector<1x4x32xbf16> to vector<4x32xbf16>
    %cst_175 = arith.constant dense<0.000000e+00> : vector<16x32xf32>
    %293 = tpu.matmul %290, %292, %cst_175 {dimension_numbers = #tpu.dot_dimension_numbers<[1], [0], [0], [1], [0, 0, 1, 1], [], []>} : vector<16x4xbf16>, vector<4x32xbf16>, vector<16x32xf32> -> vector<16x32xf32>
    %294 = arith.addf %246, %293 : vector<16x32xf32>
    %c6 = arith.constant 6 : index
    %c0_176 = arith.constant 0 : index
    %c0_177 = arith.constant 0 : index
    %295 = vector.load %arg5[%c6, %c0_176, %c0_177] : memref<8x32x4xbf16, #tpu.memory_space<vmem>>, vector<1x32x4xbf16>
    %296 = vector.shape_cast %295 : vector<1x32x4xbf16> to vector<32x4xbf16>
    %cst_178 = arith.constant dense<0.000000e+00> : vector<16x4xf32>
    %297 = tpu.matmul %1, %296, %cst_178 {dimension_numbers = #tpu.dot_dimension_numbers<[1], [0], [0], [1], [0, 0, 1, 1], [], []>} : vector<16x32xbf16>, vector<32x4xbf16>, vector<16x4xf32> -> vector<16x4xf32>
    %c6_179 = arith.constant 6 : index
    %c0_180 = arith.constant 0 : index
    %c0_181 = arith.constant 0 : index
    %298 = vector.load %arg8[%c6_179, %c0_180, %c0_181] : memref<8x1x4xf32, #tpu.memory_space<vmem>>, vector<1x1x4xf32>
    %299 = vector.shape_cast %298 : vector<1x1x4xf32> to vector<1x4xf32>
    %300 = vector.broadcast %299 : vector<1x4xf32> to vector<16x4xf32>
    %301 = arith.addf %297, %300 : vector<16x4xf32>
    %c6_182 = arith.constant 6 : index
    %c0_183 = arith.constant 0 : index
    %c0_184 = arith.constant 0 : index
    %302 = vector.load %arg6[%c6_182, %c0_183, %c0_184] : memref<8x32x4xbf16, #tpu.memory_space<vmem>>, vector<1x32x4xbf16>
    %303 = vector.shape_cast %302 : vector<1x32x4xbf16> to vector<32x4xbf16>
    %cst_185 = arith.constant dense<0.000000e+00> : vector<16x4xf32>
    %304 = tpu.matmul %2, %303, %cst_185 {dimension_numbers = #tpu.dot_dimension_numbers<[1], [0], [0], [1], [0, 0, 1, 1], [], []>} : vector<16x32xbf16>, vector<32x4xbf16>, vector<16x4xf32> -> vector<16x4xf32>
    %c6_186 = arith.constant 6 : index
    %c0_187 = arith.constant 0 : index
    %c0_188 = arith.constant 0 : index
    %305 = vector.load %arg9[%c6_186, %c0_187, %c0_188] : memref<8x1x4xf32, #tpu.memory_space<vmem>>, vector<1x1x4xf32>
    %306 = vector.shape_cast %305 : vector<1x1x4xf32> to vector<1x4xf32>
    %307 = vector.broadcast %306 : vector<1x4xf32> to vector<16x4xf32>
    %308 = arith.addf %304, %307 : vector<16x4xf32>
    %c6_189 = arith.constant 6 : index
    %c0_190 = arith.constant 0 : index
    %c0_191 = arith.constant 0 : index
    %309 = vector.load %arg7[%c6_189, %c0_190, %c0_191] : memref<8x32x4xbf16, #tpu.memory_space<vmem>>, vector<1x32x4xbf16>
    %310 = vector.shape_cast %309 : vector<1x32x4xbf16> to vector<32x4xbf16>
    %cst_192 = arith.constant dense<0.000000e+00> : vector<16x4xf32>
    %311 = tpu.matmul %3, %310, %cst_192 {dimension_numbers = #tpu.dot_dimension_numbers<[1], [0], [0], [1], [0, 0, 1, 1], [], []>} : vector<16x32xbf16>, vector<32x4xbf16>, vector<16x4xf32> -> vector<16x4xf32>
    %c6_193 = arith.constant 6 : index
    %c0_194 = arith.constant 0 : index
    %c0_195 = arith.constant 0 : index
    %312 = vector.load %arg10[%c6_193, %c0_194, %c0_195] : memref<8x1x4xf32, #tpu.memory_space<vmem>>, vector<1x1x4xf32>
    %313 = vector.shape_cast %312 : vector<1x1x4xf32> to vector<1x4xf32>
    %314 = vector.broadcast %313 : vector<1x4xf32> to vector<16x4xf32>
    %315 = arith.addf %311, %314 : vector<16x4xf32>
    %316 = vector.shape_cast %301 : vector<16x4xf32> to vector<2x8x4xf32>
    %317 = arith.truncf %316 : vector<2x8x4xf32> to vector<2x8x4xbf16>
    %318 = vector.shape_cast %308 : vector<16x4xf32> to vector<2x8x4xf32>
    %319 = arith.truncf %318 : vector<2x8x4xf32> to vector<2x8x4xbf16>
    %320 = vector.shape_cast %315 : vector<16x4xf32> to vector<2x8x4xf32>
    %321 = arith.truncf %320 : vector<2x8x4xf32> to vector<2x8x4xbf16>
    "tpu.trace_start"() <{level = 10 : i32, message = "bqd,bkd->bqk"}> : () -> ()
    %cst_196 = arith.constant dense<0.000000e+00> : vector<2x8x8xf32>
    %322 = tpu.matmul %317, %319, %cst_196 {dimension_numbers = #tpu.dot_dimension_numbers<[2], [2], [1], [1], [0, 0, 0, 1, 1, 1], [0], [0]>} : vector<2x8x4xbf16>, vector<2x8x4xbf16>, vector<2x8x8xf32> -> vector<2x8x8xf32>
    "tpu.trace_stop"() : () -> ()
    %323 = vector.broadcast %5 : vector<2x1x8xf32> to vector<2x8x8xf32>
    %324 = arith.addf %322, %323 : vector<2x8x8xf32>
    %cst_197 = arith.constant dense<0xFF800000> : vector<2x8xf32>
    %325 = vector.multi_reduction <maximumf>, %324, %cst_197 [2] : vector<2x8x8xf32> to vector<2x8xf32>
    %326 = vector.shape_cast %325 : vector<2x8xf32> to vector<2x8x1xf32>
    %327 = vector.broadcast %326 : vector<2x8x1xf32> to vector<2x8x8xf32>
    %328 = arith.subf %324, %327 : vector<2x8x8xf32>
    %329 = math.exp %328 : vector<2x8x8xf32>
    %cst_198 = arith.constant dense<0.000000e+00> : vector<2x8xf32>
    %330 = vector.multi_reduction <add>, %329, %cst_198 [2] : vector<2x8x8xf32> to vector<2x8xf32>
    %331 = vector.shape_cast %330 : vector<2x8xf32> to vector<2x8x1xf32>
    %332 = tpu.reciprocal %331 {approx = true} : vector<2x8x1xf32> -> vector<2x8x1xf32>
    %333 = vector.broadcast %332 : vector<2x8x1xf32> to vector<2x8x8xf32>
    %334 = arith.mulf %329, %333 : vector<2x8x8xf32>
    %335 = arith.truncf %334 : vector<2x8x8xf32> to vector<2x8x8xbf16>
    "tpu.trace_start"() <{level = 10 : i32, message = "bqk,bkd->bqd"}> : () -> ()
    %cst_199 = arith.constant dense<0.000000e+00> : vector<2x8x4xf32>
    %336 = tpu.matmul %335, %321, %cst_199 {dimension_numbers = #tpu.dot_dimension_numbers<[2], [1], [1], [2], [0, 0, 0, 1, 1, 2], [0], [0]>} : vector<2x8x8xbf16>, vector<2x8x4xbf16>, vector<2x8x4xf32> -> vector<2x8x4xf32>
    "tpu.trace_stop"() : () -> ()
    %337 = vector.shape_cast %336 : vector<2x8x4xf32> to vector<16x4xf32>
    %338 = arith.truncf %337 : vector<16x4xf32> to vector<16x4xbf16>
    %c6_200 = arith.constant 6 : index
    %c0_201 = arith.constant 0 : index
    %c0_202 = arith.constant 0 : index
    %339 = vector.load %arg11[%c6_200, %c0_201, %c0_202] : memref<8x4x32xbf16, #tpu.memory_space<vmem>>, vector<1x4x32xbf16>
    %340 = vector.shape_cast %339 : vector<1x4x32xbf16> to vector<4x32xbf16>
    %cst_203 = arith.constant dense<0.000000e+00> : vector<16x32xf32>
    %341 = tpu.matmul %338, %340, %cst_203 {dimension_numbers = #tpu.dot_dimension_numbers<[1], [0], [0], [1], [0, 0, 1, 1], [], []>} : vector<16x4xbf16>, vector<4x32xbf16>, vector<16x32xf32> -> vector<16x32xf32>
    %342 = arith.addf %294, %341 : vector<16x32xf32>
    %c7 = arith.constant 7 : index
    %c0_204 = arith.constant 0 : index
    %c0_205 = arith.constant 0 : index
    %343 = vector.load %arg5[%c7, %c0_204, %c0_205] : memref<8x32x4xbf16, #tpu.memory_space<vmem>>, vector<1x32x4xbf16>
    %344 = vector.shape_cast %343 : vector<1x32x4xbf16> to vector<32x4xbf16>
    %cst_206 = arith.constant dense<0.000000e+00> : vector<16x4xf32>
    %345 = tpu.matmul %1, %344, %cst_206 {dimension_numbers = #tpu.dot_dimension_numbers<[1], [0], [0], [1], [0, 0, 1, 1], [], []>} : vector<16x32xbf16>, vector<32x4xbf16>, vector<16x4xf32> -> vector<16x4xf32>
    %c7_207 = arith.constant 7 : index
    %c0_208 = arith.constant 0 : index
    %c0_209 = arith.constant 0 : index
    %346 = vector.load %arg8[%c7_207, %c0_208, %c0_209] : memref<8x1x4xf32, #tpu.memory_space<vmem>>, vector<1x1x4xf32>
    %347 = vector.shape_cast %346 : vector<1x1x4xf32> to vector<1x4xf32>
    %348 = vector.broadcast %347 : vector<1x4xf32> to vector<16x4xf32>
    %349 = arith.addf %345, %348 : vector<16x4xf32>
    %c7_210 = arith.constant 7 : index
    %c0_211 = arith.constant 0 : index
    %c0_212 = arith.constant 0 : index
    %350 = vector.load %arg6[%c7_210, %c0_211, %c0_212] : memref<8x32x4xbf16, #tpu.memory_space<vmem>>, vector<1x32x4xbf16>
    %351 = vector.shape_cast %350 : vector<1x32x4xbf16> to vector<32x4xbf16>
    %cst_213 = arith.constant dense<0.000000e+00> : vector<16x4xf32>
    %352 = tpu.matmul %2, %351, %cst_213 {dimension_numbers = #tpu.dot_dimension_numbers<[1], [0], [0], [1], [0, 0, 1, 1], [], []>} : vector<16x32xbf16>, vector<32x4xbf16>, vector<16x4xf32> -> vector<16x4xf32>
    %c7_214 = arith.constant 7 : index
    %c0_215 = arith.constant 0 : index
    %c0_216 = arith.constant 0 : index
    %353 = vector.load %arg9[%c7_214, %c0_215, %c0_216] : memref<8x1x4xf32, #tpu.memory_space<vmem>>, vector<1x1x4xf32>
    %354 = vector.shape_cast %353 : vector<1x1x4xf32> to vector<1x4xf32>
    %355 = vector.broadcast %354 : vector<1x4xf32> to vector<16x4xf32>
    %356 = arith.addf %352, %355 : vector<16x4xf32>
    %c7_217 = arith.constant 7 : index
    %c0_218 = arith.constant 0 : index
    %c0_219 = arith.constant 0 : index
    %357 = vector.load %arg7[%c7_217, %c0_218, %c0_219] : memref<8x32x4xbf16, #tpu.memory_space<vmem>>, vector<1x32x4xbf16>
    %358 = vector.shape_cast %357 : vector<1x32x4xbf16> to vector<32x4xbf16>
    %cst_220 = arith.constant dense<0.000000e+00> : vector<16x4xf32>
    %359 = tpu.matmul %3, %358, %cst_220 {dimension_numbers = #tpu.dot_dimension_numbers<[1], [0], [0], [1], [0, 0, 1, 1], [], []>} : vector<16x32xbf16>, vector<32x4xbf16>, vector<16x4xf32> -> vector<16x4xf32>
    %c7_221 = arith.constant 7 : index
    %c0_222 = arith.constant 0 : index
    %c0_223 = arith.constant 0 : index
    %360 = vector.load %arg10[%c7_221, %c0_222, %c0_223] : memref<8x1x4xf32, #tpu.memory_space<vmem>>, vector<1x1x4xf32>
    %361 = vector.shape_cast %360 : vector<1x1x4xf32> to vector<1x4xf32>
    %362 = vector.broadcast %361 : vector<1x4xf32> to vector<16x4xf32>
    %363 = arith.addf %359, %362 : vector<16x4xf32>
    %364 = vector.shape_cast %349 : vector<16x4xf32> to vector<2x8x4xf32>
    %365 = arith.truncf %364 : vector<2x8x4xf32> to vector<2x8x4xbf16>
    %366 = vector.shape_cast %356 : vector<16x4xf32> to vector<2x8x4xf32>
    %367 = arith.truncf %366 : vector<2x8x4xf32> to vector<2x8x4xbf16>
    %368 = vector.shape_cast %363 : vector<16x4xf32> to vector<2x8x4xf32>
    %369 = arith.truncf %368 : vector<2x8x4xf32> to vector<2x8x4xbf16>
    "tpu.trace_start"() <{level = 10 : i32, message = "bqd,bkd->bqk"}> : () -> ()
    %cst_224 = arith.constant dense<0.000000e+00> : vector<2x8x8xf32>
    %370 = tpu.matmul %365, %367, %cst_224 {dimension_numbers = #tpu.dot_dimension_numbers<[2], [2], [1], [1], [0, 0, 0, 1, 1, 1], [0], [0]>} : vector<2x8x4xbf16>, vector<2x8x4xbf16>, vector<2x8x8xf32> -> vector<2x8x8xf32>
    "tpu.trace_stop"() : () -> ()
    %371 = vector.broadcast %5 : vector<2x1x8xf32> to vector<2x8x8xf32>
    %372 = arith.addf %370, %371 : vector<2x8x8xf32>
    %cst_225 = arith.constant dense<0xFF800000> : vector<2x8xf32>
    %373 = vector.multi_reduction <maximumf>, %372, %cst_225 [2] : vector<2x8x8xf32> to vector<2x8xf32>
    %374 = vector.shape_cast %373 : vector<2x8xf32> to vector<2x8x1xf32>
    %375 = vector.broadcast %374 : vector<2x8x1xf32> to vector<2x8x8xf32>
    %376 = arith.subf %372, %375 : vector<2x8x8xf32>
    %377 = math.exp %376 : vector<2x8x8xf32>
    %cst_226 = arith.constant dense<0.000000e+00> : vector<2x8xf32>
    %378 = vector.multi_reduction <add>, %377, %cst_226 [2] : vector<2x8x8xf32> to vector<2x8xf32>
    %379 = vector.shape_cast %378 : vector<2x8xf32> to vector<2x8x1xf32>
    %380 = tpu.reciprocal %379 {approx = true} : vector<2x8x1xf32> -> vector<2x8x1xf32>
    %381 = vector.broadcast %380 : vector<2x8x1xf32> to vector<2x8x8xf32>
    %382 = arith.mulf %377, %381 : vector<2x8x8xf32>
    %383 = arith.truncf %382 : vector<2x8x8xf32> to vector<2x8x8xbf16>
    "tpu.trace_start"() <{level = 10 : i32, message = "bqk,bkd->bqd"}> : () -> ()
    %cst_227 = arith.constant dense<0.000000e+00> : vector<2x8x4xf32>
    %384 = tpu.matmul %383, %369, %cst_227 {dimension_numbers = #tpu.dot_dimension_numbers<[2], [1], [1], [2], [0, 0, 0, 1, 1, 2], [0], [0]>} : vector<2x8x8xbf16>, vector<2x8x4xbf16>, vector<2x8x4xf32> -> vector<2x8x4xf32>
    "tpu.trace_stop"() : () -> ()
    %385 = vector.shape_cast %384 : vector<2x8x4xf32> to vector<16x4xf32>
    %386 = arith.truncf %385 : vector<16x4xf32> to vector<16x4xbf16>
    %c7_228 = arith.constant 7 : index
    %c0_229 = arith.constant 0 : index
    %c0_230 = arith.constant 0 : index
    %387 = vector.load %arg11[%c7_228, %c0_229, %c0_230] : memref<8x4x32xbf16, #tpu.memory_space<vmem>>, vector<1x4x32xbf16>
    %388 = vector.shape_cast %387 : vector<1x4x32xbf16> to vector<4x32xbf16>
    %cst_231 = arith.constant dense<0.000000e+00> : vector<16x32xf32>
    %389 = tpu.matmul %386, %388, %cst_231 {dimension_numbers = #tpu.dot_dimension_numbers<[1], [0], [0], [1], [0, 0, 1, 1], [], []>} : vector<16x4xbf16>, vector<4x32xbf16>, vector<16x32xf32> -> vector<16x32xf32>
    %390 = arith.addf %342, %389 : vector<16x32xf32>
    %c0_232 = arith.constant 0 : index
    %c0_233 = arith.constant 0 : index
    %391 = vector.load %arg12[%c0_232, %c0_233] : memref<1x32xf32, #tpu.memory_space<vmem>>, vector<1x32xf32>
    %392 = vector.broadcast %391 : vector<1x32xf32> to vector<16x32xf32>
    %393 = arith.addf %390, %392 : vector<16x32xf32>
    %394 = arith.addf %0, %393 : vector<16x32xf32>
    %cst_234 = arith.constant dense<0.000000e+00> : vector<16xf32>
    %395 = vector.multi_reduction <add>, %394, %cst_234 [1] : vector<16x32xf32> to vector<16xf32>
    %396 = vector.shape_cast %395 : vector<16xf32> to vector<16x1xf32>
    %cst_235 = arith.constant 3.200000e+01 : f32
    %397 = vector.broadcast %cst_235 : f32 to vector<16x1xf32>
    %398 = arith.divf %396, %397 : vector<16x1xf32>
    %399 = vector.broadcast %398 : vector<16x1xf32> to vector<16x32xf32>
    %400 = arith.subf %394, %399 : vector<16x32xf32>
    %401 = arith.mulf %400, %400 : vector<16x32xf32>
    %cst_236 = arith.constant dense<0.000000e+00> : vector<16xf32>
    %402 = vector.multi_reduction <add>, %401, %cst_236 [1] : vector<16x32xf32> to vector<16xf32>
    %403 = vector.shape_cast %402 : vector<16xf32> to vector<16x1xf32>
    %cst_237 = arith.constant 3.200000e+01 : f32
    %404 = vector.broadcast %cst_237 : f32 to vector<16x1xf32>
    %405 = arith.divf %403, %404 : vector<16x1xf32>
    %cst_238 = arith.constant 9.99999974E-6 : f32
    %406 = vector.broadcast %cst_238 : f32 to vector<16x1xf32>
    %407 = arith.addf %405, %406 : vector<16x1xf32>
    %408 = math.rsqrt %407 : vector<16x1xf32>
    %409 = vector.broadcast %408 : vector<16x1xf32> to vector<16x32xf32>
    %410 = arith.mulf %400, %409 : vector<16x32xf32>
    %c0_239 = arith.constant 0 : index
    %c0_240 = arith.constant 0 : index
    %411 = vector.load %arg13[%c0_239, %c0_240] : memref<1x32xf32, #tpu.memory_space<vmem>>, vector<1x32xf32>
    %412 = vector.broadcast %411 : vector<1x32xf32> to vector<16x32xf32>
    %413 = arith.mulf %410, %412 : vector<16x32xf32>
    %c0_241 = arith.constant 0 : index
    %c0_242 = arith.constant 0 : index
    %414 = vector.load %arg14[%c0_241, %c0_242] : memref<1x32xf32, #tpu.memory_space<vmem>>, vector<1x32xf32>
    %415 = vector.broadcast %414 : vector<1x32xf32> to vector<16x32xf32>
    %416 = arith.addf %413, %415 : vector<16x32xf32>
    %c0_243 = arith.constant 0 : index
    %c0_244 = arith.constant 0 : index
    %417 = vector.load %arg15[%c0_243, %c0_244] : memref<16x32xf32, #tpu.memory_space<vmem>>, vector<16x32xf32>
    tpu.vector_store %arg15[%c0_243, %c0_244], %416 {strides = array<i32>} : memref<16x32xf32, #tpu.memory_space<vmem>>, vector<16x32xf32>,
    return
  }
  func.func @transform_0(%arg0: i32) -> (i32, i32) {
    %c0_i32 = arith.constant 0 : i32
    %c0_i32_0 = arith.constant 0 : i32
    return %arg0, %c0_i32 : i32, i32
  }
  func.func @transform_1(%arg0: i32) -> (i32, i32) {
    %c0_i32 = arith.constant 0 : i32
    %c0_i32_0 = arith.constant 0 : i32
    return %arg0, %c0_i32 : i32, i32
  }
  func.func @transform_2(%arg0: i32) -> (i32, i32) {
    %c0_i32 = arith.constant 0 : i32
    %c0_i32_0 = arith.constant 0 : i32
    return %arg0, %c0_i32 : i32, i32
  }
  func.func @transform_3(%arg0: i32) -> (i32, i32) {
    %c0_i32 = arith.constant 0 : i32
    %c0_i32_0 = arith.constant 0 : i32
    return %arg0, %c0_i32 : i32, i32
  }
  func.func @transform_4(%arg0: i32) -> (i32, i32, i32) {
    %c0_i32 = arith.constant 0 : i32
    %c0_i32_0 = arith.constant 0 : i32
    %c0_i32_1 = arith.constant 0 : i32
    %c0_i32_2 = arith.constant 0 : i32
    return %c0_i32, %c0_i32_0, %c0_i32_1 : i32, i32, i32
  }
  func.func @transform_5(%arg0: i32) -> (i32, i32, i32) {
    %c0_i32 = arith.constant 0 : i32
    %c0_i32_0 = arith.constant 0 : i32
    %c0_i32_1 = arith.constant 0 : i32
    %c0_i32_2 = arith.constant 0 : i32
    return %c0_i32, %c0_i32_0, %c0_i32_1 : i32, i32, i32
  }
  func.func @transform_6(%arg0: i32) -> (i32, i32, i32) {
    %c0_i32 = arith.constant 0 : i32
    %c0_i32_0 = arith.constant 0 : i32
    %c0_i32_1 = arith.constant 0 : i32
    %c0_i32_2 = arith.constant 0 : i32
    return %c0_i32, %c0_i32_0, %c0_i32_1 : i32, i32, i32
  }
  func.func @transform_7(%arg0: i32) -> (i32, i32, i32) {
    %c0_i32 = arith.constant 0 : i32
    %c0_i32_0 = arith.constant 0 : i32
    %c0_i32_1 = arith.constant 0 : i32
    %c0_i32_2 = arith.constant 0 : i32
    return %c0_i32, %c0_i32_0, %c0_i32_1 : i32, i32, i32
  }
  func.func @transform_8(%arg0: i32) -> (i32, i32, i32) {
    %c0_i32 = arith.constant 0 : i32
    %c0_i32_0 = arith.constant 0 : i32
    %c0_i32_1 = arith.constant 0 : i32
    %c0_i32_2 = arith.constant 0 : i32
    return %c0_i32, %c0_i32_0, %c0_i32_1 : i32, i32, i32
  }
  func.func @transform_9(%arg0: i32) -> (i32, i32, i32) {
    %c0_i32 = arith.constant 0 : i32
    %c0_i32_0 = arith.constant 0 : i32
    %c0_i32_1 = arith.constant 0 : i32
    %c0_i32_2 = arith.constant 0 : i32
    return %c0_i32, %c0_i32_0, %c0_i32_1 : i32, i32, i32
  }
  func.func @transform_10(%arg0: i32) -> (i32, i32, i32) {
    %c0_i32 = arith.constant 0 : i32
    %c0_i32_0 = arith.constant 0 : i32
    %c0_i32_1 = arith.constant 0 : i32
    %c0_i32_2 = arith.constant 0 : i32
    return %c0_i32, %c0_i32_0, %c0_i32_1 : i32, i32, i32
  }
  func.func @transform_11(%arg0: i32) -> (i32, i32) {
    %c0_i32 = arith.constant 0 : i32
    %c0_i32_0 = arith.constant 0 : i32
    %c0_i32_1 = arith.constant 0 : i32
    return %c0_i32, %c0_i32_0 : i32, i32
  }
  func.func @transform_12(%arg0: i32) -> (i32, i32) {
    %c0_i32 = arith.constant 0 : i32
    %c0_i32_0 = arith.constant 0 : i32
    %c0_i32_1 = arith.constant 0 : i32
    return %c0_i32, %c0_i32_0 : i32, i32
  }
  func.func @transform_13(%arg0: i32) -> (i32, i32) {
    %c0_i32 = arith.constant 0 : i32
    %c0_i32_0 = arith.constant 0 : i32
    %c0_i32_1 = arith.constant 0 : i32
    return %c0_i32, %c0_i32_0 : i32, i32
  }
  func.func @transform_14(%arg0: i32) -> (i32, i32) {
    %c0_i32 = arith.constant 0 : i32
    %c0_i32_0 = arith.constant 0 : i32
    return %arg0, %c0_i32 : i32, i32
  }
}

module attributes {stable_mosaic.version = 11 : i64} {
  func.func @cross_attn_kernel(%arg0: i32, %arg1: memref<16x32xf32, #tpu.memory_space<vmem>>, %arg2: memref<16x32xbf16, #tpu.memory_space<vmem>>, %arg3: memref<16x32xbf16, #tpu.memory_space<vmem>>, %arg4: memref<2x8xf32, #tpu.memory_space<vmem>>, %arg5: memref<8x32x4xbf16, #tpu.memory_space<vmem>>, %arg6: memref<8x32x4xbf16, #tpu.memory_space<vmem>>, %arg7: memref<8x32x4xbf16, #tpu.memory_space<vmem>>, %arg8: memref<8x1x4xf32, #tpu.memory_space<vmem>>, %arg9: memref<8x1x4xf32, #tpu.memory_space<vmem>>, %arg10: memref<8x1x4xf32, #tpu.memory_space<vmem>>, %arg11: memref<8x4x32xbf16, #tpu.memory_space<vmem>>, %arg12: memref<1x32xf32, #tpu.memory_space<vmem>>, %arg13: memref<1x32xf32, #tpu.memory_space<vmem>>, %arg14: memref<1x32xf32, #tpu.memory_space<vmem>>, %arg15: memref<16x32xf32, #tpu.memory_space<vmem>>) attributes {dimension_semantics = [#tpu.dimension_semantics<parallel>], iteration_bounds = array<i64: 1>, scalar_prefetch = 0 : i64, scratch_operands = 0 : i64, tpu.core_type = #tpu.core_type<tc>, window_params = [{transform_indices = @transform_0, window_bounds = array<i64: 16, 32>}, {transform_indices = @transform_1, window_bounds = array<i64: 16, 32>}, {transform_indices = @transform_2, window_bounds = array<i64: 16, 32>}, {transform_indices = @transform_3, window_bounds = array<i64: 2, 8>}, {pipeline_mode = #tpu.pipeline_mode<synchronous>, transform_indices = @transform_4, window_bounds = array<i64: 8, 32, 4>}, {pipeline_mode = #tpu.pipeline_mode<synchronous>, transform_indices = @transform_5, window_bounds = array<i64: 8, 32, 4>}, {pipeline_mode = #tpu.pipeline_mode<synchronous>, transform_indices = @transform_6, window_bounds = array<i64: 8, 32, 4>}, {pipeline_mode = #tpu.pipeline_mode<synchronous>, transform_indices = @transform_7, window_bounds = array<i64: 8, 1, 4>}, {pipeline_mode = #tpu.pipeline_mode<synchronous>, transform_indices = @transform_8, window_bounds = array<i64: 8, 1, 4>}, {pipeline_mode = #tpu.pipeline_mode<synchronous>, transform_indices = @transform_9, window_bounds = array<i64: 8, 1, 4>}, {pipeline_mode = #tpu.pipeline_mode<synchronous>, transform_indices = @transform_10, window_bounds = array<i64: 8, 4, 32>}, {pipeline_mode = #tpu.pipeline_mode<synchronous>, transform_indices = @transform_11, window_bounds = array<i64: 1, 32>}, {pipeline_mode = #tpu.pipeline_mode<synchronous>, transform_indices = @transform_12, window_bounds = array<i64: 1, 32>}, {pipeline_mode = #tpu.pipeline_mode<synchronous>, transform_indices = @transform_13, window_bounds = array<i64: 1, 32>}, {transform_indices = @transform_14, window_bounds = array<i64: 16, 32>}]} {
    %c0 = arith.constant 0 : index
    %c0_0 = arith.constant 0 : index
    %0 = vector.load %arg1[%c0, %c0_0] : memref<16x32xf32, #tpu.memory_space<vmem>>, vector<16x32xf32>
    %1 = arith.truncf %0 : vector<16x32xf32> to vector<16x32xbf16>
    %c0_1 = arith.constant 0 : index
    %c0_2 = arith.constant 0 : index
    %2 = vector.load %arg2[%c0_1, %c0_2] : memref<16x32xbf16, #tpu.memory_space<vmem>>, vector<16x32xbf16>
    %c0_3 = arith.constant 0 : index
    %c0_4 = arith.constant 0 : index
    %3 = vector.load %arg3[%c0_3, %c0_4] : memref<16x32xbf16, #tpu.memory_space<vmem>>, vector<16x32xbf16>
    %c0_5 = arith.constant 0 : index
    %c0_6 = arith.constant 0 : index
    %4 = vector.load %arg4[%c0_5, %c0_6] : memref<2x8xf32, #tpu.memory_space<vmem>>, vector<2x8xf32>
    %5 = vector.shape_cast %4 : vector<2x8xf32> to vector<2x1x8xf32>
    %cst = arith.constant 0.000000e+00 : f32
    %6 = vector.broadcast %cst : f32 to vector<16x32xf32>
    %c0_7 = arith.constant 0 : index
    %c0_8 = arith.constant 0 : index
    %c0_9 = arith.constant 0 : index
    %7 = vector.load %arg5[%c0_7, %c0_8, %c0_9] : memref<8x32x4xbf16, #tpu.memory_space<vmem>>, vector<1x32x4xbf16>
    %8 = vector.shape_cast %7 : vector<1x32x4xbf16> to vector<32x4xbf16>
    %cst_10 = arith.constant dense<0.000000e+00> : vector<16x4xf32>
    %9 = tpu.matmul %1, %8, %cst_10 {dimension_numbers = #tpu.dot_dimension_numbers<[1], [0], [0], [1], [0, 0, 1, 1], [], []>} : vector<16x32xbf16>, vector<32x4xbf16>, vector<16x4xf32> -> vector<16x4xf32>
    %c0_11 = arith.constant 0 : index
    %c0_12 = arith.constant 0 : index
    %c0_13 = arith.constant 0 : index
    %10 = vector.load %arg8[%c0_11, %c0_12, %c0_13] : memref<8x1x4xf32, #tpu.memory_space<vmem>>, vector<1x1x4xf32>
    %11 = vector.shape_cast %10 : vector<1x1x4xf32> to vector<1x4xf32>
    %12 = vector.broadcast %11 : vector<1x4xf32> to vector<16x4xf32>
    %13 = arith.addf %9, %12 : vector<16x4xf32>
    %c0_14 = arith.constant 0 : index
    %c0_15 = arith.constant 0 : index
    %c0_16 = arith.constant 0 : index
    %14 = vector.load %arg6[%c0_14, %c0_15, %c0_16] : memref<8x32x4xbf16, #tpu.memory_space<vmem>>, vector<1x32x4xbf16>
    %15 = vector.shape_cast %14 : vector<1x32x4xbf16> to vector<32x4xbf16>
    %cst_17 = arith.constant dense<0.000000e+00> : vector<16x4xf32>
    %16 = tpu.matmul %2, %15, %cst_17 {dimension_numbers = #tpu.dot_dimension_numbers<[1], [0], [0], [1], [0, 0, 1, 1], [], []>} : vector<16x32xbf16>, vector<32x4xbf16>, vector<16x4xf32> -> vector<16x4xf32>
    %c0_18 = arith.constant 0 : index
    %c0_19 = arith.constant 0 : index
    %c0_20 = arith.constant 0 : index
    %17 = vector.load %arg9[%c0_18, %c0_19, %c0_20] : memref<8x1x4xf32, #tpu.memory_space<vmem>>, vector<1x1x4xf32>
    %18 = vector.shape_cast %17 : vector<1x1x4xf32> to vector<1x4xf32>
    %19 = vector.broadcast %18 : vector<1x4xf32> to vector<16x4xf32>
    %20 = arith.addf %16, %19 : vector<16x4xf32>
    %c0_21 = arith.constant 0 : index
    %c0_22 = arith.constant 0 : index
    %c0_23 = arith.constant 0 : index
    %21 = vector.load %arg7[%c0_21, %c0_22, %c0_23] : memref<8x32x4xbf16, #tpu.memory_space<vmem>>, vector<1x32x4xbf16>
    %22 = vector.shape_cast %21 : vector<1x32x4xbf16> to vector<32x4xbf16>
    %cst_24 = arith.constant dense<0.000000e+00> : vector<16x4xf32>
    %23 = tpu.matmul %3, %22, %cst_24 {dimension_numbers = #tpu.dot_dimension_numbers<[1], [0], [0], [1], [0, 0, 1, 1], [], []>} : vector<16x32xbf16>, vector<32x4xbf16>, vector<16x4xf32> -> vector<16x4xf32>
    %c0_25 = arith.constant 0 : index
    %c0_26 = arith.constant 0 : index
    %c0_27 = arith.constant 0 : index
    %24 = vector.load %arg10[%c0_25, %c0_26, %c0_27] : memref<8x1x4xf32, #tpu.memory_space<vmem>>, vector<1x1x4xf32>
    %25 = vector.shape_cast %24 : vector<1x1x4xf32> to vector<1x4xf32>
    %26 = vector.broadcast %25 : vector<1x4xf32> to vector<16x4xf32>
    %27 = arith.addf %23, %26 : vector<16x4xf32>
    %28 = vector.shape_cast %13 : vector<16x4xf32> to vector<2x8x4xf32>
    %29 = arith.truncf %28 : vector<2x8x4xf32> to vector<2x8x4xbf16>
    %30 = vector.shape_cast %20 : vector<16x4xf32> to vector<2x8x4xf32>
    %31 = arith.truncf %30 : vector<2x8x4xf32> to vector<2x8x4xbf16>
    %32 = vector.shape_cast %27 : vector<16x4xf32> to vector<2x8x4xf32>
    %33 = arith.truncf %32 : vector<2x8x4xf32> to vector<2x8x4xbf16>
    "tpu.trace_start"() <{level = 10 : i32, message = "bqd,bkd->bqk"}> : () -> ()
    %cst_28 = arith.constant dense<0.000000e+00> : vector<2x8x8xf32>
    %34 = tpu.matmul %29, %31, %cst_28 {dimension_numbers = #tpu.dot_dimension_numbers<[2], [2], [1], [1], [0, 0, 0, 1, 1, 1], [0], [0]>} : vector<2x8x4xbf16>, vector<2x8x4xbf16>, vector<2x8x8xf32> -> vector<2x8x8xf32>
    "tpu.trace_stop"() : () -> ()
    %35 = vector.broadcast %5 : vector<2x1x8xf32> to vector<2x8x8xf32>
    %36 = arith.addf %34, %35 : vector<2x8x8xf32>
    %cst_29 = arith.constant dense<0xFF800000> : vector<2x8xf32>
    %37 = vector.multi_reduction <maximumf>, %36, %cst_29 [2] : vector<2x8x8xf32> to vector<2x8xf32>
    %38 = vector.shape_cast %37 : vector<2x8xf32> to vector<2x8x1xf32>
    %39 = vector.broadcast %38 : vector<2x8x1xf32> to vector<2x8x8xf32>
    %40 = arith.subf %36, %39 : vector<2x8x8xf32>
    %41 = math.exp %40 : vector<2x8x8xf32>
    %cst_30 = arith.constant dense<0.000000e+00> : vector<2x8xf32>
    %42 = vector.multi_reduction <add>, %41, %cst_30 [2] : vector<2x8x8xf32> to vector<2x8xf32>
    %43 = vector.shape_cast %42 : vector<2x8xf32> to vector<2x8x1xf32>
    %44 = tpu.reciprocal %43 {approx = true} : vector<2x8x1xf32> -> vector<2x8x1xf32>
    %45 = vector.broadcast %44 : vector<2x8x1xf32> to vector<2x8x8xf32>
    %46 = arith.mulf %41, %45 : vector<2x8x8xf32>
    %47 = arith.truncf %46 : vector<2x8x8xf32> to vector<2x8x8xbf16>
    "tpu.trace_start"() <{level = 10 : i32, message = "bqk,bkd->bqd"}> : () -> ()
    %cst_31 = arith.constant dense<0.000000e+00> : vector<2x8x4xf32>
    %48 = tpu.matmul %47, %33, %cst_31 {dimension_numbers = #tpu.dot_dimension_numbers<[2], [1], [1], [2], [0, 0, 0, 1, 1, 2], [0], [0]>} : vector<2x8x8xbf16>, vector<2x8x4xbf16>, vector<2x8x4xf32> -> vector<2x8x4xf32>
    "tpu.trace_stop"() : () -> ()
    %49 = vector.shape_cast %48 : vector<2x8x4xf32> to vector<16x4xf32>
    %50 = arith.truncf %49 : vector<16x4xf32> to vector<16x4xbf16>
    %c0_32 = arith.constant 0 : index
    %c0_33 = arith.constant 0 : index
    %c0_34 = arith.constant 0 : index
    %51 = vector.load %arg11[%c0_32, %c0_33, %c0_34] : memref<8x4x32xbf16, #tpu.memory_space<vmem>>, vector<1x4x32xbf16>
    %52 = vector.shape_cast %51 : vector<1x4x32xbf16> to vector<4x32xbf16>
    %cst_35 = arith.constant dense<0.000000e+00> : vector<16x32xf32>
    %53 = tpu.matmul %50, %52, %cst_35 {dimension_numbers = #tpu.dot_dimension_numbers<[1], [0], [0], [1], [0, 0, 1, 1], [], []>} : vector<16x4xbf16>, vector<4x32xbf16>, vector<16x32xf32> -> vector<16x32xf32>
    %54 = arith.addf %6, %53 : vector<16x32xf32>
    %c1 = arith.constant 1 : index
    %c0_36 = arith.constant 0 : index
    %c0_37 = arith.constant 0 : index
    %55 = vector.load %arg5[%c1, %c0_36, %c0_37] : memref<8x32x4xbf16, #tpu.memory_space<vmem>>, vector<1x32x4xbf16>
    %56 = vector.shape_cast %55 : vector<1x32x4xbf16> to vector<32x4xbf16>
    %cst_38 = arith.constant dense<0.000000e+00> : vector<16x4xf32>
    %57 = tpu.matmul %1, %56, %cst_38 {dimension_numbers = #tpu.dot_dimension_numbers<[1], [0], [0], [1], [0, 0, 1, 1], [], []>} : vector<16x32xbf16>, vector<32x4xbf16>, vector<16x4xf32> -> vector<16x4xf32>
    %c1_39 = arith.constant 1 : index
    %c0_40 = arith.constant 0 : index
    %c0_41 = arith.constant 0 : index
    %58 = vector.load %arg8[%c1_39, %c0_40, %c0_41] : memref<8x1x4xf32, #tpu.memory_space<vmem>>, vector<1x1x4xf32>
    %59 = vector.shape_cast %58 : vector<1x1x4xf32> to vector<1x4xf32>
    %60 = vector.broadcast %59 : vector<1x4xf32> to vector<16x4xf32>
    %61 = arith.addf %57, %60 : vector<16x4xf32>
    %c1_42 = arith.constant 1 : index
    %c0_43 = arith.constant 0 : index
    %c0_44 = arith.constant 0 : index
    %62 = vector.load %arg6[%c1_42, %c0_43, %c0_44] : memref<8x32x4xbf16, #tpu.memory_space<vmem>>, vector<1x32x4xbf16>
    %63 = vector.shape_cast %62 : vector<1x32x4xbf16> to vector<32x4xbf16>
    %cst_45 = arith.constant dense<0.000000e+00> : vector<16x4xf32>
    %64 = tpu.matmul %2, %63, %cst_45 {dimension_numbers = #tpu.dot_dimension_numbers<[1], [0], [0], [1], [0, 0, 1, 1], [], []>} : vector<16x32xbf16>, vector<32x4xbf16>, vector<16x4xf32> -> vector<16x4xf32>
    %c1_46 = arith.constant 1 : index
    %c0_47 = arith.constant 0 : index
    %c0_48 = arith.constant 0 : index
    %65 = vector.load %arg9[%c1_46, %c0_47, %c0_48] : memref<8x1x4xf32, #tpu.memory_space<vmem>>, vector<1x1x4xf32>
    %66 = vector.shape_cast %65 : vector<1x1x4xf32> to vector<1x4xf32>
    %67 = vector.broadcast %66 : vector<1x4xf32> to vector<16x4xf32>
    %68 = arith.addf %64, %67 : vector<16x4xf32>
    %c1_49 = arith.constant 1 : index
    %c0_50 = arith.constant 0 : index
    %c0_51 = arith.constant 0 : index
    %69 = vector.load %arg7[%c1_49, %c0_50, %c0_51] : memref<8x32x4xbf16, #tpu.memory_space<vmem>>, vector<1x32x4xbf16>
    %70 = vector.shape_cast %69 : vector<1x32x4xbf16> to vector<32x4xbf16>
    %cst_52 = arith.constant dense<0.000000e+00> : vector<16x4xf32>
    %71 = tpu.matmul %3, %70, %cst_52 {dimension_numbers = #tpu.dot_dimension_numbers<[1], [0], [0], [1], [0, 0, 1, 1], [], []>} : vector<16x32xbf16>, vector<32x4xbf16>, vector<16x4xf32> -> vector<16x4xf32>
    %c1_53 = arith.constant 1 : index
    %c0_54 = arith.constant 0 : index
    %c0_55 = arith.constant 0 : index
    %72 = vector.load %arg10[%c1_53, %c0_54, %c0_55] : memref<8x1x4xf32, #tpu.memory_space<vmem>>, vector<1x1x4xf32>
    %73 = vector.shape_cast %72 : vector<1x1x4xf32> to vector<1x4xf32>
    %74 = vector.broadcast %73 : vector<1x4xf32> to vector<16x4xf32>
    %75 = arith.addf %71, %74 : vector<16x4xf32>
    %76 = vector.shape_cast %61 : vector<16x4xf32> to vector<2x8x4xf32>
    %77 = arith.truncf %76 : vector<2x8x4xf32> to vector<2x8x4xbf16>
    %78 = vector.shape_cast %68 : vector<16x4xf32> to vector<2x8x4xf32>
    %79 = arith.truncf %78 : vector<2x8x4xf32> to vector<2x8x4xbf16>
    %80 = vector.shape_cast %75 : vector<16x4xf32> to vector<2x8x4xf32>
    %81 = arith.truncf %80 : vector<2x8x4xf32> to vector<2x8x4xbf16>
    "tpu.trace_start"() <{level = 10 : i32, message = "bqd,bkd->bqk"}> : () -> ()
    %cst_56 = arith.constant dense<0.000000e+00> : vector<2x8x8xf32>
    %82 = tpu.matmul %77, %79, %cst_56 {dimension_numbers = #tpu.dot_dimension_numbers<[2], [2], [1], [1], [0, 0, 0, 1, 1, 1], [0], [0]>} : vector<2x8x4xbf16>, vector<2x8x4xbf16>, vector<2x8x8xf32> -> vector<2x8x8xf32>
    "tpu.trace_stop"() : () -> ()
    %83 = vector.broadcast %5 : vector<2x1x8xf32> to vector<2x8x8xf32>
    %84 = arith.addf %82, %83 : vector<2x8x8xf32>
    %cst_57 = arith.constant dense<0xFF800000> : vector<2x8xf32>
    %85 = vector.multi_reduction <maximumf>, %84, %cst_57 [2] : vector<2x8x8xf32> to vector<2x8xf32>
    %86 = vector.shape_cast %85 : vector<2x8xf32> to vector<2x8x1xf32>
    %87 = vector.broadcast %86 : vector<2x8x1xf32> to vector<2x8x8xf32>
    %88 = arith.subf %84, %87 : vector<2x8x8xf32>
    %89 = math.exp %88 : vector<2x8x8xf32>
    %cst_58 = arith.constant dense<0.000000e+00> : vector<2x8xf32>
    %90 = vector.multi_reduction <add>, %89, %cst_58 [2] : vector<2x8x8xf32> to vector<2x8xf32>
    %91 = vector.shape_cast %90 : vector<2x8xf32> to vector<2x8x1xf32>
    %92 = tpu.reciprocal %91 {approx = true} : vector<2x8x1xf32> -> vector<2x8x1xf32>
    %93 = vector.broadcast %92 : vector<2x8x1xf32> to vector<2x8x8xf32>
    %94 = arith.mulf %89, %93 : vector<2x8x8xf32>
    %95 = arith.truncf %94 : vector<2x8x8xf32> to vector<2x8x8xbf16>
    "tpu.trace_start"() <{level = 10 : i32, message = "bqk,bkd->bqd"}> : () -> ()
    %cst_59 = arith.constant dense<0.000000e+00> : vector<2x8x4xf32>
    %96 = tpu.matmul %95, %81, %cst_59 {dimension_numbers = #tpu.dot_dimension_numbers<[2], [1], [1], [2], [0, 0, 0, 1, 1, 2], [0], [0]>} : vector<2x8x8xbf16>, vector<2x8x4xbf16>, vector<2x8x4xf32> -> vector<2x8x4xf32>
    "tpu.trace_stop"() : () -> ()
    %97 = vector.shape_cast %96 : vector<2x8x4xf32> to vector<16x4xf32>
    %98 = arith.truncf %97 : vector<16x4xf32> to vector<16x4xbf16>
    %c1_60 = arith.constant 1 : index
    %c0_61 = arith.constant 0 : index
    %c0_62 = arith.constant 0 : index
    %99 = vector.load %arg11[%c1_60, %c0_61, %c0_62] : memref<8x4x32xbf16, #tpu.memory_space<vmem>>, vector<1x4x32xbf16>
    %100 = vector.shape_cast %99 : vector<1x4x32xbf16> to vector<4x32xbf16>
    %cst_63 = arith.constant dense<0.000000e+00> : vector<16x32xf32>
    %101 = tpu.matmul %98, %100, %cst_63 {dimension_numbers = #tpu.dot_dimension_numbers<[1], [0], [0], [1], [0, 0, 1, 1], [], []>} : vector<16x4xbf16>, vector<4x32xbf16>, vector<16x32xf32> -> vector<16x32xf32>
    %102 = arith.addf %54, %101 : vector<16x32xf32>
    %c2 = arith.constant 2 : index
    %c0_64 = arith.constant 0 : index
    %c0_65 = arith.constant 0 : index
    %103 = vector.load %arg5[%c2, %c0_64, %c0_65] : memref<8x32x4xbf16, #tpu.memory_space<vmem>>, vector<1x32x4xbf16>
    %104 = vector.shape_cast %103 : vector<1x32x4xbf16> to vector<32x4xbf16>
    %cst_66 = arith.constant dense<0.000000e+00> : vector<16x4xf32>
    %105 = tpu.matmul %1, %104, %cst_66 {dimension_numbers = #tpu.dot_dimension_numbers<[1], [0], [0], [1], [0, 0, 1, 1], [], []>} : vector<16x32xbf16>, vector<32x4xbf16>, vector<16x4xf32> -> vector<16x4xf32>
    %c2_67 = arith.constant 2 : index
    %c0_68 = arith.constant 0 : index
    %c0_69 = arith.constant 0 : index
    %106 = vector.load %arg8[%c2_67, %c0_68, %c0_69] : memref<8x1x4xf32, #tpu.memory_space<vmem>>, vector<1x1x4xf32>
    %107 = vector.shape_cast %106 : vector<1x1x4xf32> to vector<1x4xf32>
    %108 = vector.broadcast %107 : vector<1x4xf32> to vector<16x4xf32>
    %109 = arith.addf %105, %108 : vector<16x4xf32>
    %c2_70 = arith.constant 2 : index
    %c0_71 = arith.constant 0 : index
    %c0_72 = arith.constant 0 : index
    %110 = vector.load %arg6[%c2_70, %c0_71, %c0_72] : memref<8x32x4xbf16, #tpu.memory_space<vmem>>, vector<1x32x4xbf16>
    %111 = vector.shape_cast %110 : vector<1x32x4xbf16> to vector<32x4xbf16>
    %cst_73 = arith.constant dense<0.000000e+00> : vector<16x4xf32>
    %112 = tpu.matmul %2, %111, %cst_73 {dimension_numbers = #tpu.dot_dimension_numbers<[1], [0], [0], [1], [0, 0, 1, 1], [], []>} : vector<16x32xbf16>, vector<32x4xbf16>, vector<16x4xf32> -> vector<16x4xf32>
    %c2_74 = arith.constant 2 : index
    %c0_75 = arith.constant 0 : index
    %c0_76 = arith.constant 0 : index
    %113 = vector.load %arg9[%c2_74, %c0_75, %c0_76] : memref<8x1x4xf32, #tpu.memory_space<vmem>>, vector<1x1x4xf32>
    %114 = vector.shape_cast %113 : vector<1x1x4xf32> to vector<1x4xf32>
    %115 = vector.broadcast %114 : vector<1x4xf32> to vector<16x4xf32>
    %116 = arith.addf %112, %115 : vector<16x4xf32>
    %c2_77 = arith.constant 2 : index
    %c0_78 = arith.constant 0 : index
    %c0_79 = arith.constant 0 : index
    %117 = vector.load %arg7[%c2_77, %c0_78, %c0_79] : memref<8x32x4xbf16, #tpu.memory_space<vmem>>, vector<1x32x4xbf16>
    %118 = vector.shape_cast %117 : vector<1x32x4xbf16> to vector<32x4xbf16>
    %cst_80 = arith.constant dense<0.000000e+00> : vector<16x4xf32>
    %119 = tpu.matmul %3, %118, %cst_80 {dimension_numbers = #tpu.dot_dimension_numbers<[1], [0], [0], [1], [0, 0, 1, 1], [], []>} : vector<16x32xbf16>, vector<32x4xbf16>, vector<16x4xf32> -> vector<16x4xf32>
    %c2_81 = arith.constant 2 : index
    %c0_82 = arith.constant 0 : index
    %c0_83 = arith.constant 0 : index
    %120 = vector.load %arg10[%c2_81, %c0_82, %c0_83] : memref<8x1x4xf32, #tpu.memory_space<vmem>>, vector<1x1x4xf32>
    %121 = vector.shape_cast %120 : vector<1x1x4xf32> to vector<1x4xf32>
    %122 = vector.broadcast %121 : vector<1x4xf32> to vector<16x4xf32>
    %123 = arith.addf %119, %122 : vector<16x4xf32>
    %124 = vector.shape_cast %109 : vector<16x4xf32> to vector<2x8x4xf32>
    %125 = arith.truncf %124 : vector<2x8x4xf32> to vector<2x8x4xbf16>
    %126 = vector.shape_cast %116 : vector<16x4xf32> to vector<2x8x4xf32>
    %127 = arith.truncf %126 : vector<2x8x4xf32> to vector<2x8x4xbf16>
    %128 = vector.shape_cast %123 : vector<16x4xf32> to vector<2x8x4xf32>
    %129 = arith.truncf %128 : vector<2x8x4xf32> to vector<2x8x4xbf16>
    "tpu.trace_start"() <{level = 10 : i32, message = "bqd,bkd->bqk"}> : () -> ()
    %cst_84 = arith.constant dense<0.000000e+00> : vector<2x8x8xf32>
    %130 = tpu.matmul %125, %127, %cst_84 {dimension_numbers = #tpu.dot_dimension_numbers<[2], [2], [1], [1], [0, 0, 0, 1, 1, 1], [0], [0]>} : vector<2x8x4xbf16>, vector<2x8x4xbf16>, vector<2x8x8xf32> -> vector<2x8x8xf32>
    "tpu.trace_stop"() : () -> ()
    %131 = vector.broadcast %5 : vector<2x1x8xf32> to vector<2x8x8xf32>
    %132 = arith.addf %130, %131 : vector<2x8x8xf32>
    %cst_85 = arith.constant dense<0xFF800000> : vector<2x8xf32>
    %133 = vector.multi_reduction <maximumf>, %132, %cst_85 [2] : vector<2x8x8xf32> to vector<2x8xf32>
    %134 = vector.shape_cast %133 : vector<2x8xf32> to vector<2x8x1xf32>
    %135 = vector.broadcast %134 : vector<2x8x1xf32> to vector<2x8x8xf32>
    %136 = arith.subf %132, %135 : vector<2x8x8xf32>
    %137 = math.exp %136 : vector<2x8x8xf32>
    %cst_86 = arith.constant dense<0.000000e+00> : vector<2x8xf32>
    %138 = vector.multi_reduction <add>, %137, %cst_86 [2] : vector<2x8x8xf32> to vector<2x8xf32>
    %139 = vector.shape_cast %138 : vector<2x8xf32> to vector<2x8x1xf32>
    %140 = tpu.reciprocal %139 {approx = true} : vector<2x8x1xf32> -> vector<2x8x1xf32>
    %141 = vector.broadcast %140 : vector<2x8x1xf32> to vector<2x8x8xf32>
    %142 = arith.mulf %137, %141 : vector<2x8x8xf32>
    %143 = arith.truncf %142 : vector<2x8x8xf32> to vector<2x8x8xbf16>
    "tpu.trace_start"() <{level = 10 : i32, message = "bqk,bkd->bqd"}> : () -> ()
    %cst_87 = arith.constant dense<0.000000e+00> : vector<2x8x4xf32>
    %144 = tpu.matmul %143, %129, %cst_87 {dimension_numbers = #tpu.dot_dimension_numbers<[2], [1], [1], [2], [0, 0, 0, 1, 1, 2], [0], [0]>} : vector<2x8x8xbf16>, vector<2x8x4xbf16>, vector<2x8x4xf32> -> vector<2x8x4xf32>
    "tpu.trace_stop"() : () -> ()
    %145 = vector.shape_cast %144 : vector<2x8x4xf32> to vector<16x4xf32>
    %146 = arith.truncf %145 : vector<16x4xf32> to vector<16x4xbf16>
    %c2_88 = arith.constant 2 : index
    %c0_89 = arith.constant 0 : index
    %c0_90 = arith.constant 0 : index
    %147 = vector.load %arg11[%c2_88, %c0_89, %c0_90] : memref<8x4x32xbf16, #tpu.memory_space<vmem>>, vector<1x4x32xbf16>
    %148 = vector.shape_cast %147 : vector<1x4x32xbf16> to vector<4x32xbf16>
    %cst_91 = arith.constant dense<0.000000e+00> : vector<16x32xf32>
    %149 = tpu.matmul %146, %148, %cst_91 {dimension_numbers = #tpu.dot_dimension_numbers<[1], [0], [0], [1], [0, 0, 1, 1], [], []>} : vector<16x4xbf16>, vector<4x32xbf16>, vector<16x32xf32> -> vector<16x32xf32>
    %150 = arith.addf %102, %149 : vector<16x32xf32>
    %c3 = arith.constant 3 : index
    %c0_92 = arith.constant 0 : index
    %c0_93 = arith.constant 0 : index
    %151 = vector.load %arg5[%c3, %c0_92, %c0_93] : memref<8x32x4xbf16, #tpu.memory_space<vmem>>, vector<1x32x4xbf16>
    %152 = vector.shape_cast %151 : vector<1x32x4xbf16> to vector<32x4xbf16>
    %cst_94 = arith.constant dense<0.000000e+00> : vector<16x4xf32>
    %153 = tpu.matmul %1, %152, %cst_94 {dimension_numbers = #tpu.dot_dimension_numbers<[1], [0], [0], [1], [0, 0, 1, 1], [], []>} : vector<16x32xbf16>, vector<32x4xbf16>, vector<16x4xf32> -> vector<16x4xf32>
    %c3_95 = arith.constant 3 : index
    %c0_96 = arith.constant 0 : index
    %c0_97 = arith.constant 0 : index
    %154 = vector.load %arg8[%c3_95, %c0_96, %c0_97] : memref<8x1x4xf32, #tpu.memory_space<vmem>>, vector<1x1x4xf32>
    %155 = vector.shape_cast %154 : vector<1x1x4xf32> to vector<1x4xf32>
    %156 = vector.broadcast %155 : vector<1x4xf32> to vector<16x4xf32>
    %157 = arith.addf %153, %156 : vector<16x4xf32>
    %c3_98 = arith.constant 3 : index
    %c0_99 = arith.constant 0 : index
    %c0_100 = arith.constant 0 : index
    %158 = vector.load %arg6[%c3_98, %c0_99, %c0_100] : memref<8x32x4xbf16, #tpu.memory_space<vmem>>, vector<1x32x4xbf16>
    %159 = vector.shape_cast %158 : vector<1x32x4xbf16> to vector<32x4xbf16>
    %cst_101 = arith.constant dense<0.000000e+00> : vector<16x4xf32>
    %160 = tpu.matmul %2, %159, %cst_101 {dimension_numbers = #tpu.dot_dimension_numbers<[1], [0], [0], [1], [0, 0, 1, 1], [], []>} : vector<16x32xbf16>, vector<32x4xbf16>, vector<16x4xf32> -> vector<16x4xf32>
    %c3_102 = arith.constant 3 : index
    %c0_103 = arith.constant 0 : index
    %c0_104 = arith.constant 0 : index
    %161 = vector.load %arg9[%c3_102, %c0_103, %c0_104] : memref<8x1x4xf32, #tpu.memory_space<vmem>>, vector<1x1x4xf32>
    %162 = vector.shape_cast %161 : vector<1x1x4xf32> to vector<1x4xf32>
    %163 = vector.broadcast %162 : vector<1x4xf32> to vector<16x4xf32>
    %164 = arith.addf %160, %163 : vector<16x4xf32>
    %c3_105 = arith.constant 3 : index
    %c0_106 = arith.constant 0 : index
    %c0_107 = arith.constant 0 : index
    %165 = vector.load %arg7[%c3_105, %c0_106, %c0_107] : memref<8x32x4xbf16, #tpu.memory_space<vmem>>, vector<1x32x4xbf16>
    %166 = vector.shape_cast %165 : vector<1x32x4xbf16> to vector<32x4xbf16>
    %cst_108 = arith.constant dense<0.000000e+00> : vector<16x4xf32>
    %167 = tpu.matmul %3, %166, %cst_108 {dimension_numbers = #tpu.dot_dimension_numbers<[1], [0], [0], [1], [0, 0, 1, 1], [], []>} : vector<16x32xbf16>, vector<32x4xbf16>, vector<16x4xf32> -> vector<16x4xf32>
    %c3_109 = arith.constant 3 : index
    %c0_110 = arith.constant 0 : index
    %c0_111 = arith.constant 0 : index
    %168 = vector.load %arg10[%c3_109, %c0_110, %c0_111] : memref<8x1x4xf32, #tpu.memory_space<vmem>>, vector<1x1x4xf32>
    %169 = vector.shape_cast %168 : vector<1x1x4xf32> to vector<1x4xf32>
    %170 = vector.broadcast %169 : vector<1x4xf32> to vector<16x4xf32>
    %171 = arith.addf %167, %170 : vector<16x4xf32>
    %172 = vector.shape_cast %157 : vector<16x4xf32> to vector<2x8x4xf32>
    %173 = arith.truncf %172 : vector<2x8x4xf32> to vector<2x8x4xbf16>
    %174 = vector.shape_cast %164 : vector<16x4xf32> to vector<2x8x4xf32>
    %175 = arith.truncf %174 : vector<2x8x4xf32> to vector<2x8x4xbf16>
    %176 = vector.shape_cast %171 : vector<16x4xf32> to vector<2x8x4xf32>
    %177 = arith.truncf %176 : vector<2x8x4xf32> to vector<2x8x4xbf16>
    "tpu.trace_start"() <{level = 10 : i32, message = "bqd,bkd->bqk"}> : () -> ()
    %cst_112 = arith.constant dense<0.000000e+00> : vector<2x8x8xf32>
    %178 = tpu.matmul %173, %175, %cst_112 {dimension_numbers = #tpu.dot_dimension_numbers<[2], [2], [1], [1], [0, 0, 0, 1, 1, 1], [0], [0]>} : vector<2x8x4xbf16>, vector<2x8x4xbf16>, vector<2x8x8xf32> -> vector<2x8x8xf32>
    "tpu.trace_stop"() : () -> ()
    %179 = vector.broadcast %5 : vector<2x1x8xf32> to vector<2x8x8xf32>
    %180 = arith.addf %178, %179 : vector<2x8x8xf32>
    %cst_113 = arith.constant dense<0xFF800000> : vector<2x8xf32>
    %181 = vector.multi_reduction <maximumf>, %180, %cst_113 [2] : vector<2x8x8xf32> to vector<2x8xf32>
    %182 = vector.shape_cast %181 : vector<2x8xf32> to vector<2x8x1xf32>
    %183 = vector.broadcast %182 : vector<2x8x1xf32> to vector<2x8x8xf32>
    %184 = arith.subf %180, %183 : vector<2x8x8xf32>
    %185 = math.exp %184 : vector<2x8x8xf32>
    %cst_114 = arith.constant dense<0.000000e+00> : vector<2x8xf32>
    %186 = vector.multi_reduction <add>, %185, %cst_114 [2] : vector<2x8x8xf32> to vector<2x8xf32>
    %187 = vector.shape_cast %186 : vector<2x8xf32> to vector<2x8x1xf32>
    %188 = tpu.reciprocal %187 {approx = true} : vector<2x8x1xf32> -> vector<2x8x1xf32>
    %189 = vector.broadcast %188 : vector<2x8x1xf32> to vector<2x8x8xf32>
    %190 = arith.mulf %185, %189 : vector<2x8x8xf32>
    %191 = arith.truncf %190 : vector<2x8x8xf32> to vector<2x8x8xbf16>
    "tpu.trace_start"() <{level = 10 : i32, message = "bqk,bkd->bqd"}> : () -> ()
    %cst_115 = arith.constant dense<0.000000e+00> : vector<2x8x4xf32>
    %192 = tpu.matmul %191, %177, %cst_115 {dimension_numbers = #tpu.dot_dimension_numbers<[2], [1], [1], [2], [0, 0, 0, 1, 1, 2], [0], [0]>} : vector<2x8x8xbf16>, vector<2x8x4xbf16>, vector<2x8x4xf32> -> vector<2x8x4xf32>
    "tpu.trace_stop"() : () -> ()
    %193 = vector.shape_cast %192 : vector<2x8x4xf32> to vector<16x4xf32>
    %194 = arith.truncf %193 : vector<16x4xf32> to vector<16x4xbf16>
    %c3_116 = arith.constant 3 : index
    %c0_117 = arith.constant 0 : index
    %c0_118 = arith.constant 0 : index
    %195 = vector.load %arg11[%c3_116, %c0_117, %c0_118] : memref<8x4x32xbf16, #tpu.memory_space<vmem>>, vector<1x4x32xbf16>
    %196 = vector.shape_cast %195 : vector<1x4x32xbf16> to vector<4x32xbf16>
    %cst_119 = arith.constant dense<0.000000e+00> : vector<16x32xf32>
    %197 = tpu.matmul %194, %196, %cst_119 {dimension_numbers = #tpu.dot_dimension_numbers<[1], [0], [0], [1], [0, 0, 1, 1], [], []>} : vector<16x4xbf16>, vector<4x32xbf16>, vector<16x32xf32> -> vector<16x32xf32>
    %198 = arith.addf %150, %197 : vector<16x32xf32>
    %c4 = arith.constant 4 : index
    %c0_120 = arith.constant 0 : index
    %c0_121 = arith.constant 0 : index
    %199 = vector.load %arg5[%c4, %c0_120, %c0_121] : memref<8x32x4xbf16, #tpu.memory_space<vmem>>, vector<1x32x4xbf16>
    %200 = vector.shape_cast %199 : vector<1x32x4xbf16> to vector<32x4xbf16>
    %cst_122 = arith.constant dense<0.000000e+00> : vector<16x4xf32>
    %201 = tpu.matmul %1, %200, %cst_122 {dimension_numbers = #tpu.dot_dimension_numbers<[1], [0], [0], [1], [0, 0, 1, 1], [], []>} : vector<16x32xbf16>, vector<32x4xbf16>, vector<16x4xf32> -> vector<16x4xf32>
    %c4_123 = arith.constant 4 : index
    %c0_124 = arith.constant 0 : index
    %c0_125 = arith.constant 0 : index
    %202 = vector.load %arg8[%c4_123, %c0_124, %c0_125] : memref<8x1x4xf32, #tpu.memory_space<vmem>>, vector<1x1x4xf32>
    %203 = vector.shape_cast %202 : vector<1x1x4xf32> to vector<1x4xf32>
    %204 = vector.broadcast %203 : vector<1x4xf32> to vector<16x4xf32>
    %205 = arith.addf %201, %204 : vector<16x4xf32>
    %c4_126 = arith.constant 4 : index
    %c0_127 = arith.constant 0 : index
    %c0_128 = arith.constant 0 : index
    %206 = vector.load %arg6[%c4_126, %c0_127, %c0_128] : memref<8x32x4xbf16, #tpu.memory_space<vmem>>, vector<1x32x4xbf16>
    %207 = vector.shape_cast %206 : vector<1x32x4xbf16> to vector<32x4xbf16>
    %cst_129 = arith.constant dense<0.000000e+00> : vector<16x4xf32>
    %208 = tpu.matmul %2, %207, %cst_129 {dimension_numbers = #tpu.dot_dimension_numbers<[1], [0], [0], [1], [0, 0, 1, 1], [], []>} : vector<16x32xbf16>, vector<32x4xbf16>, vector<16x4xf32> -> vector<16x4xf32>
    %c4_130 = arith.constant 4 : index
    %c0_131 = arith.constant 0 : index
    %c0_132 = arith.constant 0 : index
    %209 = vector.load %arg9[%c4_130, %c0_131, %c0_132] : memref<8x1x4xf32, #tpu.memory_space<vmem>>, vector<1x1x4xf32>
    %210 = vector.shape_cast %209 : vector<1x1x4xf32> to vector<1x4xf32>
    %211 = vector.broadcast %210 : vector<1x4xf32> to vector<16x4xf32>
    %212 = arith.addf %208, %211 : vector<16x4xf32>
    %c4_133 = arith.constant 4 : index
    %c0_134 = arith.constant 0 : index
    %c0_135 = arith.constant 0 : index
    %213 = vector.load %arg7[%c4_133, %c0_134, %c0_135] : memref<8x32x4xbf16, #tpu.memory_space<vmem>>, vector<1x32x4xbf16>
    %214 = vector.shape_cast %213 : vector<1x32x4xbf16> to vector<32x4xbf16>
    %cst_136 = arith.constant dense<0.000000e+00> : vector<16x4xf32>
    %215 = tpu.matmul %3, %214, %cst_136 {dimension_numbers = #tpu.dot_dimension_numbers<[1], [0], [0], [1], [0, 0, 1, 1], [], []>} : vector<16x32xbf16>, vector<32x4xbf16>, vector<16x4xf32> -> vector<16x4xf32>
    %c4_137 = arith.constant 4 : index
    %c0_138 = arith.constant 0 : index
    %c0_139 = arith.constant 0 : index
    %216 = vector.load %arg10[%c4_137, %c0_138, %c0_139] : memref<8x1x4xf32, #tpu.memory_space<vmem>>, vector<1x1x4xf32>
    %217 = vector.shape_cast %216 : vector<1x1x4xf32> to vector<1x4xf32>
    %218 = vector.broadcast %217 : vector<1x4xf32> to vector<16x4xf32>
    %219 = arith.addf %215, %218 : vector<16x4xf32>
    %220 = vector.shape_cast %205 : vector<16x4xf32> to vector<2x8x4xf32>
    %221 = arith.truncf %220 : vector<2x8x4xf32> to vector<2x8x4xbf16>
    %222 = vector.shape_cast %212 : vector<16x4xf32> to vector<2x8x4xf32>
    %223 = arith.truncf %222 : vector<2x8x4xf32> to vector<2x8x4xbf16>
    %224 = vector.shape_cast %219 : vector<16x4xf32> to vector<2x8x4xf32>
    %225 = arith.truncf %224 : vector<2x8x4xf32> to vector<2x8x4xbf16>
    "tpu.trace_start"() <{level = 10 : i32, message = "bqd,bkd->bqk"}> : () -> ()
    %cst_140 = arith.constant dense<0.000000e+00> : vector<2x8x8xf32>
    %226 = tpu.matmul %221, %223, %cst_140 {dimension_numbers = #tpu.dot_dimension_numbers<[2], [2], [1], [1], [0, 0, 0, 1, 1, 1], [0], [0]>} : vector<2x8x4xbf16>, vector<2x8x4xbf16>, vector<2x8x8xf32> -> vector<2x8x8xf32>
    "tpu.trace_stop"() : () -> ()
    %227 = vector.broadcast %5 : vector<2x1x8xf32> to vector<2x8x8xf32>
    %228 = arith.addf %226, %227 : vector<2x8x8xf32>
    %cst_141 = arith.constant dense<0xFF800000> : vector<2x8xf32>
    %229 = vector.multi_reduction <maximumf>, %228, %cst_141 [2] : vector<2x8x8xf32> to vector<2x8xf32>
    %230 = vector.shape_cast %229 : vector<2x8xf32> to vector<2x8x1xf32>
    %231 = vector.broadcast %230 : vector<2x8x1xf32> to vector<2x8x8xf32>
    %232 = arith.subf %228, %231 : vector<2x8x8xf32>
    %233 = math.exp %232 : vector<2x8x8xf32>
    %cst_142 = arith.constant dense<0.000000e+00> : vector<2x8xf32>
    %234 = vector.multi_reduction <add>, %233, %cst_142 [2] : vector<2x8x8xf32> to vector<2x8xf32>
    %235 = vector.shape_cast %234 : vector<2x8xf32> to vector<2x8x1xf32>
    %236 = tpu.reciprocal %235 {approx = true} : vector<2x8x1xf32> -> vector<2x8x1xf32>
    %237 = vector.broadcast %236 : vector<2x8x1xf32> to vector<2x8x8xf32>
    %238 = arith.mulf %233, %237 : vector<2x8x8xf32>
    %239 = arith.truncf %238 : vector<2x8x8xf32> to vector<2x8x8xbf16>
    "tpu.trace_start"() <{level = 10 : i32, message = "bqk,bkd->bqd"}> : () -> ()
    %cst_143 = arith.constant dense<0.000000e+00> : vector<2x8x4xf32>
    %240 = tpu.matmul %239, %225, %cst_143 {dimension_numbers = #tpu.dot_dimension_numbers<[2], [1], [1], [2], [0, 0, 0, 1, 1, 2], [0], [0]>} : vector<2x8x8xbf16>, vector<2x8x4xbf16>, vector<2x8x4xf32> -> vector<2x8x4xf32>
    "tpu.trace_stop"() : () -> ()
    %241 = vector.shape_cast %240 : vector<2x8x4xf32> to vector<16x4xf32>
    %242 = arith.truncf %241 : vector<16x4xf32> to vector<16x4xbf16>
    %c4_144 = arith.constant 4 : index
    %c0_145 = arith.constant 0 : index
    %c0_146 = arith.constant 0 : index
    %243 = vector.load %arg11[%c4_144, %c0_145, %c0_146] : memref<8x4x32xbf16, #tpu.memory_space<vmem>>, vector<1x4x32xbf16>
    %244 = vector.shape_cast %243 : vector<1x4x32xbf16> to vector<4x32xbf16>
    %cst_147 = arith.constant dense<0.000000e+00> : vector<16x32xf32>
    %245 = tpu.matmul %242, %244, %cst_147 {dimension_numbers = #tpu.dot_dimension_numbers<[1], [0], [0], [1], [0, 0, 1, 1], [], []>} : vector<16x4xbf16>, vector<4x32xbf16>, vector<16x32xf32> -> vector<16x32xf32>
    %246 = arith.addf %198, %245 : vector<16x32xf32>
    %c5 = arith.constant 5 : index
    %c0_148 = arith.constant 0 : index
    %c0_149 = arith.constant 0 : index
    %247 = vector.load %arg5[%c5, %c0_148, %c0_149] : memref<8x32x4xbf16, #tpu.memory_space<vmem>>, vector<1x32x4xbf16>
    %248 = vector.shape_cast %247 : vector<1x32x4xbf16> to vector<32x4xbf16>
    %cst_150 = arith.constant dense<0.000000e+00> : vector<16x4xf32>
    %249 = tpu.matmul %1, %248, %cst_150 {dimension_numbers = #tpu.dot_dimension_numbers<[1], [0], [0], [1], [0, 0, 1, 1], [], []>} : vector<16x32xbf16>, vector<32x4xbf16>, vector<16x4xf32> -> vector<16x4xf32>
    %c5_151 = arith.constant 5 : index
    %c0_152 = arith.constant 0 : index
    %c0_153 = arith.constant 0 : index
    %250 = vector.load %arg8[%c5_151, %c0_152, %c0_153] : memref<8x1x4xf32, #tpu.memory_space<vmem>>, vector<1x1x4xf32>
    %251 = vector.shape_cast %250 : vector<1x1x4xf32> to vector<1x4xf32>
    %252 = vector.broadcast %251 : vector<1x4xf32> to vector<16x4xf32>
    %253 = arith.addf %249, %252 : vector<16x4xf32>
    %c5_154 = arith.constant 5 : index
    %c0_155 = arith.constant 0 : index
    %c0_156 = arith.constant 0 : index
    %254 = vector.load %arg6[%c5_154, %c0_155, %c0_156] : memref<8x32x4xbf16, #tpu.memory_space<vmem>>, vector<1x32x4xbf16>
    %255 = vector.shape_cast %254 : vector<1x32x4xbf16> to vector<32x4xbf16>
    %cst_157 = arith.constant dense<0.000000e+00> : vector<16x4xf32>
    %256 = tpu.matmul %2, %255, %cst_157 {dimension_numbers = #tpu.dot_dimension_numbers<[1], [0], [0], [1], [0, 0, 1, 1], [], []>} : vector<16x32xbf16>, vector<32x4xbf16>, vector<16x4xf32> -> vector<16x4xf32>
    %c5_158 = arith.constant 5 : index
    %c0_159 = arith.constant 0 : index
    %c0_160 = arith.constant 0 : index
    %257 = vector.load %arg9[%c5_158, %c0_159, %c0_160] : memref<8x1x4xf32, #tpu.memory_space<vmem>>, vector<1x1x4xf32>
    %258 = vector.shape_cast %257 : vector<1x1x4xf32> to vector<1x4xf32>
    %259 = vector.broadcast %258 : vector<1x4xf32> to vector<16x4xf32>
    %260 = arith.addf %256, %259 : vector<16x4xf32>
    %c5_161 = arith.constant 5 : index
    %c0_162 = arith.constant 0 : index
    %c0_163 = arith.constant 0 : index
    %261 = vector.load %arg7[%c5_161, %c0_162, %c0_163] : memref<8x32x4xbf16, #tpu.memory_space<vmem>>, vector<1x32x4xbf16>
    %262 = vector.shape_cast %261 : vector<1x32x4xbf16> to vector<32x4xbf16>
    %cst_164 = arith.constant dense<0.000000e+00> : vector<16x4xf32>
    %263 = tpu.matmul %3, %262, %cst_164 {dimension_numbers = #tpu.dot_dimension_numbers<[1], [0], [0], [1], [0, 0, 1, 1], [], []>} : vector<16x32xbf16>, vector<32x4xbf16>, vector<16x4xf32> -> vector<16x4xf32>
    %c5_165 = arith.constant 5 : index
    %c0_166 = arith.constant 0 : index
    %c0_167 = arith.constant 0 : index
    %264 = vector.load %arg10[%c5_165, %c0_166, %c0_167] : memref<8x1x4xf32, #tpu.memory_space<vmem>>, vector<1x1x4xf32>
    %265 = vector.shape_cast %264 : vector<1x1x4xf32> to vector<1x4xf32>
    %266 = vector.broadcast %265 : vector<1x4xf32> to vector<16x4xf32>
    %267 = arith.addf %263, %266 : vector<16x4xf32>
    %268 = vector.shape_cast %253 : vector<16x4xf32> to vector<2x8x4xf32>
    %269 = arith.truncf %268 : vector<2x8x4xf32> to vector<2x8x4xbf16>
    %270 = vector.shape_cast %260 : vector<16x4xf32> to vector<2x8x4xf32>
    %271 = arith.truncf %270 : vector<2x8x4xf32> to vector<2x8x4xbf16>
    %272 = vector.shape_cast %267 : vector<16x4xf32> to vector<2x8x4xf32>
    %273 = arith.truncf %272 : vector<2x8x4xf32> to vector<2x8x4xbf16>
    "tpu.trace_start"() <{level = 10 : i32, message = "bqd,bkd->bqk"}> : () -> ()
    %cst_168 = arith.constant dense<0.000000e+00> : vector<2x8x8xf32>
    %274 = tpu.matmul %269, %271, %cst_168 {dimension_numbers = #tpu.dot_dimension_numbers<[2], [2], [1], [1], [0, 0, 0, 1, 1, 1], [0], [0]>} : vector<2x8x4xbf16>, vector<2x8x4xbf16>, vector<2x8x8xf32> -> vector<2x8x8xf32>
    "tpu.trace_stop"() : () -> ()
    %275 = vector.broadcast %5 : vector<2x1x8xf32> to vector<2x8x8xf32>
    %276 = arith.addf %274, %275 : vector<2x8x8xf32>
    %cst_169 = arith.constant dense<0xFF800000> : vector<2x8xf32>
    %277 = vector.multi_reduction <maximumf>, %276, %cst_169 [2] : vector<2x8x8xf32> to vector<2x8xf32>
    %278 = vector.shape_cast %277 : vector<2x8xf32> to vector<2x8x1xf32>
    %279 = vector.broadcast %278 : vector<2x8x1xf32> to vector<2x8x8xf32>
    %280 = arith.subf %276, %279 : vector<2x8x8xf32>
    %281 = math.exp %280 : vector<2x8x8xf32>
    %cst_170 = arith.constant dense<0.000000e+00> : vector<2x8xf32>
    %282 = vector.multi_reduction <add>, %281, %cst_170 [2] : vector<2x8x8xf32> to vector<2x8xf32>
    %283 = vector.shape_cast %282 : vector<2x8xf32> to vector<2x8x1xf32>
    %284 = tpu.reciprocal %283 {approx = true} : vector<2x8x1xf32> -> vector<2x8x1xf32>
    %285 = vector.broadcast %284 : vector<2x8x1xf32> to vector<2x8x8xf32>
    %286 = arith.mulf %281, %285 : vector<2x8x8xf32>
    %287 = arith.truncf %286 : vector<2x8x8xf32> to vector<2x8x8xbf16>
    "tpu.trace_start"() <{level = 10 : i32, message = "bqk,bkd->bqd"}> : () -> ()
    %cst_171 = arith.constant dense<0.000000e+00> : vector<2x8x4xf32>
    %288 = tpu.matmul %287, %273, %cst_171 {dimension_numbers = #tpu.dot_dimension_numbers<[2], [1], [1], [2], [0, 0, 0, 1, 1, 2], [0], [0]>} : vector<2x8x8xbf16>, vector<2x8x4xbf16>, vector<2x8x4xf32> -> vector<2x8x4xf32>
    "tpu.trace_stop"() : () -> ()
    %289 = vector.shape_cast %288 : vector<2x8x4xf32> to vector<16x4xf32>
    %290 = arith.truncf %289 : vector<16x4xf32> to vector<16x4xbf16>
    %c5_172 = arith.constant 5 : index
    %c0_173 = arith.constant 0 : index
    %c0_174 = arith.constant 0 : index
    %291 = vector.load %arg11[%c5_172, %c0_173, %c0_174] : memref<8x4x32xbf16, #tpu.memory_space<vmem>>, vector<1x4x32xbf16>
    %292 = vector.shape_cast %291 : vector<1x4x32xbf16> to vector<4x32xbf16>
    %cst_175 = arith.constant dense<0.000000e+00> : vector<16x32xf32>
    %293 = tpu.matmul %290, %292, %cst_175 {dimension_numbers = #tpu.dot_dimension_numbers<[1], [0], [0], [1], [0, 0, 1, 1], [], []>} : vector<16x4xbf16>, vector<4x32xbf16>, vector<16x32xf32> -> vector<16x32xf32>
    %294 = arith.addf %246, %293 : vector<16x32xf32>
    %c6 = arith.constant 6 : index
    %c0_176 = arith.constant 0 : index
    %c0_177 = arith.constant 0 : index
    %295 = vector.load %arg5[%c6, %c0_176, %c0_177] : memref<8x32x4xbf16, #tpu.memory_space<vmem>>, vector<1x32x4xbf16>
    %296 = vector.shape_cast %295 : vector<1x32x4xbf16> to vector<32x4xbf16>
    %cst_178 = arith.constant dense<0.000000e+00> : vector<16x4xf32>
    %297 = tpu.matmul %1, %296, %cst_178 {dimension_numbers = #tpu.dot_dimension_numbers<[1], [0], [0], [1], [0, 0, 1, 1], [], []>} : vector<16x32xbf16>, vector<32x4xbf16>, vector<16x4xf32> -> vector<16x4xf32>
    %c6_179 = arith.constant 6 : index
    %c0_180 = arith.constant 0 : index
    %c0_181 = arith.constant 0 : index
    %298 = vector.load %arg8[%c6_179, %c0_180, %c0_181] : memref<8x1x4xf32, #tpu.memory_space<vmem>>, vector<1x1x4xf32>
    %299 = vector.shape_cast %298 : vector<1x1x4xf32> to vector<1x4xf32>
    %300 = vector.broadcast %299 : vector<1x4xf32> to vector<16x4xf32>
    %301 = arith.addf %297, %300 : vector<16x4xf32>
    %c6_182 = arith.constant 6 : index
    %c0_183 = arith.constant 0 : index
    %c0_184 = arith.constant 0 : index
    %302 = vector.load %arg6[%c6_182, %c0_183, %c0_184] : memref<8x32x4xbf16, #tpu.memory_space<vmem>>, vector<1x32x4xbf16>
    %303 = vector.shape_cast %302 : vector<1x32x4xbf16> to vector<32x4xbf16>
    %cst_185 = arith.constant dense<0.000000e+00> : vector<16x4xf32>
    %304 = tpu.matmul %2, %303, %cst_185 {dimension_numbers = #tpu.dot_dimension_numbers<[1], [0], [0], [1], [0, 0, 1, 1], [], []>} : vector<16x32xbf16>, vector<32x4xbf16>, vector<16x4xf32> -> vector<16x4xf32>
    %c6_186 = arith.constant 6 : index
    %c0_187 = arith.constant 0 : index
    %c0_188 = arith.constant 0 : index
    %305 = vector.load %arg9[%c6_186, %c0_187, %c0_188] : memref<8x1x4xf32, #tpu.memory_space<vmem>>, vector<1x1x4xf32>
    %306 = vector.shape_cast %305 : vector<1x1x4xf32> to vector<1x4xf32>
    %307 = vector.broadcast %306 : vector<1x4xf32> to vector<16x4xf32>
    %308 = arith.addf %304, %307 : vector<16x4xf32>
    %c6_189 = arith.constant 6 : index
    %c0_190 = arith.constant 0 : index
    %c0_191 = arith.constant 0 : index
    %309 = vector.load %arg7[%c6_189, %c0_190, %c0_191] : memref<8x32x4xbf16, #tpu.memory_space<vmem>>, vector<1x32x4xbf16>
    %310 = vector.shape_cast %309 : vector<1x32x4xbf16> to vector<32x4xbf16>
    %cst_192 = arith.constant dense<0.000000e+00> : vector<16x4xf32>
    %311 = tpu.matmul %3, %310, %cst_192 {dimension_numbers = #tpu.dot_dimension_numbers<[1], [0], [0], [1], [0, 0, 1, 1], [], []>} : vector<16x32xbf16>, vector<32x4xbf16>, vector<16x4xf32> -> vector<16x4xf32>
    %c6_193 = arith.constant 6 : index
    %c0_194 = arith.constant 0 : index
    %c0_195 = arith.constant 0 : index
    %312 = vector.load %arg10[%c6_193, %c0_194, %c0_195] : memref<8x1x4xf32, #tpu.memory_space<vmem>>, vector<1x1x4xf32>
    %313 = vector.shape_cast %312 : vector<1x1x4xf32> to vector<1x4xf32>
    %314 = vector.broadcast %313 : vector<1x4xf32> to vector<16x4xf32>
    %315 = arith.addf %311, %314 : vector<16x4xf32>
    %316 = vector.shape_cast %301 : vector<16x4xf32> to vector<2x8x4xf32>
    %317 = arith.truncf %316 : vector<2x8x4xf32> to vector<2x8x4xbf16>
    %318 = vector.shape_cast %308 : vector<16x4xf32> to vector<2x8x4xf32>
    %319 = arith.truncf %318 : vector<2x8x4xf32> to vector<2x8x4xbf16>
    %320 = vector.shape_cast %315 : vector<16x4xf32> to vector<2x8x4xf32>
    %321 = arith.truncf %320 : vector<2x8x4xf32> to vector<2x8x4xbf16>
    "tpu.trace_start"() <{level = 10 : i32, message = "bqd,bkd->bqk"}> : () -> ()
    %cst_196 = arith.constant dense<0.000000e+00> : vector<2x8x8xf32>
    %322 = tpu.matmul %317, %319, %cst_196 {dimension_numbers = #tpu.dot_dimension_numbers<[2], [2], [1], [1], [0, 0, 0, 1, 1, 1], [0], [0]>} : vector<2x8x4xbf16>, vector<2x8x4xbf16>, vector<2x8x8xf32> -> vector<2x8x8xf32>
    "tpu.trace_stop"() : () -> ()
    %323 = vector.broadcast %5 : vector<2x1x8xf32> to vector<2x8x8xf32>
    %324 = arith.addf %322, %323 : vector<2x8x8xf32>
    %cst_197 = arith.constant dense<0xFF800000> : vector<2x8xf32>
    %325 = vector.multi_reduction <maximumf>, %324, %cst_197 [2] : vector<2x8x8xf32> to vector<2x8xf32>
    %326 = vector.shape_cast %325 : vector<2x8xf32> to vector<2x8x1xf32>
    %327 = vector.broadcast %326 : vector<2x8x1xf32> to vector<2x8x8xf32>
    %328 = arith.subf %324, %327 : vector<2x8x8xf32>
    %329 = math.exp %328 : vector<2x8x8xf32>
    %cst_198 = arith.constant dense<0.000000e+00> : vector<2x8xf32>
    %330 = vector.multi_reduction <add>, %329, %cst_198 [2] : vector<2x8x8xf32> to vector<2x8xf32>
    %331 = vector.shape_cast %330 : vector<2x8xf32> to vector<2x8x1xf32>
    %332 = tpu.reciprocal %331 {approx = true} : vector<2x8x1xf32> -> vector<2x8x1xf32>
    %333 = vector.broadcast %332 : vector<2x8x1xf32> to vector<2x8x8xf32>
    %334 = arith.mulf %329, %333 : vector<2x8x8xf32>
    %335 = arith.truncf %334 : vector<2x8x8xf32> to vector<2x8x8xbf16>
    "tpu.trace_start"() <{level = 10 : i32, message = "bqk,bkd->bqd"}> : () -> ()
    %cst_199 = arith.constant dense<0.000000e+00> : vector<2x8x4xf32>
    %336 = tpu.matmul %335, %321, %cst_199 {dimension_numbers = #tpu.dot_dimension_numbers<[2], [1], [1], [2], [0, 0, 0, 1, 1, 2], [0], [0]>} : vector<2x8x8xbf16>, vector<2x8x4xbf16>, vector<2x8x4xf32> -> vector<2x8x4xf32>
    "tpu.trace_stop"() : () -> ()
    %337 = vector.shape_cast %336 : vector<2x8x4xf32> to vector<16x4xf32>
    %338 = arith.truncf %337 : vector<16x4xf32> to vector<16x4xbf16>
    %c6_200 = arith.constant 6 : index
    %c0_201 = arith.constant 0 : index
    %c0_202 = arith.constant 0 : index
    %339 = vector.load %arg11[%c6_200, %c0_201, %c0_202] : memref<8x4x32xbf16, #tpu.memory_space<vmem>>, vector<1x4x32xbf16>
    %340 = vector.shape_cast %339 : vector<1x4x32xbf16> to vector<4x32xbf16>
    %cst_203 = arith.constant dense<0.000000e+00> : vector<16x32xf32>
    %341 = tpu.matmul %338, %340, %cst_203 {dimension_numbers = #tpu.dot_dimension_numbers<[1], [0], [0], [1], [0, 0, 1, 1], [], []>} : vector<16x4xbf16>, vector<4x32xbf16>, vector<16x32xf32> -> vector<16x32xf32>
    %342 = arith.addf %294, %341 : vector<16x32xf32>
    %c7 = arith.constant 7 : index
    %c0_204 = arith.constant 0 : index
    %c0_205 = arith.constant 0 : index
    %343 = vector.load %arg5[%c7, %c0_204, %c0_205] : memref<8x32x4xbf16, #tpu.memory_space<vmem>>, vector<1x32x4xbf16>
    %344 = vector.shape_cast %343 : vector<1x32x4xbf16> to vector<32x4xbf16>
    %cst_206 = arith.constant dense<0.000000e+00> : vector<16x4xf32>
    %345 = tpu.matmul %1, %344, %cst_206 {dimension_numbers = #tpu.dot_dimension_numbers<[1], [0], [0], [1], [0, 0, 1, 1], [], []>} : vector<16x32xbf16>, vector<32x4xbf16>, vector<16x4xf32> -> vector<16x4xf32>
    %c7_207 = arith.constant 7 : index
    %c0_208 = arith.constant 0 : index
    %c0_209 = arith.constant 0 : index
    %346 = vector.load %arg8[%c7_207, %c0_208, %c0_209] : memref<8x1x4xf32, #tpu.memory_space<vmem>>, vector<1x1x4xf32>
    %347 = vector.shape_cast %346 : vector<1x1x4xf32> to vector<1x4xf32>
    %348 = vector.broadcast %347 : vector<1x4xf32> to vector<16x4xf32>
    %349 = arith.addf %345, %348 : vector<16x4xf32>
    %c7_210 = arith.constant 7 : index
    %c0_211 = arith.constant 0 : index
    %c0_212 = arith.constant 0 : index
    %350 = vector.load %arg6[%c7_210, %c0_211, %c0_212] : memref<8x32x4xbf16, #tpu.memory_space<vmem>>, vector<1x32x4xbf16>
    %351 = vector.shape_cast %350 : vector<1x32x4xbf16> to vector<32x4xbf16>
    %cst_213 = arith.constant dense<0.000000e+00> : vector<16x4xf32>
    %352 = tpu.matmul %2, %351, %cst_213 {dimension_numbers = #tpu.dot_dimension_numbers<[1], [0], [0], [1], [0, 0, 1, 1], [], []>} : vector<16x32xbf16>, vector<32x4xbf16>, vector<16x4xf32> -> vector<16x4xf32>
    %c7_214 = arith.constant 7 : index
    %c0_215 = arith.constant 0 : index
    %c0_216 = arith.constant 0 : index
    %353 = vector.load %arg9[%c7_214, %c0_215, %c0_216] : memref<8x1x4xf32, #tpu.memory_space<vmem>>, vector<1x1x4xf32>
    %354 = vector.shape_cast %353 : vector<1x1x4xf32> to vector<1x4xf32>
    %355 = vector.broadcast %354 : vector<1x4xf32> to vector<16x4xf32>
    %356 = arith.addf %352, %355 : vector<16x4xf32>
    %c7_217 = arith.constant 7 : index
    %c0_218 = arith.constant 0 : index
    %c0_219 = arith.constant 0 : index
    %357 = vector.load %arg7[%c7_217, %c0_218, %c0_219] : memref<8x32x4xbf16, #tpu.memory_space<vmem>>, vector<1x32x4xbf16>
    %358 = vector.shape_cast %357 : vector<1x32x4xbf16> to vector<32x4xbf16>
    %cst_220 = arith.constant dense<0.000000e+00> : vector<16x4xf32>
    %359 = tpu.matmul %3, %358, %cst_220 {dimension_numbers = #tpu.dot_dimension_numbers<[1], [0], [0], [1], [0, 0, 1, 1], [], []>} : vector<16x32xbf16>, vector<32x4xbf16>, vector<16x4xf32> -> vector<16x4xf32>
    %c7_221 = arith.constant 7 : index
    %c0_222 = arith.constant 0 : index
    %c0_223 = arith.constant 0 : index
    %360 = vector.load %arg10[%c7_221, %c0_222, %c0_223] : memref<8x1x4xf32, #tpu.memory_space<vmem>>, vector<1x1x4xf32>
    %361 = vector.shape_cast %360 : vector<1x1x4xf32> to vector<1x4xf32>
    %362 = vector.broadcast %361 : vector<1x4xf32> to vector<16x4xf32>
    %363 = arith.addf %359, %362 : vector<16x4xf32>
    %364 = vector.shape_cast %349 : vector<16x4xf32> to vector<2x8x4xf32>
    %365 = arith.truncf %364 : vector<2x8x4xf32> to vector<2x8x4xbf16>
    %366 = vector.shape_cast %356 : vector<16x4xf32> to vector<2x8x4xf32>
    %367 = arith.truncf %366 : vector<2x8x4xf32> to vector<2x8x4xbf16>
    %368 = vector.shape_cast %363 : vector<16x4xf32> to vector<2x8x4xf32>
    %369 = arith.truncf %368 : vector<2x8x4xf32> to vector<2x8x4xbf16>
    "tpu.trace_start"() <{level = 10 : i32, message = "bqd,bkd->bqk"}> : () -> ()
    %cst_224 = arith.constant dense<0.000000e+00> : vector<2x8x8xf32>
    %370 = tpu.matmul %365, %367, %cst_224 {dimension_numbers = #tpu.dot_dimension_numbers<[2], [2], [1], [1], [0, 0, 0, 1, 1, 1], [0], [0]>} : vector<2x8x4xbf16>, vector<2x8x4xbf16>, vector<2x8x8xf32> -> vector<2x8x8xf32>
    "tpu.trace_stop"() : () -> ()
    %371 = vector.broadcast %5 : vector<2x1x8xf32> to vector<2x8x8xf32>
    %372 = arith.addf %370, %371 : vector<2x8x8xf32>
    %cst_225 = arith.constant dense<0xFF800000> : vector<2x8xf32>
    %373 = vector.multi_reduction <maximumf>, %372, %cst_225 [2] : vector<2x8x8xf32> to vector<2x8xf32>
    %374 = vector.shape_cast %373 : vector<2x8xf32> to vector<2x8x1xf32>
    %375 = vector.broadcast %374 : vector<2x8x1xf32> to vector<2x8x8xf32>
    %376 = arith.subf %372, %375 : vector<2x8x8xf32>
    %377 = math.exp %376 : vector<2x8x8xf32>
    %cst_226 = arith.constant dense<0.000000e+00> : vector<2x8xf32>
    %378 = vector.multi_reduction <add>, %377, %cst_226 [2] : vector<2x8x8xf32> to vector<2x8xf32>
    %379 = vector.shape_cast %378 : vector<2x8xf32> to vector<2x8x1xf32>
    %380 = tpu.reciprocal %379 {approx = true} : vector<2x8x1xf32> -> vector<2x8x1xf32>
    %381 = vector.broadcast %380 : vector<2x8x1xf32> to vector<2x8x8xf32>
    %382 = arith.mulf %377, %381 : vector<2x8x8xf32>
    %383 = arith.truncf %382 : vector<2x8x8xf32> to vector<2x8x8xbf16>
    "tpu.trace_start"() <{level = 10 : i32, message = "bqk,bkd->bqd"}> : () -> ()
    %cst_227 = arith.constant dense<0.000000e+00> : vector<2x8x4xf32>
    %384 = tpu.matmul %383, %369, %cst_227 {dimension_numbers = #tpu.dot_dimension_numbers<[2], [1], [1], [2], [0, 0, 0, 1, 1, 2], [0], [0]>} : vector<2x8x8xbf16>, vector<2x8x4xbf16>, vector<2x8x4xf32> -> vector<2x8x4xf32>
    "tpu.trace_stop"() : () -> ()
    %385 = vector.shape_cast %384 : vector<2x8x4xf32> to vector<16x4xf32>
    %386 = arith.truncf %385 : vector<16x4xf32> to vector<16x4xbf16>
    %c7_228 = arith.constant 7 : index
    %c0_229 = arith.constant 0 : index
    %c0_230 = arith.constant 0 : index
    %387 = vector.load %arg11[%c7_228, %c0_229, %c0_230] : memref<8x4x32xbf16, #tpu.memory_space<vmem>>, vector<1x4x32xbf16>
    %388 = vector.shape_cast %387 : vector<1x4x32xbf16> to vector<4x32xbf16>
    %cst_231 = arith.constant dense<0.000000e+00> : vector<16x32xf32>
    %389 = tpu.matmul %386, %388, %cst_231 {dimension_numbers = #tpu.dot_dimension_numbers<[1], [0], [0], [1], [0, 0, 1, 1], [], []>} : vector<16x4xbf16>, vector<4x32xbf16>, vector<16x32xf32> -> vector<16x32xf32>
    %390 = arith.addf %342, %389 : vector<16x32xf32>
    %c0_232 = arith.constant 0 : index
    %c0_233 = arith.constant 0 : index
    %391 = vector.load %arg12[%c0_232, %c0_233] : memref<1x32xf32, #tpu.memory_space<vmem>>, vector<1x32xf32>
    %392 = vector.broadcast %391 : vector<1x32xf32> to vector<16x32xf32>
    %393 = arith.addf %390, %392 : vector<16x32xf32>
    %394 = arith.addf %0, %393 : vector<16x32xf32>
    %cst_234 = arith.constant dense<0.000000e+00> : vector<16xf32>
    %395 = vector.multi_reduction <add>, %394, %cst_234 [1] : vector<16x32xf32> to vector<16xf32>
    %396 = vector.shape_cast %395 : vector<16xf32> to vector<16x1xf32>
    %cst_235 = arith.constant 3.200000e+01 : f32
    %397 = vector.broadcast %cst_235 : f32 to vector<16x1xf32>
    %398 = arith.divf %396, %397 : vector<16x1xf32>
    %399 = vector.broadcast %398 : vector<16x1xf32> to vector<16x32xf32>
    %400 = arith.subf %394, %399 : vector<16x32xf32>
    %401 = arith.mulf %400, %400 : vector<16x32xf32>
    %cst_236 = arith.constant dense<0.000000e+00> : vector<16xf32>
    %402 = vector.multi_reduction <add>, %401, %cst_236 [1] : vector<16x32xf32> to vector<16xf32>
    %403 = vector.shape_cast %402 : vector<16xf32> to vector<16x1xf32>
    %cst_237 = arith.constant 3.200000e+01 : f32
    %404 = vector.broadcast %cst_237 : f32 to vector<16x1xf32>
    %405 = arith.divf %403, %404 : vector<16x1xf32>
    %cst_238 = arith.constant 9.99999974E-6 : f32
    %406 = vector.broadcast %cst_238 : f32 to vector<16x1xf32>
    %407 = arith.addf %405, %406 : vector<16x1xf32>
    %408 = math.rsqrt %407 : vector<16x1xf32>
    %409 = vector.broadcast %408 : vector<16x1xf32> to vector<16x32xf32>
    %410 = arith.mulf %400, %409 : vector<16x32xf32>
    %c0_239 = arith.constant 0 : index
    %c0_240 = arith.constant 0 : index
    %411 = vector.load %arg13[%c0_239, %c0_240] : memref<1x32xf32, #tpu.memory_space<vmem>>, vector<1x32xf32>
    %412 = vector.broadcast %411 : vector<1x32xf32> to vector<16x32xf32>
    %413 = arith.mulf %410, %412 : vector<16x32xf32>
    %c0_241 = arith.constant 0 : index
    %c0_242 = arith.constant 0 : index
    %414 = vector.load %arg14[%c0_241, %c0_242] : memref<1x32xf32, #tpu.memory_space<vmem>>, vector<1x32xf32>
    %415 = vector.broadcast %414 : vector<1x32xf32> to vector<16x32xf32>
    %416 = arith.addf %413, %415 : vector<16x32xf32>
    %c0_243 = arith.constant 0 : index
    %c0_244 = arith.constant 0 : index
    %417 = vector.load %arg15[%c0_243, %c0_244] : memref<16x32xf32, #tpu.memory_space<vmem>>, vector<16x32xf32>
    tpu.vector_store %arg15[%c0_243, %c0_244], %416 {strides = array<i32>} : memref<16x32xf32, #tpu.memory_space<vmem>>, vector<16x32xf32>,
    return
  }
  func.func @transform_0(%arg0: i32) -> (i32, i32) {
    %c0_i32 = arith.constant 0 : i32
    %c0_i32_0 = arith.constant 0 : i32
    return %arg0, %c0_i32 : i32, i32
  }
  func.func @transform_1(%arg0: i32) -> (i32, i32) {
    %c0_i32 = arith.constant 0 : i32
    %c0_i32_0 = arith.constant 0 : i32
    return %arg0, %c0_i32 : i32, i32
  }
  func.func @transform_2(%arg0: i32) -> (i32, i32) {
    %c0_i32 = arith.constant 0 : i32
    %c0_i32_0 = arith.constant 0 : i32
    return %arg0, %c0_i32 : i32, i32
  }
  func.func @transform_3(%arg0: i32) -> (i32, i32) {
    %c0_i32 = arith.constant 0 : i32
    %c0_i32_0 = arith.constant 0 : i32
    return %arg0, %c0_i32 : i32, i32
  }
  func.func @transform_4(%arg0: i32) -> (i32, i32, i32) {
    %c0_i32 = arith.constant 0 : i32
    %c0_i32_0 = arith.constant 0 : i32
    %c0_i32_1 = arith.constant 0 : i32
    %c0_i32_2 = arith.constant 0 : i32
    return %c0_i32, %c0_i32_0, %c0_i32_1 : i32, i32, i32
  }
  func.func @transform_5(%arg0: i32) -> (i32, i32, i32) {
    %c0_i32 = arith.constant 0 : i32
    %c0_i32_0 = arith.constant 0 : i32
    %c0_i32_1 = arith.constant 0 : i32
    %c0_i32_2 = arith.constant 0 : i32
    return %c0_i32, %c0_i32_0, %c0_i32_1 : i32, i32, i32
  }
  func.func @transform_6(%arg0: i32) -> (i32, i32, i32) {
    %c0_i32 = arith.constant 0 : i32
    %c0_i32_0 = arith.constant 0 : i32
    %c0_i32_1 = arith.constant 0 : i32
    %c0_i32_2 = arith.constant 0 : i32
    return %c0_i32, %c0_i32_0, %c0_i32_1 : i32, i32, i32
  }
  func.func @transform_7(%arg0: i32) -> (i32, i32, i32) {
    %c0_i32 = arith.constant 0 : i32
    %c0_i32_0 = arith.constant 0 : i32
    %c0_i32_1 = arith.constant 0 : i32
    %c0_i32_2 = arith.constant 0 : i32
    return %c0_i32, %c0_i32_0, %c0_i32_1 : i32, i32, i32
  }
  func.func @transform_8(%arg0: i32) -> (i32, i32, i32) {
    %c0_i32 = arith.constant 0 : i32
    %c0_i32_0 = arith.constant 0 : i32
    %c0_i32_1 = arith.constant 0 : i32
    %c0_i32_2 = arith.constant 0 : i32
    return %c0_i32, %c0_i32_0, %c0_i32_1 : i32, i32, i32
  }
  func.func @transform_9(%arg0: i32) -> (i32, i32, i32) {
    %c0_i32 = arith.constant 0 : i32
    %c0_i32_0 = arith.constant 0 : i32
    %c0_i32_1 = arith.constant 0 : i32
    %c0_i32_2 = arith.constant 0 : i32
    return %c0_i32, %c0_i32_0, %c0_i32_1 : i32, i32, i32
  }
  func.func @transform_10(%arg0: i32) -> (i32, i32, i32) {
    %c0_i32 = arith.constant 0 : i32
    %c0_i32_0 = arith.constant 0 : i32
    %c0_i32_1 = arith.constant 0 : i32
    %c0_i32_2 = arith.constant 0 : i32
    return %c0_i32, %c0_i32_0, %c0_i32_1 : i32, i32, i32
  }
  func.func @transform_11(%arg0: i32) -> (i32, i32) {
    %c0_i32 = arith.constant 0 : i32
    %c0_i32_0 = arith.constant 0 : i32
    %c0_i32_1 = arith.constant 0 : i32
    return %c0_i32, %c0_i32_0 : i32, i32
  }
  func.func @transform_12(%arg0: i32) -> (i32, i32) {
    %c0_i32 = arith.constant 0 : i32
    %c0_i32_0 = arith.constant 0 : i32
    %c0_i32_1 = arith.constant 0 : i32
    return %c0_i32, %c0_i32_0 : i32, i32
  }
  func.func @transform_13(%arg0: i32) -> (i32, i32) {
    %c0_i32 = arith.constant 0 : i32
    %c0_i32_0 = arith.constant 0 : i32
    %c0_i32_1 = arith.constant 0 : i32
    return %c0_i32, %c0_i32_0 : i32, i32
  }
  func.func @transform_14(%arg0: i32) -> (i32, i32) {
    %c0_i32 = arith.constant 0 : i32
    %c0_i32_0 = arith.constant 0 : i32
    return %arg0, %c0_i32 : i32, i32
  }
}

</mosaic_0001>

<bundles_post_ra>
// kernel: tpu_custom_call.1
= control target key start
LH: loop header
LB: loop body
LE: loop exit
PB: predicated region body
PF: predicated region fallthrough
CT: control target
= control target key end

     0   :  { %v4879_v1 = vmov 0.0   ;;  %vm4880_vm0 = vmmov 0   ;;  %vm103_vm1 = vcmask 261120   ;;  %s5705_s0 = inlined_call_operand.vmem [shape: f32[16,32], index: 0, kind: input, shape index: {}]   ;;  %s5706_s1 = inlined_call_operand.vmem [shape: bf16[16,32], index: 1, kind: input, shape index: {}]   ;;  %s5707_s2 = inlined_call_operand.vmem [shape: bf16[16,32], index: 2, kind: input, shape index: {}]   ;;  %s5708_s3 = inlined_call_operand.vmem [shape: f32[2,8], index: 3, kind: input, shape index: {}]   ;;  %s5709_s4 = inlined_call_operand.vmem [shape: bf16[8,32,4], index: 4, kind: input, shape index: {}]   ;;  %s5710_s5 = inlined_call_operand.vmem [shape: bf16[8,32,4], index: 5, kind: input, shape index: {}]   ;;  %s5711_s6 = inlined_call_operand.vmem [shape: bf16[8,32,4], index: 6, kind: input, shape index: {}]   ;;  %s5712_s7 = inlined_call_operand.vmem [shape: f32[8,1,4], index: 7, kind: input, shape index: {}]   ;;  %s5713_s8 = inlined_call_operand.vmem [shape: f32[8,1,4], index: 8, kind: input, shape index: {}]   ;;  %s5714_s9 = inlined_call_operand.vmem [shape: f32[8,1,4], index: 9, kind: input, shape index: {}]   ;;  %s5715_s10 = inlined_call_operand.vmem [shape: bf16[8,4,32], index: 10, kind: input, shape index: {}]   ;;  %s5716_s11 = inlined_call_operand.vmem [shape: f32[1,32], index: 11, kind: input, shape index: {}]   ;;  %s5717_s12 = inlined_call_operand.vmem [shape: f32[1,32], index: 12, kind: input, shape index: {}]   ;;  %s5718_s13 = inlined_call_operand.vmem [shape: f32[1,32], index: 13, kind: input, shape index: {}]   ;;  %s5719_s14 = inlined_call_operand.hbm [shape: f32[16,32], index: 14, kind: output, shape index: {}]  }
   0x1   :  { %v4733_v0 = vld [vmem:[%s5710_s5] sm:$0xff]   ;;  %4303 = vmatprep.subr.bf16.mxu1 %v4879_v1  ;;  %4295 = vmatprep.subr.bf16.mxu0 %v4879_v1  ;;  %v4734_v2 = vld [vmem:[%s5710_s5 + $0x8] sm:$0xff]  }
   0x2   :  { %4304 = vmatpush3.bf16.msra.mxu1 %v4733_v0  ;;  %v4735_v3 = vld [vmem:[%s5709_s4] sm:$0xff]   ;;  %4307 = vmatprep.mubr.msk.bf16.mxu1 %vm4880_vm0, %v4879_v1  ;;  %v4737_v5 = vld [vmem:[%s5709_s4 + $0x8] sm:$0xff]  }
   0x3   :  { %4305 = vmatprep.subr.bf16.mxu1 %v4879_v1  ;;  %v4977_v4 = vld [vmem:[%s5706_s1] sm:$0xff]   ;;  %4299 = vmatprep.mubr.msk.bf16.mxu0 %vm4880_vm0, %v4879_v1  ;;  %v50_v7 = vld [vmem:[%s5705_s0 + $0x8] sm:$0xff] }
   0x4   :  { %4296 = vmatpush3.bf16.msra.mxu0 %v4735_v3  ;;  %v49_v6 = vld [vmem:[%s5705_s0] sm:$0xff]  ;;  %v4739_v10 = vld [vmem:[%s5711_s6 + $0x8] sm:$0xff]  }
   0x5   :  { %4297 = vmatprep.subr.bf16.mxu0 %v4879_v1  ;;  %v4991_v8 = vpack.c.bf16 %v50_v7, %v49_v6  ;;  %v4738_v9 = vld [vmem:[%s5711_s6] sm:$0xff]  }
   0x6   :  { %4306 = vmatpush3.bf16.msra.mxu1 %v4734_v2 }
   0x7   :  { %4319 = vmatprep.subr.bf16.mxu1 %v4879_v1 }
   0x8   :  { %4298 = vmatpush3.bf16.msra.mxu0 %v4737_v5 }
   0x9   :  { %4308 = vmatmul.mubr.msk.bf16.vlgmr.msra.gmra.mrb[0].mxu1 %vm103_vm1, %v4977_v4  ;;  %4311 = vmatprep.subr.bf16.mxu0 %v4879_v1 }
   0xa   :  { %4321 = vmatprep.mubr.msk.bf16.mxu1 %vm4880_vm0, %v4879_v1 }
   0xb   :  { %4300 = vmatmul.mubr.msk.bf16.vlgmr.msra.gmra.mrb[0].mxu0 %vm103_vm1, %v4991_v8 }
   0xc   :  { %4312 = vmatpush3.bf16.msra.mxu0 %v4738_v9  ;;  %4315 = vmatprep.mubr.msk.bf16.mxu0 %vm4880_vm0, %v4879_v1 }
   0xd   :  { %4313 = vmatprep.subr.bf16.mxu0 %v4879_v1 }
  0x10   :  { %4314 = vmatpush3.bf16.msra.mxu0 %v4739_v10 }
  0x11   :  { %4325 = vmatprep.subr.bf16.mxu0 %v4879_v1 }
  0x12   :  { %19 = vsyncpa [#allocation3], 0  ;;  %v5014_v11 = vld [vmem:[%s5707_s2] sm:$0xff]   ;;  %vm308_vm2 = vcmask 31744   ;;  %vm429_vm3 = vcmask 1043456   ;;  %v69_v45 = vlaneseq  ;;  %vm401_vm4 = vcmask 64512  }
  0x13   :  { %4316 = vmatmul.mubr.msk.bf16.vlgmr.msra.gmra.mrb[4].mxu0 %vm103_vm1, %v5014_v11  ;;  %v3894_v12 = vld [vmem:[%s5713_s8] ss:$0 sm:$0xff]  ;;  %v4881_v43 = vmov 1966171168   ;;  %vm939_vm5 = vcmask 1041408   ;;  %s4882_s27 = smov [#allocation2]  }
  0x14   :  { %4327 = vmatprep.mubr.msk.bf16.mxu0 %vm4880_vm0, %v4879_v1  ;;  %v3890_v17 = vld [vmem:[%s5712_s7] ss:$0 sm:$0xff]  ;;  %v67_v44 = vunpack.c.l.s4 %v4881_v43  ;;  %v70_v48 = vshrl.u32 %v69_v45, 7  ;;  %s3878_s28 = sshll.u32 %s4882_s27, 4  ;;  %s3879_s28 = int_to_ptr.vmem [resolvable:$true] %s3878_s28 }
  0x15   :  { %v3899_v32 = vld [vmem:[%s5714_s9] ss:$0 sm:$0xff]  ;;  %s4855_s29 = scalar_lea.vmem %s3879_s28, 256  ;;  %p4860_p1 = scmp.lt.s32.totalorder %s3879_s28, %s3879_s28 }
  0x16   :  { %v3889_v46 = vld.sshfl [vmem:[%s5708_s3] sm:$0x11 pattern:$0x75316420]  ;;  %v68_v47 = vunpack.c.0.s8 %v67_v44  ;;  %v300_v53 = vsub.s32 0, %v70_v48  ;;  %p4856_p0 = scmp.ne.s32.totalorder %s3879_s28, %s4855_s29  ;;  %p4861_p2 = scmp.lt.s32.totalorder %s4855_s29, %s4855_s29 }
  0x17   :  { %v65_v49 = vcombine.high %v3889_v46, %v3889_v46 }
  0x18   :  { %v71_v50 = vsub.s32 %v68_v47, %v70_v48  ;;  %p4862_p3 = por %p4861_p2, %p4860_p1 }
  0x1a   :  { %v79_v51 = vrot.slane %v65_v49, %v71_v50  ;;  %v72_v52 = vrot.slane %v3889_v46, %v71_v50  ;;  %v3913_v46 = vld [vmem:[%s5712_s7 + $0x1] ss:$0 sm:$0xff]  ;;  %p4863_p4 = pnand %p4862_p3, %p4856_p0 }
  0x1c   :  { %v5046_v54 = vrot.slane %v79_v51, %v300_v53  ;;  %v5048_v56 = vrot.slane %v72_v52, %v300_v53 }
  0xdc   :  { %v213_v13 = vpop.f32.mrb[0].mxu1 }
  0xdd   :  { %v214_v14 = vadd.f32 %v3894_v12, %v213_v13  ;;  %v4309_v15 = vpop.f32.mrb[1].mxu1 }
  0xde   :  { %v216_v16 = vpop.f32.mrb[2].mxu1  ;;  %v141_v18 = vpop.f32.mrb[0].mxu0 }
  0xdf   :  { %v294_v19 = vpack.c.bf16 %v214_v14, %v214_v14  ;;  %v217_v20 = vadd.f32 %v3894_v12, %v216_v16  ;;  %v4310_v21 = vpop.f32.mrb[3].mxu1  ;;  %v4301_v22 = vpop.f32.mrb[1].mxu0  ;;  %v142_v26 = vadd.f32 %v3890_v17, %v141_v18 }
  0xe0   :  { %v144_v23 = vpop.f32.mrb[2].mxu0  ;;  %v4741_v22 = vld [vmem:[%s5710_s5 + $0x10] sm:$0xff]  }
  0xe1   :  { %v313_v24 = vsel %vm308_vm2, %v294_v19, 0  ;;  %v295_v25 = vpack.c.bf16 %v217_v20, %v217_v20  ;;  %v4302_v27 = vpop.f32.mrb[3].mxu0  ;;  %v292_v29 = vpack.c.bf16 %v142_v26, %v142_v26  ;;  %v145_v30 = vadd.f32 %v3890_v17, %v144_v23  ;;  %v4742_v26 = vld [vmem:[%s5710_s5 + $0x18] sm:$0xff]  }
  0xe2   :  { %4320 = vmatpush3.bf16.xpose.msra.mxu1 %v313_v24  ;;  %v4743_v27 = vld [vmem:[%s5709_s4 + $0x10] sm:$0xff]  }
  0xe3   :  { %v359_v28 = vsel %vm308_vm2, %v295_v25, 0  ;;  %4331 = vmatprep.subr.bf16.mxu1 %v4879_v1  ;;  %v293_v31 = vpack.c.bf16 %v145_v30, %v145_v30  ;;  %v4745_v30 = vld [vmem:[%s5711_s6 + $0x10] sm:$0xff]  }
  0xe4   :  { %4326 = vmatpush3.bf16.xpose.msra.mxu0 %v359_v28 }
  0xe5   :  { %4337 = vmatprep.subr.bf16.mxu0 %v4879_v1 }
  0xe6   :  { %v285_v33 = vpop.f32.mrb[4].mxu0 }
  0xe7   :  { %v286_v34 = vadd.f32 %v3899_v32, %v285_v33  ;;  %v4317_v35 = vpop.f32.mrb[5].mxu0 }
  0xe8   :  { %v288_v36 = vpop.f32.mrb[6].mxu0 }
  0xe9   :  { %4322 = vmatmul.mubr.msk.bf16.vlgmr.msra.gmra.mrb[4].mxu1 %vm308_vm2, %v292_v29  ;;  %v296_v37 = vpack.c.bf16 %v286_v34, %v286_v34  ;;  %v289_v38 = vadd.f32 %v3899_v32, %v288_v36  ;;  %v4318_v39 = vpop.f32.mrb[7].mxu0  ;;  %v4744_v29 = vld [vmem:[%s5709_s4 + $0x18] sm:$0xff]  }
  0xea   :  { %4333 = vmatprep.mubr.msk.bf16.mxu1 %vm4880_vm0, %v4879_v1 }
  0xeb   :  { %4328 = vmatmul.mubr.msk.bf16.vlgmr.msra.gmra.mrb[8].mxu0 %vm308_vm2, %v293_v31  ;;  %v431_v40 = vsel %vm429_vm3, %v296_v37, 0  ;;  %v297_v41 = vpack.c.bf16 %v289_v38, %v289_v38  ;;  %v4746_v31 = vld [vmem:[%s5711_s6 + $0x18] sm:$0xff]  }
  0xec   :  { %4339 = vmatprep.mubr.msk.bf16.mxu0 %vm4880_vm0, %v4879_v1  ;;  %4332 = vmatpush3.bf16.msra.mxu1 %v431_v40  ;;  %v3922_v40 = vld [vmem:[%s5713_s8 + $0x1] ss:$0 sm:$0xff] }
  0xed   :  { %v477_v42 = vsel %vm429_vm3, %v297_v41, 0  ;;  %4343 = vmatprep.subr.bf16.mxu1 %v4879_v1 }
  0xee   :  { %4338 = vmatpush3.bf16.msra.mxu0 %v477_v42 }
  0xef   :  { %4351 = vmatprep.subr.bf16.mxu0 %v4879_v1 }
 0x1bc   :  { %v349_v55 = vpop.f32.mrb[4].mxu1 }
 0x1bd   :  { %v4323_v57 = vpop.f32.mrb[5].mxu1  ;;  %v350_v0 = vadd.f32 %v349_v55, %v5048_v56 }
 0x1be   :  { %v352_v58 = vpop.f32.mrb[6].mxu1  ;;  %v395_v59 = vpop.f32.mrb[8].mxu0 }
 0x1bf   :  { %v396_v60 = vadd.f32 %v395_v59, %v5046_v54  ;;  %v4324_v61 = vpop.f32.mrb[7].mxu1  ;;  %v4329_v62 = vpop.f32.mrb[9].mxu0  ;;  %v402_v5 = vsel %vm401_vm4, %v350_v0, -inf }
 0x1c0   :  { %v398_v63 = vpop.f32.mrb[10].mxu0 }
 0x1c1   :  { %v4330_v2 = vpop.f32.mrb[11].mxu0  ;;  %v405_v3 = vsel %vm401_vm4, %v396_v60, -inf  ;;  %v3931_v63 = vld [vmem:[%s5714_s9 + $0x1] ss:$0 sm:$0xff] }
 0x1c2   :  { %406 = vmax.xlane.f32.xlu0 %v405_v3 }
 0x1c6   :  { %403 = vmax.xlane.f32.xlu0 %v402_v5 }
 0x24f   :  { %v407_v6 = vpop.xlane.xlu0 %406 }
 0x250   :  { %v409_v7 = vsub.f32 %v396_v60, %v407_v6 }
 0x252   :  { %v412_v9 = vmul.f32 1.442695, %v409_v7 }
 0x253   :  { %v404_v10 = vpop.xlane.xlu0 %403 }
 0x254   :  { %4783 = vpow2.f32 %v412_v9  ;;  %v408_v12 = vsub.f32 %v350_v0, %v404_v10 }
 0x256   :  { %v410_v13 = vmul.f32 1.442695, %v408_v12 }
 0x258   :  { %4785 = vpow2.f32 %v410_v13 }
 0x25e   :  { %v4784_v14 = vpop.eup %4783 }
 0x25f   :  { %v417_v15 = vsel %vm401_vm4, %v4784_v14, 0.0 }
 0x260   :  { %418 = vadd.xlane.f32.xlu1 %v417_v15 }
 0x262   :  { %v4786_v16 = vpop.eup %4785 }
 0x263   :  { %v414_v17 = vsel %vm401_vm4, %v4786_v16, 0.0 }
 0x264   :  { %415 = vadd.xlane.f32.xlu1 %v414_v17 }
 0x2ed   :  { %v419_v18 = vpop.xlane.xlu1 %418 }
 0x2ee   :  { %4787 = vrcp.f32 %v419_v18 }
 0x2f1   :  { %v416_v19 = vpop.xlane.xlu1 %415 }
 0x2f2   :  { %4789 = vrcp.f32 %v416_v19 }
 0x2f8   :  { %v4788_v20 = vpop.eup %4787 }
 0x2f9   :  { %v423_v21 = vmul.f32 %v4788_v20, %v4784_v14 }
 0x2fb   :  { %v425_v23 = vpack.c.bf16 %v423_v21, %v423_v21 }
 0x2fc   :  { %v4790_v24 = vpop.eup %4789 }
 0x2fd   :  { %v422_v25 = vmul.f32 %v4790_v24, %v4786_v16  ;;  %4340 = vmatmul.mubr.msk.bf16.vlgmr.msra.gmra.mrb[12].mxu0 %vm401_vm4, %v425_v23 }
 0x2fe   :  { %4352 = vmatpush3.bf16.msra.mxu0 %v4741_v22  ;;  %4355 = vmatprep.mubr.msk.bf16.mxu0 %vm4880_vm0, %v4879_v1 }
 0x2ff   :  { %v424_v28 = vpack.c.bf16 %v422_v25, %v422_v25  ;;  %4353 = vmatprep.subr.bf16.mxu0 %v4879_v1 }
 0x301   :  { %4334 = vmatmul.mubr.msk.bf16.vlgmr.msra.gmra.mrb[8].mxu1 %vm401_vm4, %v424_v28 }
 0x302   :  { %4354 = vmatpush3.bf16.msra.mxu0 %v4742_v26  ;;  %4344 = vmatpush3.bf16.msra.mxu1 %v4743_v27 }
 0x303   :  { %4345 = vmatprep.subr.bf16.mxu1 %v4879_v1  ;;  %4347 = vmatprep.mubr.msk.bf16.mxu1 %vm4880_vm0, %v4879_v1 }
 0x304   :  { %4367 = vmatprep.subr.bf16.mxu0 %v4879_v1 }
 0x305   :  { %4356 = vmatmul.mubr.msk.bf16.vlgmr.msra.gmra.mrb[16].mxu0 %vm103_vm1, %v4977_v4 }
 0x306   :  { %4346 = vmatpush3.bf16.msra.mxu1 %v4744_v29  ;;  %4369 = vmatprep.mubr.msk.bf16.mxu0 %vm4880_vm0, %v4879_v1 }
 0x307   :  { %4359 = vmatprep.subr.bf16.mxu1 %v4879_v1 }
 0x309   :  { %4348 = vmatmul.mubr.msk.bf16.vlgmr.msra.gmra.mrb[12].mxu1 %vm103_vm1, %v4991_v8 }
 0x30a   :  { %4363 = vmatprep.mubr.msk.bf16.mxu1 %vm4880_vm0, %v4879_v1  ;;  %4360 = vmatpush3.bf16.msra.mxu1 %v4745_v30 }
 0x30b   :  { %4361 = vmatprep.subr.bf16.mxu1 %v4879_v1 }
 0x30e   :  { %4362 = vmatpush3.bf16.msra.mxu1 %v4746_v31 }
 0x30f   :  { %4373 = vmatprep.subr.bf16.mxu1 %v4879_v1 }
 0x311   :  { %4364 = vmatmul.mubr.msk.bf16.vlgmr.msra.gmra.mrb[16].mxu1 %vm103_vm1, %v5014_v11 }
 0x312   :  { %4375 = vmatprep.mubr.msk.bf16.mxu1 %vm4880_vm0, %v4879_v1 }
 0x3d0   :  { %v5098_v32 = vpop.f32.mrb[12].mxu0 }
 0x3d1   :  { %v4341_v33 = vpop.f32.mrb[13].mxu0 }
 0x3d2   :  { %v516_v34 = vpop.f32.mrb[14].mxu0 }
 0x3d3   :  { %v4342_v35 = vpop.f32.mrb[15].mxu0 }
 0x3d4   :  { %v5100_v36 = vpop.f32.mrb[8].mxu1 }
 0x3d5   :  { %v519_v37 = vpack.c.bf16 %v5098_v32, %v5100_v36  ;;  %v4335_v38 = vpop.f32.mrb[9].mxu1 }
 0x3d6   :  { %v470_v39 = vpop.f32.mrb[10].mxu1 }
 0x3d7   :  { %v4336_v41 = vpop.f32.mrb[11].mxu1 }
 0x3d8   :  { %v646_v42 = vpop.f32.mrb[16].mxu0 }
 0x3d9   :  { %v647_v43 = vadd.f32 %v3922_v40, %v646_v42  ;;  %v4357_v44 = vpop.f32.mrb[17].mxu0  ;;  %v3939_v42 = vld [vmem:[%s5715_s10 + $0x2] sm:$0x3] }
 0x3da   :  { %v649_v45 = vpop.f32.mrb[18].mxu0 }
 0x3db   :  { %v721_v47 = vpack.c.bf16 %v647_v43, %v647_v43  ;;  %v650_v48 = vadd.f32 %v3922_v40, %v649_v45  ;;  %v4358_v49 = vpop.f32.mrb[19].mxu0  ;;  %v520_v45 = vld [vmem:[%s5715_s10] sm:$0x3] }
 0x3dc   :  { %v580_v50 = vpop.f32.mrb[12].mxu1 }
 0x3dd   :  { %v729_v51 = vsel %vm308_vm2, %v721_v47, 0  ;;  %v722_v52 = vpack.c.bf16 %v650_v48, %v650_v48  ;;  %v581_v53 = vadd.f32 %v3913_v46, %v580_v50  ;;  %v4349_v55 = vpop.f32.mrb[13].mxu1  ;;  %v941_v48 = vsel %vm939_vm5, %v3939_v42, 0 }
 0x3de   :  { %4368 = vmatpush3.bf16.xpose.msra.mxu0 %v729_v51  ;;  %v583_v57 = vpop.f32.mrb[14].mxu1  ;;  %v988_v50 = vsel %vm939_vm5, %v520_v45, 0  ;;  %v4747_v51 = vld [vmem:[%s5710_s5 + $0x20] sm:$0xff]  }
 0x3df   :  { %v775_v58 = vsel %vm308_vm2, %v722_v52, 0  ;;  %v4350_v59 = vpop.f32.mrb[15].mxu1  ;;  %4379 = vmatprep.subr.bf16.mxu0 %v4879_v1  ;;  %v719_v60 = vpack.c.bf16 %v581_v53, %v581_v53  ;;  %v584_v61 = vadd.f32 %v3913_v46, %v583_v57  ;;  %v4748_v52 = vld [vmem:[%s5710_s5 + $0x28] sm:$0xff]   ;;  %v4749_v55 = vld [vmem:[%s5709_s4 + $0x20] sm:$0xff]  }
 0x3e0   :  { %4374 = vmatpush3.bf16.xpose.msra.mxu1 %v775_v58 }
 0x3e1   :  { %4385 = vmatprep.subr.bf16.mxu1 %v4879_v1  ;;  %v720_v62 = vpack.c.bf16 %v584_v61, %v584_v61 }
 0x3e4   :  { %v712_v0 = vpop.f32.mrb[16].mxu1 }
 0x3e5   :  { %4370 = vmatmul.mubr.msk.bf16.vlgmr.msra.gmra.mrb[20].mxu0 %vm308_vm2, %v719_v60  ;;  %v713_v2 = vadd.f32 %v3931_v63, %v712_v0  ;;  %v4365_v3 = vpop.f32.mrb[17].mxu1  ;;  %v4751_v0 = vld [vmem:[%s5711_s6 + $0x20] sm:$0xff]  }
 0x3e6   :  { %4381 = vmatprep.mubr.msk.bf16.mxu0 %vm4880_vm0, %v4879_v1  ;;  %v715_v5 = vpop.f32.mrb[18].mxu1 }
 0x3e7   :  { %4376 = vmatmul.mubr.msk.bf16.vlgmr.msra.gmra.mrb[20].mxu1 %vm308_vm2, %v720_v62  ;;  %v723_v6 = vpack.c.bf16 %v713_v2, %v713_v2  ;;  %v716_v7 = vadd.f32 %v3931_v63, %v715_v5  ;;  %v4366_v9 = vpop.f32.mrb[19].mxu1  ;;  %v4750_v62 = vld [vmem:[%s5709_s4 + $0x28] sm:$0xff]  }
 0x3e8   :  { %4387 = vmatprep.mubr.msk.bf16.mxu1 %vm4880_vm0, %v4879_v1 }
 0x3e9   :  { %v845_v10 = vsel %vm429_vm3, %v723_v6, 0  ;;  %v724_v12 = vpack.c.bf16 %v716_v7, %v716_v7  ;;  %v4752_v6 = vld [vmem:[%s5711_s6 + $0x28] sm:$0xff]   ;;  %v3956_v7 = vld [vmem:[%s5713_s8 + $0x2] ss:$0 sm:$0xff] }
 0x3ea   :  { %4380 = vmatpush3.bf16.msra.mxu0 %v845_v10 }
 0x3eb   :  { %v891_v13 = vsel %vm429_vm3, %v724_v12, 0  ;;  %4391 = vmatprep.subr.bf16.mxu0 %v4879_v1 }
 0x3ec   :  { %4386 = vmatpush3.bf16.msra.mxu1 %v891_v13 }
 0x3ed   :  { %4397 = vmatprep.subr.bf16.mxu1 %v4879_v1 }
 0x4b8   :  { %v765_v14 = vpop.f32.mrb[20].mxu0 }
 0x4b9   :  { %v766_v15 = vadd.f32 %v765_v14, %v5048_v56  ;;  %v4371_v16 = vpop.f32.mrb[21].mxu0 }
 0x4ba   :  { %v768_v17 = vpop.f32.mrb[22].mxu0  ;;  %v811_v18 = vpop.f32.mrb[20].mxu1 }
 0x4bb   :  { %v812_v19 = vadd.f32 %v811_v18, %v5046_v54  ;;  %v4372_v20 = vpop.f32.mrb[23].mxu0  ;;  %v4377_v21 = vpop.f32.mrb[21].mxu1  ;;  %v817_v22 = vsel %vm401_vm4, %v766_v15, -inf }
 0x4bc   :  { %v814_v23 = vpop.f32.mrb[22].mxu1  ;;  %818 = vmax.xlane.f32.xlu0 %v817_v22 }
 0x4bd   :  { %v4378_v24 = vpop.f32.mrb[23].mxu1  ;;  %v820_v25 = vsel %vm401_vm4, %v812_v19, -inf }
 0x4be   :  { %821 = vmax.xlane.f32.xlu1 %v820_v25 }
 0x549   :  { %v819_v26 = vpop.xlane.xlu0 %818 }
 0x54a   :  { %v823_v27 = vsub.f32 %v766_v15, %v819_v26  ;;  %v3947_v26 = vld [vmem:[%s5712_s7 + $0x2] ss:$0 sm:$0xff] }
 0x54b   :  { %v822_v28 = vpop.xlane.xlu1 %821 }
 0x54c   :  { %v825_v29 = vmul.f32 1.442695, %v823_v27  ;;  %v824_v30 = vsub.f32 %v812_v19, %v822_v28 }
 0x54e   :  { %4791 = vpow2.f32 %v825_v29  ;;  %v827_v31 = vmul.f32 1.442695, %v824_v30 }
 0x550   :  { %4793 = vpow2.f32 %v827_v31 }
 0x558   :  { %v4792_v33 = vpop.eup %4791 }
 0x559   :  { %v829_v34 = vsel %vm401_vm4, %v4792_v33, 0.0 }
 0x55a   :  { %v4794_v35 = vpop.eup %4793  ;;  %830 = vadd.xlane.f32.xlu0 %v829_v34 }
 0x55b   :  { %v832_v38 = vsel %vm401_vm4, %v4794_v35, 0.0 }
 0x55c   :  { %833 = vadd.xlane.f32.xlu1 %v832_v38  ;;  %v3965_v38 = vld [vmem:[%s5714_s9 + $0x2] ss:$0 sm:$0xff] }
 0x5e7   :  { %v831_v39 = vpop.xlane.xlu0 %830 }
 0x5e8   :  { %4795 = vrcp.f32 %v831_v39 }
 0x5e9   :  { %v834_v40 = vpop.xlane.xlu1 %833 }
 0x5ea   :  { %4797 = vrcp.f32 %v834_v40 }
 0x5f2   :  { %v4796_v41 = vpop.eup %4795 }
 0x5f3   :  { %v837_v43 = vmul.f32 %v4796_v41, %v4792_v33 }
 0x5f4   :  { %v4798_v44 = vpop.eup %4797 }
 0x5f5   :  { %v838_v46 = vmul.f32 %v4798_v44, %v4794_v35  ;;  %v839_v47 = vpack.c.bf16 %v837_v43, %v837_v43 }
 0x5f7   :  { %4382 = vmatmul.mubr.msk.bf16.vlgmr.msra.gmra.mrb[24].mxu0 %vm401_vm4, %v839_v47  ;;  %v840_v49 = vpack.c.bf16 %v838_v46, %v838_v46 }
 0x5f8   :  { %4392 = vmatpush3.bf16.msra.mxu0 %v941_v48  ;;  %4393 = vmatprep.mubr.msk.bf16.mxu0 %vm4880_vm0, %v4879_v1 }
 0x5f9   :  { %4388 = vmatmul.mubr.msk.bf16.vlgmr.msra.gmra.mrb[24].mxu1 %vm401_vm4, %v840_v49  ;;  %4403 = vmatprep.subr.bf16.mxu0 %v4879_v1 }
 0x5fa   :  { %4398 = vmatpush3.bf16.msra.mxu1 %v988_v50  ;;  %4399 = vmatprep.mubr.msk.bf16.mxu1 %vm4880_vm0, %v4879_v1 }
 0x5fb   :  { %4411 = vmatprep.subr.bf16.mxu1 %v4879_v1 }
 0x601   :  { %4400 = vmatmul.mubr.msk.bf16.vlgmr.msra.gmra.mrb[28].mxu1 %vm308_vm2, %v519_v37 }
 0x602   :  { %4412 = vmatpush3.bf16.msra.mxu1 %v4747_v51  ;;  %4415 = vmatprep.mubr.msk.bf16.mxu1 %vm4880_vm0, %v4879_v1 }
 0x603   :  { %4413 = vmatprep.subr.bf16.mxu1 %v4879_v1 }
 0x606   :  { %4414 = vmatpush3.bf16.msra.mxu1 %v4748_v52 }
 0x607   :  { %4427 = vmatprep.subr.bf16.mxu1 %v4879_v1 }
 0x609   :  { %4416 = vmatmul.mubr.msk.bf16.vlgmr.msra.gmra.mrb[32].mxu1 %vm103_vm1, %v4977_v4 }
 0x60a   :  { %4429 = vmatprep.mubr.msk.bf16.mxu1 %vm4880_vm0, %v4879_v1 }
 0x6ca   :  { %v881_v32 = vpop.f32.mrb[24].mxu0 }
 0x6cb   :  { %v4383_v36 = vpop.f32.mrb[25].mxu0 }
 0x6cc   :  { %v884_v37 = vpop.f32.mrb[26].mxu0  ;;  %v927_v53 = vpop.f32.mrb[24].mxu1 }
 0x6cd   :  { %v933_v57 = vpack.c.bf16 %v927_v53, %v881_v32  ;;  %v4384_v58 = vpop.f32.mrb[27].mxu0  ;;  %v4389_v59 = vpop.f32.mrb[25].mxu1 }
 0x6ce   :  { %v930_v60 = vpop.f32.mrb[26].mxu1 }
 0x6cf   :  { %v4390_v61 = vpop.f32.mrb[27].mxu1  ;;  %4394 = vmatmul.mubr.msk.bf16.vlgmr.msra.gmra.mrb[28].mxu0 %vm308_vm2, %v933_v57 }
 0x6d0   :  { %4404 = vmatpush3.bf16.msra.mxu0 %v4749_v55  ;;  %4407 = vmatprep.mubr.msk.bf16.mxu0 %vm4880_vm0, %v4879_v1 }
 0x6d1   :  { %4405 = vmatprep.subr.bf16.mxu0 %v4879_v1 }
 0x6d4   :  { %v1024_v63 = vpop.f32.mrb[28].mxu1  ;;  %4406 = vmatpush3.bf16.msra.mxu0 %v4750_v62 }
 0x6d5   :  { %v4401_v2 = vpop.f32.mrb[29].mxu1  ;;  %4419 = vmatprep.subr.bf16.mxu0 %v4879_v1 }
 0x6d6   :  { %v1027_v3 = vpop.f32.mrb[30].mxu1 }
 0x6d7   :  { %v4402_v5 = vpop.f32.mrb[31].mxu1  ;;  %4408 = vmatmul.mubr.msk.bf16.vlgmr.msra.gmra.mrb[32].mxu0 %vm103_vm1, %v4991_v8 }
 0x6d8   :  { %4420 = vmatpush3.bf16.msra.mxu0 %v4751_v0  ;;  %4423 = vmatprep.mubr.msk.bf16.mxu0 %vm4880_vm0, %v4879_v1 }
 0x6d9   :  { %4421 = vmatprep.subr.bf16.mxu0 %v4879_v1 }
 0x6dc   :  { %v1156_v9 = vpop.f32.mrb[32].mxu1  ;;  %4422 = vmatpush3.bf16.msra.mxu0 %v4752_v6 }
 0x6dd   :  { %v1157_v10 = vadd.f32 %v3956_v7, %v1156_v9  ;;  %v4417_v12 = vpop.f32.mrb[33].mxu1  ;;  %4433 = vmatprep.subr.bf16.mxu0 %v4879_v1 }
 0x6de   :  { %v1159_v13 = vpop.f32.mrb[34].mxu1 }
 0x6df   :  { %v1231_v14 = vpack.c.bf16 %v1157_v10, %v1157_v10  ;;  %v1160_v15 = vadd.f32 %v3956_v7, %v1159_v13  ;;  %v4418_v16 = vpop.f32.mrb[35].mxu1  ;;  %4424 = vmatmul.mubr.msk.bf16.vlgmr.msra.gmra.mrb[36].mxu0 %vm103_vm1, %v5014_v11  ;;  %v3973_v13 = vld [vmem:[%s5715_s10 + $0x4] sm:$0x3] }
 0x6e0   :  { %4435 = vmatprep.mubr.msk.bf16.mxu0 %vm4880_vm0, %v4879_v1 }
 0x6e1   :  { %v1239_v17 = vsel %vm308_vm2, %v1231_v14, 0  ;;  %v1232_v18 = vpack.c.bf16 %v1160_v15, %v1160_v15 }
 0x6e2   :  { %4428 = vmatpush3.bf16.xpose.msra.mxu1 %v1239_v17 }
 0x6e3   :  { %v1285_v19 = vsel %vm308_vm2, %v1232_v18, 0  ;;  %4439 = vmatprep.subr.bf16.mxu1 %v4879_v1  ;;  %v1450_v18 = vsel %vm939_vm5, %v3973_v13, 0 }
 0x6e5   :  { %4434 = vmatpush3.bf16.xpose.msra.mxu0 %v1285_v19 }
 0x6e6   :  { %4445 = vmatprep.subr.bf16.mxu0 %v4879_v1 }
 0x7a2   :  { %v977_v20 = vpop.f32.mrb[28].mxu0 }
 0x7a3   :  { %v5201_v21 = vadd.f32 %v1024_v63, %v977_v20  ;;  %v4395_v22 = vpop.f32.mrb[29].mxu0  ;;  %v4755_v20 = vld [vmem:[%s5709_s4 + $0x30] sm:$0xff]  }
 0x7a4   :  { %v980_v23 = vpop.f32.mrb[30].mxu0  ;;  %v4756_v22 = vld [vmem:[%s5709_s4 + $0x38] sm:$0xff]  }
 0x7a5   :  { %v5203_v24 = vadd.f32 %v1027_v3, %v980_v23  ;;  %v4396_v25 = vpop.f32.mrb[31].mxu0 }
 0x7aa   :  { %v1090_v27 = vpop.f32.mrb[32].mxu0 }
 0x7ab   :  { %v1091_v28 = vadd.f32 %v3947_v26, %v1090_v27  ;;  %v4409_v29 = vpop.f32.mrb[33].mxu0 }
 0x7ac   :  { %v1093_v30 = vpop.f32.mrb[34].mxu0 }
 0x7ad   :  { %v1229_v31 = vpack.c.bf16 %v1091_v28, %v1091_v28  ;;  %v1094_v33 = vadd.f32 %v3947_v26, %v1093_v30  ;;  %v4410_v34 = vpop.f32.mrb[35].mxu0  ;;  %v4753_v28 = vld [vmem:[%s5710_s5 + $0x30] sm:$0xff]  }
 0x7af   :  { %v1230_v35 = vpack.c.bf16 %v1094_v33, %v1094_v33  ;;  %4430 = vmatmul.mubr.msk.bf16.vlgmr.msra.gmra.mrb[36].mxu1 %vm308_vm2, %v1229_v31 }
 0x7b0   :  { %4441 = vmatprep.mubr.msk.bf16.mxu1 %vm4880_vm0, %v4879_v1 }
 0x7b1   :  { %4436 = vmatmul.mubr.msk.bf16.vlgmr.msra.gmra.mrb[40].mxu0 %vm308_vm2, %v1230_v35  ;;  %v4754_v35 = vld [vmem:[%s5710_s5 + $0x38] sm:$0xff]  }
 0x7b2   :  { %v1222_v39 = vpop.f32.mrb[36].mxu0  ;;  %4447 = vmatprep.mubr.msk.bf16.mxu0 %vm4880_vm0, %v4879_v1 }
 0x7b3   :  { %v1223_v40 = vadd.f32 %v3965_v38, %v1222_v39  ;;  %v4425_v41 = vpop.f32.mrb[37].mxu0  ;;  %v4758_v39 = vld [vmem:[%s5711_s6 + $0x38] sm:$0xff]  }
 0x7b4   :  { %v1225_v42 = vpop.f32.mrb[38].mxu0 }
 0x7b5   :  { %v1233_v43 = vpack.c.bf16 %v1223_v40, %v1223_v40  ;;  %v1226_v44 = vadd.f32 %v3965_v38, %v1225_v42  ;;  %v4426_v45 = vpop.f32.mrb[39].mxu0  ;;  %v4757_v38 = vld [vmem:[%s5711_s6 + $0x30] sm:$0xff]  }
 0x7b7   :  { %v1355_v46 = vsel %vm429_vm3, %v1233_v43, 0  ;;  %v1234_v47 = vpack.c.bf16 %v1226_v44, %v1226_v44 }
 0x7b8   :  { %4440 = vmatpush3.bf16.msra.mxu1 %v1355_v46 }
 0x7b9   :  { %v1401_v48 = vsel %vm429_vm3, %v1234_v47, 0  ;;  %4451 = vmatprep.subr.bf16.mxu1 %v4879_v1 }
 0x7ba   :  { %4446 = vmatpush3.bf16.msra.mxu0 %v1401_v48 }
 0x7bb   :  { %4457 = vmatprep.subr.bf16.mxu0 %v4879_v1 }
 0x882   :  { %v1275_v49 = vpop.f32.mrb[36].mxu1 }
 0x883   :  { %v1276_v50 = vadd.f32 %v1275_v49, %v5048_v56  ;;  %v4431_v51 = vpop.f32.mrb[37].mxu1 }
 0x884   :  { %v1278_v52 = vpop.f32.mrb[38].mxu1  ;;  %v1321_v32 = vpop.f32.mrb[40].mxu0 }
 0x885   :  { %v1322_v36 = vadd.f32 %v1321_v32, %v5046_v54  ;;  %v4432_v37 = vpop.f32.mrb[39].mxu1  ;;  %v4437_v53 = vpop.f32.mrb[41].mxu0  ;;  %v1327_v55 = vsel %vm401_vm4, %v1276_v50, -inf  ;;  %v3980_v32 = vld [vmem:[%s5712_s7 + $0x3] ss:$0 sm:$0xff] }
 0x886   :  { %1328 = vmax.xlane.f32.xlu0 %v1327_v55  ;;  %v1324_v57 = vpop.f32.mrb[42].mxu0 }
 0x887   :  { %v4438_v58 = vpop.f32.mrb[43].mxu0  ;;  %v1330_v59 = vsel %vm401_vm4, %v1322_v36, -inf }
 0x888   :  { %1331 = vmax.xlane.f32.xlu1 %v1330_v59 }
 0x913   :  { %v1329_v60 = vpop.xlane.xlu0 %1328 }
 0x914   :  { %v1333_v61 = vsub.f32 %v1276_v50, %v1329_v60 }
 0x915   :  { %v1332_v62 = vpop.xlane.xlu1 %1331 }
 0x916   :  { %v1335_v63 = vmul.f32 1.442695, %v1333_v61  ;;  %v1334_v0 = vsub.f32 %v1322_v36, %v1332_v62  ;;  %v3998_v61 = vld [vmem:[%s5714_s9 + $0x3] ss:$0 sm:$0xff] }
 0x918   :  { %4799 = vpow2.f32 %v1335_v63  ;;  %v1337_v2 = vmul.f32 1.442695, %v1334_v0 }
 0x91a   :  { %4801 = vpow2.f32 %v1337_v2 }
 0x922   :  { %v4800_v3 = vpop.eup %4799 }
 0x923   :  { %v1339_v5 = vsel %vm401_vm4, %v4800_v3, 0.0 }
 0x924   :  { %v4802_v6 = vpop.eup %4801  ;;  %1340 = vadd.xlane.f32.xlu0 %v1339_v5 }
 0x925   :  { %v1342_v7 = vsel %vm401_vm4, %v4802_v6, 0.0 }
 0x926   :  { %1343 = vadd.xlane.f32.xlu1 %v1342_v7 }
 0x9b1   :  { %v1341_v9 = vpop.xlane.xlu0 %1340 }
 0x9b2   :  { %4803 = vrcp.f32 %v1341_v9 }
 0x9b3   :  { %v1344_v10 = vpop.xlane.xlu1 %1343 }
 0x9b4   :  { %4805 = vrcp.f32 %v1344_v10 }
 0x9bc   :  { %v4804_v12 = vpop.eup %4803 }
 0x9bd   :  { %v1347_v14 = vmul.f32 %v4804_v12, %v4800_v3 }
 0x9be   :  { %v4806_v15 = vpop.eup %4805 }
 0x9bf   :  { %v1348_v16 = vmul.f32 %v4806_v15, %v4802_v6  ;;  %v1349_v17 = vpack.c.bf16 %v1347_v14, %v1347_v14 }
 0x9c1   :  { %4442 = vmatmul.mubr.msk.bf16.vlgmr.msra.gmra.mrb[40].mxu1 %vm401_vm4, %v1349_v17  ;;  %v1350_v19 = vpack.c.bf16 %v1348_v16, %v1348_v16 }
 0x9c2   :  { %4452 = vmatpush3.bf16.msra.mxu1 %v1450_v18  ;;  %4453 = vmatprep.mubr.msk.bf16.mxu1 %vm4880_vm0, %v4879_v1 }
 0x9c3   :  { %4448 = vmatmul.mubr.msk.bf16.vlgmr.msra.gmra.mrb[44].mxu0 %vm401_vm4, %v1350_v19  ;;  %4465 = vmatprep.subr.bf16.mxu1 %v4879_v1 }
 0x9c4   :  { %4461 = vmatprep.mubr.msk.bf16.mxu0 %vm4880_vm0, %v4879_v1  ;;  %4458 = vmatpush3.bf16.msra.mxu0 %v4755_v20 }
 0x9c5   :  { %4459 = vmatprep.subr.bf16.mxu0 %v4879_v1 }
 0x9c8   :  { %4460 = vmatpush3.bf16.msra.mxu0 %v4756_v22 }
 0x9c9   :  { %4473 = vmatprep.subr.bf16.mxu0 %v4879_v1 }
 0x9cb   :  { %4462 = vmatmul.mubr.msk.bf16.vlgmr.msra.gmra.mrb[48].mxu0 %vm103_vm1, %v4991_v8 }
 0x9cc   :  { %4477 = vmatprep.mubr.msk.bf16.mxu0 %vm4880_vm0, %v4879_v1  ;;  %4474 = vmatpush3.bf16.msra.mxu0 %v4757_v38 }
 0x9cd   :  { %4475 = vmatprep.subr.bf16.mxu0 %v4879_v1 }
 0x9d0   :  { %4476 = vmatpush3.bf16.msra.mxu0 %v4758_v39 }
 0x9d1   :  { %4487 = vmatprep.subr.bf16.mxu0 %v4879_v1 }
 0x9d3   :  { %4478 = vmatmul.mubr.msk.bf16.vlgmr.msra.gmra.mrb[52].mxu0 %vm103_vm1, %v5014_v11  ;;  %v3989_v11 = vld [vmem:[%s5713_s8 + $0x3] ss:$0 sm:$0xff] }
 0x9d4   :  { %4489 = vmatprep.mubr.msk.bf16.mxu0 %vm4880_vm0, %v4879_v1 }
 0xa94   :  { %v1391_v23 = vpop.f32.mrb[40].mxu1 }
 0xa95   :  { %v4443_v25 = vpop.f32.mrb[41].mxu1 }
 0xa96   :  { %v1394_v26 = vpop.f32.mrb[42].mxu1  ;;  %v1437_v27 = vpop.f32.mrb[44].mxu0 }
 0xa97   :  { %v1443_v29 = vpack.c.bf16 %v1437_v27, %v1391_v23  ;;  %v4444_v30 = vpop.f32.mrb[43].mxu1  ;;  %v4449_v31 = vpop.f32.mrb[45].mxu0 }
 0xa98   :  { %v1440_v33 = vpop.f32.mrb[46].mxu0 }
 0xa99   :  { %v4450_v34 = vpop.f32.mrb[47].mxu0  ;;  %4454 = vmatmul.mubr.msk.bf16.vlgmr.msra.gmra.mrb[44].mxu1 %vm308_vm2, %v1443_v29 }
 0xa9a   :  { %4466 = vmatpush3.bf16.msra.mxu1 %v4753_v28  ;;  %4469 = vmatprep.mubr.msk.bf16.mxu1 %vm4880_vm0, %v4879_v1 }
 0xa9b   :  { %4467 = vmatprep.subr.bf16.mxu1 %v4879_v1 }
 0xa9e   :  { %4468 = vmatpush3.bf16.msra.mxu1 %v4754_v35 }
 0xa9f   :  { %4481 = vmatprep.subr.bf16.mxu1 %v4879_v1 }
 0xaa1   :  { %4470 = vmatmul.mubr.msk.bf16.vlgmr.msra.gmra.mrb[48].mxu1 %vm103_vm1, %v4977_v4  ;;  %v1554_v4 = vpop.f32.mrb[48].mxu0 }
 0xaa2   :  { %4483 = vmatprep.mubr.msk.bf16.mxu1 %vm4880_vm0, %v4879_v1  ;;  %v4463_v40 = vpop.f32.mrb[49].mxu0  ;;  %v1555_v55 = vadd.f32 %v3980_v32, %v1554_v4 }
 0xaa3   :  { %v1557_v41 = vpop.f32.mrb[50].mxu0 }
 0xaa4   :  { %v4464_v42 = vpop.f32.mrb[51].mxu0  ;;  %v1693_v58 = vpack.c.bf16 %v1555_v55, %v1555_v55  ;;  %v1558_v59 = vadd.f32 %v3980_v32, %v1557_v41  ;;  %v4006_v41 = vld [vmem:[%s5715_s10 + $0x6] sm:$0x3] }
 0xaa6   :  { %v1694_v60 = vpack.c.bf16 %v1558_v59, %v1558_v59  ;;  %v1686_v62 = vpop.f32.mrb[52].mxu0  ;;  %v5349_v59 = vld [vmem:[%s5706_s1] sm:$0xff]  }
 0xaa7   :  { %v1687_v63 = vadd.f32 %v3998_v61, %v1686_v62  ;;  %v4479_v0 = vpop.f32.mrb[53].mxu0  ;;  %v5366_v62 = vld [vmem:[%s5707_s2] sm:$0xff]  }
 0xaa8   :  { %v1689_v2 = vpop.f32.mrb[54].mxu0 }
 0xaa9   :  { %v1697_v3 = vpack.c.bf16 %v1687_v63, %v1687_v63  ;;  %v1690_v5 = vadd.f32 %v3998_v61, %v1689_v2  ;;  %v4480_v6 = vpop.f32.mrb[55].mxu0  ;;  %v4764_v61 = vld [vmem:[%s5711_s6 + $0x48] sm:$0xff]  }
 0xaab   :  { %v1819_v7 = vsel %vm429_vm3, %v1697_v3, 0  ;;  %v1698_v9 = vpack.c.bf16 %v1690_v5, %v1690_v5 }
 0xaad   :  { %v1865_v10 = vsel %vm429_vm3, %v1698_v9, 0 }
 0xb6c   :  { %v1486_v43 = vpop.f32.mrb[44].mxu1 }
 0xb6d   :  { %v5278_v44 = vadd.f32 %v1486_v43, %v5201_v21  ;;  %v4455_v45 = vpop.f32.mrb[45].mxu1 }
 0xb6e   :  { %v1489_v46 = vpop.f32.mrb[46].mxu1 }
 0xb6f   :  { %v5281_v47 = vadd.f32 %v1489_v46, %v5203_v24  ;;  %v4456_v48 = vpop.f32.mrb[47].mxu1 }
 0xb70   :  { %v1914_v48 = vsel %vm939_vm5, %v4006_v41, 0 }
 0xb74   :  { %v1620_v49 = vpop.f32.mrb[48].mxu1 }
 0xb75   :  { %v1621_v50 = vadd.f32 %v3989_v11, %v1620_v49  ;;  %v4471_v51 = vpop.f32.mrb[49].mxu1  ;;  %v4761_v49 = vld [vmem:[%s5709_s4 + $0x40] sm:$0xff]  }
 0xb76   :  { %v1623_v52 = vpop.f32.mrb[50].mxu1 }
 0xb77   :  { %v1695_v21 = vpack.c.bf16 %v1621_v50, %v1621_v50  ;;  %v1624_v36 = vadd.f32 %v3989_v11, %v1623_v52  ;;  %v4472_v37 = vpop.f32.mrb[51].mxu1  ;;  %v4762_v50 = vld [vmem:[%s5709_s4 + $0x48] sm:$0xff]  }
 0xb79   :  { %v1703_v53 = vsel %vm308_vm2, %v1695_v21, 0  ;;  %v1696_v24 = vpack.c.bf16 %v1624_v36, %v1624_v36  ;;  %v4759_v36 = vld [vmem:[%s5710_s5 + $0x40] sm:$0xff]  }
 0xb7a   :  { %4482 = vmatpush3.bf16.xpose.msra.mxu1 %v1703_v53 }
 0xb7b   :  { %v1749_v57 = vsel %vm308_vm2, %v1696_v24, 0  ;;  %4493 = vmatprep.subr.bf16.mxu1 %v4879_v1 }
 0xb7c   :  { %4488 = vmatpush3.bf16.xpose.msra.mxu0 %v1749_v57 }
 0xb7d   :  { %4499 = vmatprep.subr.bf16.mxu0 %v4879_v1 }
 0xb81   :  { %4484 = vmatmul.mubr.msk.bf16.vlgmr.msra.gmra.mrb[52].mxu1 %vm308_vm2, %v1693_v58  ;;  %v4760_v58 = vld [vmem:[%s5710_s5 + $0x48] sm:$0xff]  }
 0xb82   :  { %4495 = vmatprep.mubr.msk.bf16.mxu1 %vm4880_vm0, %v4879_v1  ;;  %4494 = vmatpush3.bf16.msra.mxu1 %v1819_v7 }
 0xb83   :  { %4490 = vmatmul.mubr.msk.bf16.vlgmr.msra.gmra.mrb[56].mxu0 %vm308_vm2, %v1694_v60  ;;  %4505 = vmatprep.subr.bf16.mxu1 %v4879_v1  ;;  %v4763_v60 = vld [vmem:[%s5711_s6 + $0x40] sm:$0xff]  }
 0xb84   :  { %4501 = vmatprep.mubr.msk.bf16.mxu0 %vm4880_vm0, %v4879_v1  ;;  %4500 = vmatpush3.bf16.msra.mxu0 %v1865_v10 }
 0xb85   :  { %4511 = vmatprep.subr.bf16.mxu0 %v4879_v1 }
 0xc54   :  { %v1739_v12 = vpop.f32.mrb[52].mxu1 }
 0xc55   :  { %v1740_v13 = vadd.f32 %v1739_v12, %v5048_v56  ;;  %v4485_v14 = vpop.f32.mrb[53].mxu1 }
 0xc56   :  { %v1742_v15 = vpop.f32.mrb[54].mxu1  ;;  %v1785_v16 = vpop.f32.mrb[56].mxu0 }
 0xc57   :  { %v1786_v17 = vadd.f32 %v1785_v16, %v5046_v54  ;;  %v4486_v18 = vpop.f32.mrb[55].mxu1  ;;  %v4491_v19 = vpop.f32.mrb[57].mxu0  ;;  %v1791_v20 = vsel %vm401_vm4, %v1740_v13, -inf }
 0xc58   :  { %1792 = vmax.xlane.f32.xlu0 %v1791_v20  ;;  %v1788_v22 = vpop.f32.mrb[58].mxu0  ;;  %v4013_v18 = vld [vmem:[%s5712_s7 + $0x4] ss:$0 sm:$0xff] }
 0xc59   :  { %v4492_v23 = vpop.f32.mrb[59].mxu0  ;;  %v1794_v25 = vsel %vm401_vm4, %v1786_v17, -inf }
 0xc5a   :  { %1795 = vmax.xlane.f32.xlu1 %v1794_v25 }
 0xce5   :  { %v1793_v26 = vpop.xlane.xlu0 %1792 }
 0xce6   :  { %v1797_v27 = vsub.f32 %v1740_v13, %v1793_v26  ;;  %v4022_v13 = vld [vmem:[%s5713_s8 + $0x4] ss:$0 sm:$0xff] }
 0xce7   :  { %v1796_v28 = vpop.xlane.xlu1 %1795 }
 0xce8   :  { %v1799_v29 = vmul.f32 1.442695, %v1797_v27  ;;  %v1798_v30 = vsub.f32 %v1786_v17, %v1796_v28 }
 0xcea   :  { %4807 = vpow2.f32 %v1799_v29  ;;  %v1801_v31 = vmul.f32 1.442695, %v1798_v30  ;;  %v4031_v29 = vld [vmem:[%s5714_s9 + $0x4] ss:$0 sm:$0xff] }
 0xcec   :  { %4809 = vpow2.f32 %v1801_v31 }
 0xcf4   :  { %v4808_v33 = vpop.eup %4807 }
 0xcf5   :  { %v1803_v34 = vsel %vm401_vm4, %v4808_v33, 0.0 }
 0xcf6   :  { %v4810_v35 = vpop.eup %4809  ;;  %1804 = vadd.xlane.f32.xlu0 %v1803_v34 }
 0xcf7   :  { %v1806_v38 = vsel %vm401_vm4, %v4810_v35, 0.0 }
 0xcf8   :  { %1807 = vadd.xlane.f32.xlu1 %v1806_v38 }
 0xd83   :  { %v1805_v39 = vpop.xlane.xlu0 %1804 }
 0xd84   :  { %4811 = vrcp.f32 %v1805_v39 }
 0xd85   :  { %v1808_v4 = vpop.xlane.xlu1 %1807 }
 0xd86   :  { %4813 = vrcp.f32 %v1808_v4 }
 0xd8e   :  { %v4812_v40 = vpop.eup %4811 }
 0xd8f   :  { %v1811_v42 = vmul.f32 %v4812_v40, %v4808_v33 }
 0xd90   :  { %v4814_v43 = vpop.eup %4813 }
 0xd91   :  { %v1812_v45 = vmul.f32 %v4814_v43, %v4810_v35  ;;  %v1813_v46 = vpack.c.bf16 %v1811_v42, %v1811_v42 }
 0xd93   :  { %4496 = vmatmul.mubr.msk.bf16.vlgmr.msra.gmra.mrb[56].mxu1 %vm401_vm4, %v1813_v46  ;;  %v1814_v11 = vpack.c.bf16 %v1812_v45, %v1812_v45 }
 0xd94   :  { %4506 = vmatpush3.bf16.msra.mxu1 %v1914_v48  ;;  %4507 = vmatprep.mubr.msk.bf16.mxu1 %vm4880_vm0, %v4879_v1 }
 0xd95   :  { %4502 = vmatmul.mubr.msk.bf16.vlgmr.msra.gmra.mrb[60].mxu0 %vm401_vm4, %v1814_v11  ;;  %4519 = vmatprep.subr.bf16.mxu1 %v4879_v1 }
 0xd96   :  { %4515 = vmatprep.mubr.msk.bf16.mxu0 %vm4880_vm0, %v4879_v1  ;;  %4512 = vmatpush3.bf16.msra.mxu0 %v4761_v49 }
 0xd97   :  { %4513 = vmatprep.subr.bf16.mxu0 %v4879_v1 }
 0xd9a   :  { %4514 = vmatpush3.bf16.msra.mxu0 %v4762_v50 }
 0xd9b   :  { %4527 = vmatprep.subr.bf16.mxu0 %v4879_v1 }
 0xd9d   :  { %4516 = vmatmul.mubr.msk.bf16.vlgmr.msra.gmra.mrb[64].mxu0 %vm103_vm1, %v4991_v8 }
 0xd9e   :  { %4531 = vmatprep.mubr.msk.bf16.mxu0 %vm4880_vm0, %v4879_v1  ;;  %4528 = vmatpush3.bf16.msra.mxu0 %v4763_v60 }
 0xd9f   :  { %4529 = vmatprep.subr.bf16.mxu0 %v4879_v1 }
 0xda2   :  { %4530 = vmatpush3.bf16.msra.mxu0 %v4764_v61 }
 0xda3   :  { %4541 = vmatprep.subr.bf16.mxu0 %v4879_v1 }
 0xda5   :  { %4532 = vmatmul.mubr.msk.bf16.vlgmr.msra.gmra.mrb[68].mxu0 %vm103_vm1, %v5366_v62 }
 0xda6   :  { %4543 = vmatprep.mubr.msk.bf16.mxu0 %vm4880_vm0, %v4879_v1 }
 0xe66   :  { %v1855_v51 = vpop.f32.mrb[56].mxu1 }
 0xe67   :  { %v4497_v52 = vpop.f32.mrb[57].mxu1 }
 0xe68   :  { %v1858_v32 = vpop.f32.mrb[58].mxu1  ;;  %v1901_v21 = vpop.f32.mrb[60].mxu0 }
 0xe69   :  { %v1907_v37 = vpack.c.bf16 %v1901_v21, %v1855_v51  ;;  %v4498_v53 = vpop.f32.mrb[59].mxu1  ;;  %v4503_v24 = vpop.f32.mrb[61].mxu0 }
 0xe6a   :  { %v1904_v55 = vpop.f32.mrb[62].mxu0 }
 0xe6b   :  { %v4504_v57 = vpop.f32.mrb[63].mxu0  ;;  %4508 = vmatmul.mubr.msk.bf16.vlgmr.msra.gmra.mrb[60].mxu1 %vm308_vm2, %v1907_v37 }
 0xe6c   :  { %4520 = vmatpush3.bf16.msra.mxu1 %v4759_v36  ;;  %4523 = vmatprep.mubr.msk.bf16.mxu1 %vm4880_vm0, %v4879_v1 }
 0xe6d   :  { %4521 = vmatprep.subr.bf16.mxu1 %v4879_v1 }
 0xe70   :  { %4522 = vmatpush3.bf16.msra.mxu1 %v4760_v58  ;;  %v2018_v63 = vpop.f32.mrb[64].mxu0 }
 0xe71   :  { %4535 = vmatprep.subr.bf16.mxu1 %v4879_v1  ;;  %v4517_v0 = vpop.f32.mrb[65].mxu0  ;;  %v2019_v23 = vadd.f32 %v4013_v18, %v2018_v63 }
 0xe72   :  { %v2021_v2 = vpop.f32.mrb[66].mxu0 }
 0xe73   :  { %4524 = vmatmul.mubr.msk.bf16.vlgmr.msra.gmra.mrb[64].mxu1 %vm103_vm1, %v5349_v59  ;;  %v4518_v3 = vpop.f32.mrb[67].mxu0  ;;  %v2157_v26 = vpack.c.bf16 %v2019_v23, %v2019_v23  ;;  %v2022_v27 = vadd.f32 %v4013_v18, %v2021_v2 }
 0xe74   :  { %4537 = vmatprep.mubr.msk.bf16.mxu1 %vm4880_vm0, %v4879_v1 }
 0xe75   :  { %v2158_v28 = vpack.c.bf16 %v2022_v27, %v2022_v27 }
 0xe78   :  { %v2150_v30 = vpop.f32.mrb[68].mxu0 }
 0xe79   :  { %v2151_v31 = vadd.f32 %v4031_v29, %v2150_v30  ;;  %v4533_v33 = vpop.f32.mrb[69].mxu0  ;;  %v4770_v30 = vld [vmem:[%s5711_s6 + $0x58] sm:$0xff]  }
 0xe7a   :  { %v2153_v34 = vpop.f32.mrb[70].mxu0 }
 0xe7b   :  { %v2161_v35 = vpack.c.bf16 %v2151_v31, %v2151_v31  ;;  %v2154_v38 = vadd.f32 %v4031_v29, %v2153_v34  ;;  %v4534_v39 = vpop.f32.mrb[71].mxu0  ;;  %v4769_v29 = vld [vmem:[%s5711_s6 + $0x50] sm:$0xff]  }
 0xe7d   :  { %v2283_v4 = vsel %vm429_vm3, %v2161_v35, 0  ;;  %v2162_v40 = vpack.c.bf16 %v2154_v38, %v2154_v38 }
 0xe7f   :  { %v2329_v41 = vsel %vm429_vm3, %v2162_v40, 0 }
 0xf3e   :  { %v1950_v5 = vpop.f32.mrb[60].mxu1 }
 0xf3f   :  { %v5373_v6 = vadd.f32 %v1950_v5, %v5278_v44  ;;  %v4509_v7 = vpop.f32.mrb[61].mxu1  ;;  %v4039_v5 = vld [vmem:[%s5715_s10 + $0x8] sm:$0x3] }
 0xf40   :  { %v1953_v9 = vpop.f32.mrb[62].mxu1 }
 0xf41   :  { %v5376_v10 = vadd.f32 %v1953_v9, %v5281_v47  ;;  %v4510_v12 = vpop.f32.mrb[63].mxu1 }
 0xf46   :  { %v2084_v14 = vpop.f32.mrb[64].mxu1 }
 0xf47   :  { %v2085_v15 = vadd.f32 %v4022_v13, %v2084_v14  ;;  %v4525_v16 = vpop.f32.mrb[65].mxu1  ;;  %v2378_v14 = vsel %vm939_vm5, %v4039_v5, 0 }
 0xf48   :  { %v2087_v17 = vpop.f32.mrb[66].mxu1  ;;  %v4767_v16 = vld [vmem:[%s5709_s4 + $0x50] sm:$0xff]  }
 0xf49   :  { %v2159_v44 = vpack.c.bf16 %v2085_v15, %v2085_v15  ;;  %v2088_v19 = vadd.f32 %v4022_v13, %v2087_v17  ;;  %v4526_v20 = vpop.f32.mrb[67].mxu1  ;;  %v4768_v17 = vld [vmem:[%s5709_s4 + $0x58] sm:$0xff]  }
 0xf4b   :  { %v2167_v22 = vsel %vm308_vm2, %v2159_v44, 0  ;;  %v2160_v47 = vpack.c.bf16 %v2088_v19, %v2088_v19 }
 0xf4c   :  { %4536 = vmatpush3.bf16.xpose.msra.mxu1 %v2167_v22  ;;  %v4765_v22 = vld [vmem:[%s5710_s5 + $0x50] sm:$0xff]  }
 0xf4d   :  { %v2213_v25 = vsel %vm308_vm2, %v2160_v47, 0  ;;  %4547 = vmatprep.subr.bf16.mxu1 %v4879_v1 }
 0xf4e   :  { %4542 = vmatpush3.bf16.xpose.msra.mxu0 %v2213_v25 }
 0xf4f   :  { %4553 = vmatprep.subr.bf16.mxu0 %v4879_v1 }
 0xf53   :  { %4538 = vmatmul.mubr.msk.bf16.vlgmr.msra.gmra.mrb[68].mxu1 %vm308_vm2, %v2157_v26 }
 0xf54   :  { %4549 = vmatprep.mubr.msk.bf16.mxu1 %vm4880_vm0, %v4879_v1  ;;  %4548 = vmatpush3.bf16.msra.mxu1 %v2283_v4 }
 0xf55   :  { %4544 = vmatmul.mubr.msk.bf16.vlgmr.msra.gmra.mrb[72].mxu0 %vm308_vm2, %v2158_v28  ;;  %4559 = vmatprep.subr.bf16.mxu1 %v4879_v1  ;;  %v4766_v28 = vld [vmem:[%s5710_s5 + $0x58] sm:$0xff]  }
 0xf56   :  { %4555 = vmatprep.mubr.msk.bf16.mxu0 %vm4880_vm0, %v4879_v1  ;;  %4554 = vmatpush3.bf16.msra.mxu0 %v2329_v41 }
 0xf57   :  { %4565 = vmatprep.subr.bf16.mxu0 %v4879_v1 }
0x1026   :  { %v2203_v42 = vpop.f32.mrb[68].mxu1 }
0x1027   :  { %v2204_v43 = vadd.f32 %v2203_v42, %v5048_v56  ;;  %v4539_v45 = vpop.f32.mrb[69].mxu1 }
0x1028   :  { %v2206_v46 = vpop.f32.mrb[70].mxu1  ;;  %v2249_v48 = vpop.f32.mrb[72].mxu0 }
0x1029   :  { %v2250_v11 = vadd.f32 %v2249_v48, %v5046_v54  ;;  %v4540_v49 = vpop.f32.mrb[71].mxu1  ;;  %v4545_v50 = vpop.f32.mrb[73].mxu0  ;;  %v2255_v51 = vsel %vm401_vm4, %v2204_v43, -inf }
0x102a   :  { %2256 = vmax.xlane.f32.xlu0 %v2255_v51  ;;  %v2252_v52 = vpop.f32.mrb[74].mxu0  ;;  %v4046_v49 = vld [vmem:[%s5712_s7 + $0x5] ss:$0 sm:$0xff] }
0x102b   :  { %v4546_v32 = vpop.f32.mrb[75].mxu0  ;;  %v2258_v21 = vsel %vm401_vm4, %v2250_v11, -inf }
0x102c   :  { %2259 = vmax.xlane.f32.xlu1 %v2258_v21 }
0x10b7   :  { %v2257_v36 = vpop.xlane.xlu0 %2256 }
0x10b8   :  { %v2261_v37 = vsub.f32 %v2204_v43, %v2257_v36  ;;  %v4055_v43 = vld [vmem:[%s5713_s8 + $0x5] ss:$0 sm:$0xff] }
0x10b9   :  { %v2260_v53 = vpop.xlane.xlu1 %2259 }
0x10ba   :  { %v2263_v24 = vmul.f32 1.442695, %v2261_v37  ;;  %v2262_v55 = vsub.f32 %v2250_v11, %v2260_v53 }
0x10bc   :  { %4815 = vpow2.f32 %v2263_v24  ;;  %v2265_v57 = vmul.f32 1.442695, %v2262_v55  ;;  %v4064_v24 = vld [vmem:[%s5714_s9 + $0x5] ss:$0 sm:$0xff] }
0x10be   :  { %4817 = vpow2.f32 %v2265_v57 }
0x10c6   :  { %v4816_v58 = vpop.eup %4815 }
0x10c7   :  { %v2267_v60 = vsel %vm401_vm4, %v4816_v58, 0.0 }
0x10c8   :  { %v4818_v61 = vpop.eup %4817  ;;  %2268 = vadd.xlane.f32.xlu0 %v2267_v60 }
0x10c9   :  { %v2270_v63 = vsel %vm401_vm4, %v4818_v61, 0.0 }
0x10ca   :  { %2271 = vadd.xlane.f32.xlu1 %v2270_v63 }
0x1155   :  { %v2269_v0 = vpop.xlane.xlu0 %2268 }
0x1156   :  { %4819 = vrcp.f32 %v2269_v0 }
0x1157   :  { %v2272_v2 = vpop.xlane.xlu1 %2271 }
0x1158   :  { %4821 = vrcp.f32 %v2272_v2 }
0x1160   :  { %v4820_v3 = vpop.eup %4819 }
0x1161   :  { %v2275_v7 = vmul.f32 %v4820_v3, %v4816_v58 }
0x1162   :  { %v4822_v9 = vpop.eup %4821 }
0x1163   :  { %v2276_v12 = vmul.f32 %v4822_v9, %v4818_v61  ;;  %v2277_v13 = vpack.c.bf16 %v2275_v7, %v2275_v7 }
0x1165   :  { %4550 = vmatmul.mubr.msk.bf16.vlgmr.msra.gmra.mrb[72].mxu1 %vm401_vm4, %v2277_v13  ;;  %v2278_v15 = vpack.c.bf16 %v2276_v12, %v2276_v12 }
0x1166   :  { %4560 = vmatpush3.bf16.msra.mxu1 %v2378_v14  ;;  %4561 = vmatprep.mubr.msk.bf16.mxu1 %vm4880_vm0, %v4879_v1 }
0x1167   :  { %4556 = vmatmul.mubr.msk.bf16.vlgmr.msra.gmra.mrb[76].mxu0 %vm401_vm4, %v2278_v15  ;;  %4573 = vmatprep.subr.bf16.mxu1 %v4879_v1 }
0x1168   :  { %4569 = vmatprep.mubr.msk.bf16.mxu0 %vm4880_vm0, %v4879_v1  ;;  %4566 = vmatpush3.bf16.msra.mxu0 %v4767_v16 }
0x1169   :  { %4567 = vmatprep.subr.bf16.mxu0 %v4879_v1 }
0x116c   :  { %4568 = vmatpush3.bf16.msra.mxu0 %v4768_v17 }
0x116d   :  { %4581 = vmatprep.subr.bf16.mxu0 %v4879_v1 }
0x116f   :  { %4570 = vmatmul.mubr.msk.bf16.vlgmr.msra.gmra.mrb[80].mxu0 %vm103_vm1, %v4991_v8 }
0x1170   :  { %4585 = vmatprep.mubr.msk.bf16.mxu0 %vm4880_vm0, %v4879_v1  ;;  %4582 = vmatpush3.bf16.msra.mxu0 %v4769_v29 }
0x1171   :  { %4583 = vmatprep.subr.bf16.mxu0 %v4879_v1 }
0x1174   :  { %4584 = vmatpush3.bf16.msra.mxu0 %v4770_v30 }
0x1175   :  { %4595 = vmatprep.subr.bf16.mxu0 %v4879_v1 }
0x1177   :  { %4586 = vmatmul.mubr.msk.bf16.vlgmr.msra.gmra.mrb[84].mxu0 %vm103_vm1, %v5366_v62 }
0x1178   :  { %4597 = vmatprep.mubr.msk.bf16.mxu0 %vm4880_vm0, %v4879_v1 }
0x1238   :  { %v2319_v18 = vpop.f32.mrb[72].mxu1 }
0x1239   :  { %v4551_v44 = vpop.f32.mrb[73].mxu1 }
0x123a   :  { %v2322_v19 = vpop.f32.mrb[74].mxu1  ;;  %v2365_v20 = vpop.f32.mrb[76].mxu0 }
0x123b   :  { %v2371_v47 = vpack.c.bf16 %v2365_v20, %v2319_v18  ;;  %v4552_v23 = vpop.f32.mrb[75].mxu1  ;;  %v4557_v25 = vpop.f32.mrb[77].mxu0 }
0x123c   :  { %v2368_v26 = vpop.f32.mrb[78].mxu0 }
0x123d   :  { %v4558_v27 = vpop.f32.mrb[79].mxu0  ;;  %4562 = vmatmul.mubr.msk.bf16.vlgmr.msra.gmra.mrb[76].mxu1 %vm308_vm2, %v2371_v47 }
0x123e   :  { %4574 = vmatpush3.bf16.msra.mxu1 %v4765_v22  ;;  %4577 = vmatprep.mubr.msk.bf16.mxu1 %vm4880_vm0, %v4879_v1 }
0x123f   :  { %4575 = vmatprep.subr.bf16.mxu1 %v4879_v1 }
0x1242   :  { %4576 = vmatpush3.bf16.msra.mxu1 %v4766_v28  ;;  %v2482_v31 = vpop.f32.mrb[80].mxu0 }
0x1243   :  { %4589 = vmatprep.subr.bf16.mxu1 %v4879_v1  ;;  %v4571_v33 = vpop.f32.mrb[81].mxu0  ;;  %v2483_v32 = vadd.f32 %v4046_v49, %v2482_v31 }
0x1244   :  { %v2485_v34 = vpop.f32.mrb[82].mxu0 }
0x1245   :  { %4578 = vmatmul.mubr.msk.bf16.vlgmr.msra.gmra.mrb[80].mxu1 %vm103_vm1, %v5349_v59  ;;  %v4572_v35 = vpop.f32.mrb[83].mxu0  ;;  %v2621_v36 = vpack.c.bf16 %v2483_v32, %v2483_v32  ;;  %v2486_v37 = vadd.f32 %v4046_v49, %v2485_v34 }
0x1246   :  { %4591 = vmatprep.mubr.msk.bf16.mxu1 %vm4880_vm0, %v4879_v1 }
0x1247   :  { %v2622_v53 = vpack.c.bf16 %v2486_v37, %v2486_v37 }
0x124a   :  { %v2614_v55 = vpop.f32.mrb[84].mxu0 }
0x124b   :  { %v2615_v57 = vadd.f32 %v4064_v24, %v2614_v55  ;;  %v4587_v58 = vpop.f32.mrb[85].mxu0  ;;  %v4776_v55 = vld [vmem:[%s5711_s6 + $0x68] sm:$0xff]  }
0x124c   :  { %v2617_v60 = vpop.f32.mrb[86].mxu0 }
0x124d   :  { %v2625_v61 = vpack.c.bf16 %v2615_v57, %v2615_v57  ;;  %v2618_v63 = vadd.f32 %v4064_v24, %v2617_v60  ;;  %v4588_v0 = vpop.f32.mrb[87].mxu0  ;;  %v4775_v24 = vld [vmem:[%s5711_s6 + $0x60] sm:$0xff]  }
0x124f   :  { %v2747_v2 = vsel %vm429_vm3, %v2625_v61, 0  ;;  %v2626_v3 = vpack.c.bf16 %v2618_v63, %v2618_v63 }
0x1251   :  { %v2793_v5 = vsel %vm429_vm3, %v2626_v3, 0 }
0x1310   :  { %v2414_v38 = vpop.f32.mrb[76].mxu1 }
0x1311   :  { %v5458_v39 = vadd.f32 %v2414_v38, %v5373_v6  ;;  %v4563_v4 = vpop.f32.mrb[77].mxu1  ;;  %v4072_v38 = vld [vmem:[%s5715_s10 + $0xa] sm:$0x3] }
0x1312   :  { %v2417_v40 = vpop.f32.mrb[78].mxu1 }
0x1313   :  { %v5461_v41 = vadd.f32 %v2417_v40, %v5376_v10  ;;  %v4564_v42 = vpop.f32.mrb[79].mxu1 }
0x1318   :  { %v2548_v45 = vpop.f32.mrb[80].mxu1 }
0x1319   :  { %v2549_v46 = vadd.f32 %v4055_v43, %v2548_v45  ;;  %v4579_v48 = vpop.f32.mrb[81].mxu1  ;;  %v2842_v45 = vsel %vm939_vm5, %v4072_v38, 0 }
0x131a   :  { %v2551_v11 = vpop.f32.mrb[82].mxu1  ;;  %v4773_v48 = vld [vmem:[%s5709_s4 + $0x60] sm:$0xff]  }
0x131b   :  { %v2623_v6 = vpack.c.bf16 %v2549_v46, %v2549_v46  ;;  %v2552_v50 = vadd.f32 %v4055_v43, %v2551_v11  ;;  %v4580_v51 = vpop.f32.mrb[83].mxu1  ;;  %v4774_v11 = vld [vmem:[%s5709_s4 + $0x68] sm:$0xff]  }
0x131d   :  { %v2631_v52 = vsel %vm308_vm2, %v2623_v6, 0  ;;  %v2624_v10 = vpack.c.bf16 %v2552_v50, %v2552_v50 }
0x131e   :  { %4590 = vmatpush3.bf16.xpose.msra.mxu1 %v2631_v52  ;;  %v4771_v52 = vld [vmem:[%s5710_s5 + $0x60] sm:$0xff]  }
0x131f   :  { %v2677_v21 = vsel %vm308_vm2, %v2624_v10, 0  ;;  %4601 = vmatprep.subr.bf16.mxu1 %v4879_v1 }
0x1320   :  { %4596 = vmatpush3.bf16.xpose.msra.mxu0 %v2677_v21 }
0x1321   :  { %4607 = vmatprep.subr.bf16.mxu0 %v4879_v1 }
0x1325   :  { %4592 = vmatmul.mubr.msk.bf16.vlgmr.msra.gmra.mrb[84].mxu1 %vm308_vm2, %v2621_v36 }
0x1326   :  { %4603 = vmatprep.mubr.msk.bf16.mxu1 %vm4880_vm0, %v4879_v1  ;;  %4602 = vmatpush3.bf16.msra.mxu1 %v2747_v2 }
0x1327   :  { %4598 = vmatmul.mubr.msk.bf16.vlgmr.msra.gmra.mrb[88].mxu0 %vm308_vm2, %v2622_v53  ;;  %4613 = vmatprep.subr.bf16.mxu1 %v4879_v1  ;;  %v4772_v53 = vld [vmem:[%s5710_s5 + $0x68] sm:$0xff]  }
0x1328   :  { %4609 = vmatprep.mubr.msk.bf16.mxu0 %vm4880_vm0, %v4879_v1  ;;  %4608 = vmatpush3.bf16.msra.mxu0 %v2793_v5 }
0x1329   :  { %4619 = vmatprep.subr.bf16.mxu0 %v4879_v1 }
0x13f8   :  { %v2667_v7 = vpop.f32.mrb[84].mxu1 }
0x13f9   :  { %v2668_v9 = vadd.f32 %v2667_v7, %v5048_v56  ;;  %v4593_v12 = vpop.f32.mrb[85].mxu1 }
0x13fa   :  { %v2670_v13 = vpop.f32.mrb[86].mxu1  ;;  %v2713_v14 = vpop.f32.mrb[88].mxu0 }
0x13fb   :  { %v2714_v15 = vadd.f32 %v2713_v14, %v5046_v54  ;;  %v4594_v16 = vpop.f32.mrb[87].mxu1  ;;  %v4599_v17 = vpop.f32.mrb[89].mxu0  ;;  %v2719_v18 = vsel %vm401_vm4, %v2668_v9, -inf }
0x13fc   :  { %2720 = vmax.xlane.f32.xlu0 %v2719_v18  ;;  %v2716_v44 = vpop.f32.mrb[90].mxu0  ;;  %v4079_v16 = vld [vmem:[%s5712_s7 + $0x6] ss:$0 sm:$0xff] }
0x13fd   :  { %v4600_v19 = vpop.f32.mrb[91].mxu0  ;;  %v2722_v20 = vsel %vm401_vm4, %v2714_v15, -inf }
0x13fe   :  { %2723 = vmax.xlane.f32.xlu1 %v2722_v20 }
0x1489   :  { %v2721_v22 = vpop.xlane.xlu0 %2720 }
0x148a   :  { %v2725_v47 = vsub.f32 %v2668_v9, %v2721_v22  ;;  %v4088_v9 = vld [vmem:[%s5713_s8 + $0x6] ss:$0 sm:$0xff] }
0x148b   :  { %v2724_v23 = vpop.xlane.xlu1 %2723 }
0x148c   :  { %v2727_v25 = vmul.f32 1.442695, %v2725_v47  ;;  %v2726_v26 = vsub.f32 %v2714_v15, %v2724_v23 }
0x148e   :  { %4823 = vpow2.f32 %v2727_v25  ;;  %v2729_v27 = vmul.f32 1.442695, %v2726_v26  ;;  %v4097_v25 = vld [vmem:[%s5714_s9 + $0x6] ss:$0 sm:$0xff] }
0x1490   :  { %4825 = vpow2.f32 %v2729_v27 }
0x1498   :  { %v4824_v28 = vpop.eup %4823 }
0x1499   :  { %v2731_v29 = vsel %vm401_vm4, %v4824_v28, 0.0 }
0x149a   :  { %v4826_v30 = vpop.eup %4825  ;;  %2732 = vadd.xlane.f32.xlu0 %v2731_v29 }
0x149b   :  { %v2734_v31 = vsel %vm401_vm4, %v4826_v30, 0.0 }
0x149c   :  { %2735 = vadd.xlane.f32.xlu1 %v2734_v31 }
0x1527   :  { %v2733_v33 = vpop.xlane.xlu0 %2732 }
0x1528   :  { %4827 = vrcp.f32 %v2733_v33 }
0x1529   :  { %v2736_v34 = vpop.xlane.xlu1 %2735 }
0x152a   :  { %4829 = vrcp.f32 %v2736_v34 }
0x1532   :  { %v4828_v35 = vpop.eup %4827 }
0x1533   :  { %v2739_v4 = vmul.f32 %v4828_v35, %v4824_v28 }
0x1534   :  { %v4830_v40 = vpop.eup %4829 }
0x1535   :  { %v2740_v42 = vmul.f32 %v4830_v40, %v4826_v30  ;;  %v2741_v43 = vpack.c.bf16 %v2739_v4, %v2739_v4 }
0x1537   :  { %4604 = vmatmul.mubr.msk.bf16.vlgmr.msra.gmra.mrb[88].mxu1 %vm401_vm4, %v2741_v43  ;;  %v2742_v46 = vpack.c.bf16 %v2740_v42, %v2740_v42 }
0x1538   :  { %4614 = vmatpush3.bf16.msra.mxu1 %v2842_v45  ;;  %4615 = vmatprep.mubr.msk.bf16.mxu1 %vm4880_vm0, %v4879_v1 }
0x1539   :  { %4610 = vmatmul.mubr.msk.bf16.vlgmr.msra.gmra.mrb[92].mxu0 %vm401_vm4, %v2742_v46  ;;  %4627 = vmatprep.subr.bf16.mxu1 %v4879_v1 }
0x153a   :  { %4623 = vmatprep.mubr.msk.bf16.mxu0 %vm4880_vm0, %v4879_v1  ;;  %4620 = vmatpush3.bf16.msra.mxu0 %v4773_v48 }
0x153b   :  { %4621 = vmatprep.subr.bf16.mxu0 %v4879_v1 }
0x153e   :  { %4622 = vmatpush3.bf16.msra.mxu0 %v4774_v11 }
0x153f   :  { %4635 = vmatprep.subr.bf16.mxu0 %v4879_v1 }
0x1541   :  { %4624 = vmatmul.mubr.msk.bf16.vlgmr.msra.gmra.mrb[96].mxu0 %vm103_vm1, %v4991_v8 }
0x1542   :  { %4639 = vmatprep.mubr.msk.bf16.mxu0 %vm4880_vm0, %v4879_v1  ;;  %4636 = vmatpush3.bf16.msra.mxu0 %v4775_v24 }
0x1543   :  { %4637 = vmatprep.subr.bf16.mxu0 %v4879_v1 }
0x1546   :  { %4638 = vmatpush3.bf16.msra.mxu0 %v4776_v55 }
0x1547   :  { %4649 = vmatprep.subr.bf16.mxu0 %v4879_v1 }
0x1549   :  { %4640 = vmatmul.mubr.msk.bf16.vlgmr.msra.gmra.mrb[100].mxu0 %vm103_vm1, %v5366_v62 }
0x154a   :  { %4651 = vmatprep.mubr.msk.bf16.mxu0 %vm4880_vm0, %v4879_v1 }
0x160a   :  { %v2783_v49 = vpop.f32.mrb[88].mxu1 }
0x160b   :  { %v4605_v6 = vpop.f32.mrb[89].mxu1 }
0x160c   :  { %v2786_v50 = vpop.f32.mrb[90].mxu1  ;;  %v2829_v51 = vpop.f32.mrb[92].mxu0 }
0x160d   :  { %v2835_v10 = vpack.c.bf16 %v2829_v51, %v2783_v49  ;;  %v4606_v32 = vpop.f32.mrb[91].mxu1  ;;  %v4611_v21 = vpop.f32.mrb[93].mxu0 }
0x160e   :  { %v2832_v36 = vpop.f32.mrb[94].mxu0 }
0x160f   :  { %v4612_v37 = vpop.f32.mrb[95].mxu0  ;;  %4616 = vmatmul.mubr.msk.bf16.vlgmr.msra.gmra.mrb[92].mxu1 %vm308_vm2, %v2835_v10 }
0x1610   :  { %4628 = vmatpush3.bf16.msra.mxu1 %v4771_v52  ;;  %4631 = vmatprep.mubr.msk.bf16.mxu1 %vm4880_vm0, %v4879_v1 }
0x1611   :  { %4629 = vmatprep.subr.bf16.mxu1 %v4879_v1 }
0x1614   :  { %4630 = vmatpush3.bf16.msra.mxu1 %v4772_v53  ;;  %v2946_v57 = vpop.f32.mrb[96].mxu0 }
0x1615   :  { %4643 = vmatprep.subr.bf16.mxu1 %v4879_v1  ;;  %v4625_v58 = vpop.f32.mrb[97].mxu0  ;;  %v2947_v19 = vadd.f32 %v4079_v16, %v2946_v57 }
0x1616   :  { %v2949_v60 = vpop.f32.mrb[98].mxu0 }
0x1617   :  { %4632 = vmatmul.mubr.msk.bf16.vlgmr.msra.gmra.mrb[96].mxu1 %vm103_vm1, %v5349_v59  ;;  %v4626_v61 = vpop.f32.mrb[99].mxu0  ;;  %v3085_v22 = vpack.c.bf16 %v2947_v19, %v2947_v19  ;;  %v2950_v47 = vadd.f32 %v4079_v16, %v2949_v60 }
0x1618   :  { %4645 = vmatprep.mubr.msk.bf16.mxu1 %vm4880_vm0, %v4879_v1 }
0x1619   :  { %v3086_v23 = vpack.c.bf16 %v2950_v47, %v2950_v47 }
0x161c   :  { %v3078_v26 = vpop.f32.mrb[100].mxu0 }
0x161d   :  { %v3079_v27 = vadd.f32 %v4097_v25, %v3078_v26  ;;  %v4641_v28 = vpop.f32.mrb[101].mxu0 }
0x161e   :  { %v3081_v29 = vpop.f32.mrb[102].mxu0 }
0x161f   :  { %v3089_v30 = vpack.c.bf16 %v3079_v27, %v3079_v27  ;;  %v3082_v31 = vadd.f32 %v4097_v25, %v3081_v29  ;;  %v4642_v33 = vpop.f32.mrb[103].mxu0  ;;  %v4782_v25 = vld [vmem:[%s5711_s6 + $0x78] sm:$0xff]  }
0x1621   :  { %v3211_v34 = vsel %vm429_vm3, %v3089_v30, 0  ;;  %v3090_v35 = vpack.c.bf16 %v3082_v31, %v3082_v31 }
0x1623   :  { %v3257_v38 = vsel %vm429_vm3, %v3090_v35, 0 }
0x16e2   :  { %v2878_v63 = vpop.f32.mrb[92].mxu1 }
0x16e3   :  { %v5543_v0 = vadd.f32 %v2878_v63, %v5458_v39  ;;  %v4617_v2 = vpop.f32.mrb[93].mxu1  ;;  %v4105_v63 = vld [vmem:[%s5715_s10 + $0xc] sm:$0x3] }
0x16e4   :  { %v2881_v3 = vpop.f32.mrb[94].mxu1 }
0x16e5   :  { %v5546_v5 = vadd.f32 %v2881_v3, %v5461_v41  ;;  %v4618_v7 = vpop.f32.mrb[95].mxu1 }
0x16ea   :  { %v3012_v12 = vpop.f32.mrb[96].mxu1 }
0x16eb   :  { %v3013_v13 = vadd.f32 %v4088_v9, %v3012_v12  ;;  %v4633_v14 = vpop.f32.mrb[97].mxu1  ;;  %v3306_v12 = vsel %vm939_vm5, %v4105_v63, 0 }
0x16ec   :  { %v3015_v15 = vpop.f32.mrb[98].mxu1  ;;  %v4779_v14 = vld [vmem:[%s5709_s4 + $0x70] sm:$0xff]  }
0x16ed   :  { %v3087_v39 = vpack.c.bf16 %v3013_v13, %v3013_v13  ;;  %v3016_v17 = vadd.f32 %v4088_v9, %v3015_v15  ;;  %v4634_v18 = vpop.f32.mrb[99].mxu1  ;;  %v4780_v15 = vld [vmem:[%s5709_s4 + $0x78] sm:$0xff]  }
0x16ef   :  { %v3095_v44 = vsel %vm308_vm2, %v3087_v39, 0  ;;  %v3088_v41 = vpack.c.bf16 %v3016_v17, %v3016_v17 }
0x16f0   :  { %4644 = vmatpush3.bf16.xpose.msra.mxu1 %v3095_v44  ;;  %v4777_v44 = vld [vmem:[%s5710_s5 + $0x70] sm:$0xff]  }
0x16f1   :  { %v3141_v20 = vsel %vm308_vm2, %v3088_v41, 0  ;;  %4655 = vmatprep.subr.bf16.mxu1 %v4879_v1 }
0x16f2   :  { %4650 = vmatpush3.bf16.xpose.msra.mxu0 %v3141_v20 }
0x16f3   :  { %4661 = vmatprep.subr.bf16.mxu0 %v4879_v1 }
0x16f7   :  { %4646 = vmatmul.mubr.msk.bf16.vlgmr.msra.gmra.mrb[100].mxu1 %vm308_vm2, %v3085_v22 }
0x16f8   :  { %4657 = vmatprep.mubr.msk.bf16.mxu1 %vm4880_vm0, %v4879_v1  ;;  %4656 = vmatpush3.bf16.msra.mxu1 %v3211_v34 }
0x16f9   :  { %4652 = vmatmul.mubr.msk.bf16.vlgmr.msra.gmra.mrb[104].mxu0 %vm308_vm2, %v3086_v23  ;;  %4667 = vmatprep.subr.bf16.mxu1 %v4879_v1  ;;  %v4781_v23 = vld [vmem:[%s5711_s6 + $0x70] sm:$0xff]  }
0x16fa   :  { %4663 = vmatprep.mubr.msk.bf16.mxu0 %vm4880_vm0, %v4879_v1  ;;  %4662 = vmatpush3.bf16.msra.mxu0 %v3257_v38 }
0x16fb   :  { %4673 = vmatprep.subr.bf16.mxu0 %v4879_v1 }
0x17ca   :  { %v3131_v4 = vpop.f32.mrb[100].mxu1 }
0x17cb   :  { %v3132_v40 = vadd.f32 %v3131_v4, %v5048_v56  ;;  %v4647_v42 = vpop.f32.mrb[101].mxu1 }
0x17cc   :  { %v3134_v43 = vpop.f32.mrb[102].mxu1  ;;  %v3177_v45 = vpop.f32.mrb[104].mxu0 }
0x17cd   :  { %v3178_v46 = vadd.f32 %v3177_v45, %v5046_v54  ;;  %v4648_v48 = vpop.f32.mrb[103].mxu1  ;;  %v4653_v11 = vpop.f32.mrb[105].mxu0  ;;  %v3183_v49 = vsel %vm401_vm4, %v3132_v40, -inf  ;;  %v4112_v43 = vld [vmem:[%s5712_s7 + $0x7] ss:$0 sm:$0xff] }
0x17ce   :  { %3184 = vmax.xlane.f32.xlu0 %v3183_v49  ;;  %v3180_v6 = vpop.f32.mrb[106].mxu0 }
0x17cf   :  { %v4654_v50 = vpop.f32.mrb[107].mxu0  ;;  %v3186_v51 = vsel %vm401_vm4, %v3178_v46, -inf }
0x17d0   :  { %3187 = vmax.xlane.f32.xlu1 %v3186_v51 }
0x185b   :  { %v3185_v52 = vpop.xlane.xlu0 %3184 }
0x185c   :  { %v3189_v10 = vsub.f32 %v3132_v40, %v3185_v52  ;;  %v4130_v52 = vld [vmem:[%s5714_s9 + $0x7] ss:$0 sm:$0xff] }
0x185d   :  { %v3188_v32 = vpop.xlane.xlu1 %3187 }
0x185e   :  { %v3191_v21 = vmul.f32 1.442695, %v3189_v10  ;;  %v3190_v36 = vsub.f32 %v3178_v46, %v3188_v32 }
0x1860   :  { %4831 = vpow2.f32 %v3191_v21  ;;  %v3193_v37 = vmul.f32 1.442695, %v3190_v36 }
0x1862   :  { %4833 = vpow2.f32 %v3193_v37 }
0x186a   :  { %v4832_v53 = vpop.eup %4831 }
0x186b   :  { %v3195_v24 = vsel %vm401_vm4, %v4832_v53, 0.0 }
0x186c   :  { %v4834_v55 = vpop.eup %4833  ;;  %3196 = vadd.xlane.f32.xlu0 %v3195_v24 }
0x186d   :  { %v3198_v57 = vsel %vm401_vm4, %v4834_v55, 0.0 }
0x186e   :  { %3199 = vadd.xlane.f32.xlu1 %v3198_v57 }
0x18f9   :  { %v3197_v58 = vpop.xlane.xlu0 %3196 }
0x18fa   :  { %4835 = vrcp.f32 %v3197_v58 }
0x18fb   :  { %v3200_v60 = vpop.xlane.xlu1 %3199 }
0x18fc   :  { %4837 = vrcp.f32 %v3200_v60 }
0x1904   :  { %v4836_v61 = vpop.eup %4835 }
0x1905   :  { %v3203_v2 = vmul.f32 %v4836_v61, %v4832_v53 }
0x1906   :  { %v4838_v3 = vpop.eup %4837 }
0x1907   :  { %v3204_v7 = vmul.f32 %v4838_v3, %v4834_v55  ;;  %v3205_v9 = vpack.c.bf16 %v3203_v2, %v3203_v2 }
0x1909   :  { %4658 = vmatmul.mubr.msk.bf16.vlgmr.msra.gmra.mrb[104].mxu1 %vm401_vm4, %v3205_v9  ;;  %v3206_v13 = vpack.c.bf16 %v3204_v7, %v3204_v7 }
0x190a   :  { %4668 = vmatpush3.bf16.msra.mxu1 %v3306_v12  ;;  %4669 = vmatprep.mubr.msk.bf16.mxu1 %vm4880_vm0, %v4879_v1 }
0x190b   :  { %4664 = vmatmul.mubr.msk.bf16.vlgmr.msra.gmra.mrb[108].mxu0 %vm401_vm4, %v3206_v13  ;;  %4681 = vmatprep.subr.bf16.mxu1 %v4879_v1 }
0x190c   :  { %4677 = vmatprep.mubr.msk.bf16.mxu0 %vm4880_vm0, %v4879_v1  ;;  %4674 = vmatpush3.bf16.msra.mxu0 %v4779_v14 }
0x190d   :  { %4675 = vmatprep.subr.bf16.mxu0 %v4879_v1 }
0x1910   :  { %4676 = vmatpush3.bf16.msra.mxu0 %v4780_v15 }
0x1911   :  { %4689 = vmatprep.subr.bf16.mxu0 %v4879_v1 }
0x1913   :  { %4678 = vmatmul.mubr.msk.bf16.vlgmr.msra.gmra.mrb[112].mxu0 %vm103_vm1, %v4991_v8  ;;  %v4778_v8 = vld [vmem:[%s5710_s5 + $0x78] sm:$0xff]  }
0x1914   :  { %4693 = vmatprep.mubr.msk.bf16.mxu0 %vm4880_vm0, %v4879_v1  ;;  %4690 = vmatpush3.bf16.msra.mxu0 %v4781_v23 }
0x1915   :  { %4691 = vmatprep.subr.bf16.mxu0 %v4879_v1 }
0x1918   :  { %4692 = vmatpush3.bf16.msra.mxu0 %v4782_v25  ;;  %v4138_v25 = vld [vmem:[%s5715_s10 + $0xe] sm:$0x3] }
0x1919   :  { %4703 = vmatprep.subr.bf16.mxu0 %v4879_v1 }
0x191b   :  { %4694 = vmatmul.mubr.msk.bf16.vlgmr.msra.gmra.mrb[116].mxu0 %vm103_vm1, %v5366_v62  ;;  %v4121_v62 = vld [vmem:[%s5713_s8 + $0x7] ss:$0 sm:$0xff] }
0x191c   :  { %4705 = vmatprep.mubr.msk.bf16.mxu0 %vm4880_vm0, %v4879_v1 }
0x19dc   :  { %v3247_v16 = vpop.f32.mrb[104].mxu1 }
0x19dd   :  { %v4659_v39 = vpop.f32.mrb[105].mxu1 }
0x19de   :  { %v3250_v17 = vpop.f32.mrb[106].mxu1  ;;  %v3293_v18 = vpop.f32.mrb[108].mxu0 }
0x19df   :  { %v3299_v41 = vpack.c.bf16 %v3293_v18, %v3247_v16  ;;  %v4660_v19 = vpop.f32.mrb[107].mxu1  ;;  %v4665_v20 = vpop.f32.mrb[109].mxu0 }
0x19e0   :  { %v3296_v22 = vpop.f32.mrb[110].mxu0 }
0x19e1   :  { %v4666_v47 = vpop.f32.mrb[111].mxu0  ;;  %4670 = vmatmul.mubr.msk.bf16.vlgmr.msra.gmra.mrb[108].mxu1 %vm308_vm2, %v3299_v41 }
0x19e2   :  { %4682 = vmatpush3.bf16.msra.mxu1 %v4777_v44  ;;  %4685 = vmatprep.mubr.msk.bf16.mxu1 %vm4880_vm0, %v4879_v1 }
0x19e3   :  { %4683 = vmatprep.subr.bf16.mxu1 %v4879_v1 }
0x19e6   :  { %4684 = vmatpush3.bf16.msra.mxu1 %v4778_v8 }
0x19e7   :  { %4697 = vmatprep.subr.bf16.mxu1 %v4879_v1 }
0x19e9   :  { %4686 = vmatmul.mubr.msk.bf16.vlgmr.msra.gmra.mrb[112].mxu1 %vm103_vm1, %v5349_v59  ;;  %v3410_v59 = vpop.f32.mrb[112].mxu0 }
0x19ea   :  { %4699 = vmatprep.mubr.msk.bf16.mxu1 %vm4880_vm0, %v4879_v1  ;;  %v4679_v26 = vpop.f32.mrb[113].mxu0  ;;  %v3411_v11 = vadd.f32 %v4112_v43, %v3410_v59 }
0x19eb   :  { %v3413_v27 = vpop.f32.mrb[114].mxu0 }
0x19ec   :  { %v4680_v28 = vpop.f32.mrb[115].mxu0  ;;  %v3549_v6 = vpack.c.bf16 %v3411_v11, %v3411_v11  ;;  %v3414_v50 = vadd.f32 %v4112_v43, %v3413_v27 }
0x19ee   :  { %v3550_v51 = vpack.c.bf16 %v3414_v50, %v3414_v50  ;;  %v3542_v10 = vpop.f32.mrb[116].mxu0 }
0x19ef   :  { %v3543_v32 = vadd.f32 %v4130_v52, %v3542_v10  ;;  %v4695_v21 = vpop.f32.mrb[117].mxu0 }
0x19f0   :  { %v3545_v36 = vpop.f32.mrb[118].mxu0 }
0x19f1   :  { %v3553_v37 = vpack.c.bf16 %v3543_v32, %v3543_v32  ;;  %v3546_v53 = vadd.f32 %v4130_v52, %v3545_v36  ;;  %v4696_v24 = vpop.f32.mrb[119].mxu0  ;;  %v4854_v32 = vld [vmem:[%s5705_s0 + $0x8] sm:$0xff] }
0x19f3   :  { %v3675_v55 = vsel %vm429_vm3, %v3553_v37, 0  ;;  %v3554_v57 = vpack.c.bf16 %v3546_v53, %v3546_v53 }
0x19f5   :  { %v3721_v58 = vsel %vm429_vm3, %v3554_v57, 0 }
0x1ab4   :  { %v3342_v29 = vpop.f32.mrb[108].mxu1 }
0x1ab5   :  { %v5628_v30 = vadd.f32 %v3342_v29, %v5543_v0  ;;  %v4671_v31 = vpop.f32.mrb[109].mxu1  ;;  %v3770_v29 = vsel %vm939_vm5, %v4138_v25, 0 }
0x1ab6   :  { %v3345_v33 = vpop.f32.mrb[110].mxu1 }
0x1ab7   :  { %v5631_v34 = vadd.f32 %v3345_v33, %v5546_v5  ;;  %v4672_v35 = vpop.f32.mrb[111].mxu1 }
0x1abc   :  { %v3476_v38 = vpop.f32.mrb[112].mxu1 }
0x1abd   :  { %v3477_v4 = vadd.f32 %v4121_v62, %v3476_v38  ;;  %v4687_v40 = vpop.f32.mrb[113].mxu1 }
0x1abe   :  { %v3479_v42 = vpop.f32.mrb[114].mxu1 }
0x1abf   :  { %v3551_v0 = vpack.c.bf16 %v3477_v4, %v3477_v4  ;;  %v3480_v45 = vadd.f32 %v4121_v62, %v3479_v42  ;;  %v4688_v46 = vpop.f32.mrb[115].mxu1 }
0x1ac0   :  { %v4140_v46 = vld [vmem:[%s5716_s11] ss:$0 sm:$0xff] }
0x1ac1   :  { %v3559_v48 = vsel %vm308_vm2, %v3551_v0, 0  ;;  %v3552_v5 = vpack.c.bf16 %v3480_v45, %v3480_v45 }
0x1ac2   :  { %4698 = vmatpush3.bf16.xpose.msra.mxu1 %v3559_v48 }
0x1ac3   :  { %v3605_v49 = vsel %vm308_vm2, %v3552_v5, 0  ;;  %4709 = vmatprep.subr.bf16.mxu1 %v4879_v1 }
0x1ac4   :  { %4704 = vmatpush3.bf16.xpose.msra.mxu0 %v3605_v49 }
0x1ac5   :  { %4715 = vmatprep.subr.bf16.mxu0 %v4879_v1 }
0x1ac9   :  { %4700 = vmatmul.mubr.msk.bf16.vlgmr.msra.gmra.mrb[116].mxu1 %vm308_vm2, %v3549_v6 }
0x1aca   :  { %4711 = vmatprep.mubr.msk.bf16.mxu1 %vm4880_vm0, %v4879_v1  ;;  %4710 = vmatpush3.bf16.msra.mxu1 %v3675_v55 }
0x1acb   :  { %4706 = vmatmul.mubr.msk.bf16.vlgmr.msra.gmra.mrb[120].mxu0 %vm308_vm2, %v3550_v51  ;;  %4721 = vmatprep.subr.bf16.mxu1 %v4879_v1  ;;  %v4853_v51 = vld [vmem:[%s5705_s0] sm:$0xff] }
0x1acc   :  { %4717 = vmatprep.mubr.msk.bf16.mxu0 %vm4880_vm0, %v4879_v1  ;;  %4716 = vmatpush3.bf16.msra.mxu0 %v3721_v58 }
0x1b9c   :  { %v3595_v60 = vpop.f32.mrb[116].mxu1 }
0x1b9d   :  { %v3596_v61 = vadd.f32 %v3595_v60, %v5048_v56  ;;  %v4701_v63 = vpop.f32.mrb[117].mxu1 }
0x1b9e   :  { %v3598_v2 = vpop.f32.mrb[118].mxu1  ;;  %v3641_v3 = vpop.f32.mrb[120].mxu0 }
0x1b9f   :  { %v3642_v7 = vadd.f32 %v3641_v3, %v5046_v54  ;;  %v4702_v9 = vpop.f32.mrb[119].mxu1  ;;  %v4707_v12 = vpop.f32.mrb[121].mxu0  ;;  %v3647_v13 = vsel %vm401_vm4, %v3596_v61, -inf }
0x1ba0   :  { %3648 = vmax.xlane.f32.xlu0 %v3647_v13  ;;  %v3644_v14 = vpop.f32.mrb[122].mxu0 }
0x1ba1   :  { %v4708_v15 = vpop.f32.mrb[123].mxu0  ;;  %v3650_v16 = vsel %vm401_vm4, %v3642_v7, -inf  ;;  %v4141_v14 = vld [vmem:[%s5717_s12] ss:$0 sm:$0xff] }
0x1ba2   :  { %3651 = vmax.xlane.f32.xlu1 %v3650_v16 }
0x1c2d   :  { %v3649_v39 = vpop.xlane.xlu0 %3648 }
0x1c2e   :  { %v3653_v17 = vsub.f32 %v3596_v61, %v3649_v39  ;;  %v4142_v39 = vld [vmem:[%s5718_s13] ss:$0 sm:$0xff] }
0x1c2f   :  { %v3652_v18 = vpop.xlane.xlu1 %3651 }
0x1c30   :  { %v3655_v44 = vmul.f32 1.442695, %v3653_v17  ;;  %v3654_v56 = vsub.f32 %v3642_v7, %v3652_v18 }
0x1c32   :  { %4839 = vpow2.f32 %v3655_v44  ;;  %v3657_v41 = vmul.f32 1.442695, %v3654_v56 }
0x1c34   :  { %4841 = vpow2.f32 %v3657_v41 }
0x1c3c   :  { %v4840_v19 = vpop.eup %4839 }
0x1c3d   :  { %v3659_v54 = vsel %vm401_vm4, %v4840_v19, 0.0 }
0x1c3e   :  { %v4842_v20 = vpop.eup %4841  ;;  %3660 = vadd.xlane.f32.xlu0 %v3659_v54 }
0x1c3f   :  { %v3662_v22 = vsel %vm401_vm4, %v4842_v20, 0.0 }
0x1c40   :  { %3663 = vadd.xlane.f32.xlu1 %v3662_v22 }
0x1ccb   :  { %v3661_v47 = vpop.xlane.xlu0 %3660 }
0x1ccc   :  { %4843 = vrcp.f32 %v3661_v47 }
0x1ccd   :  { %v3664_v8 = vpop.xlane.xlu1 %3663 }
0x1cce   :  { %4845 = vrcp.f32 %v3664_v8 }
0x1cd6   :  { %v4844_v23 = vpop.eup %4843 }
0x1cd7   :  { %v3667_v59 = vmul.f32 %v4844_v23, %v4840_v19 }
0x1cd8   :  { %v4846_v26 = vpop.eup %4845 }
0x1cd9   :  { %v3668_v27 = vmul.f32 %v4846_v26, %v4842_v20  ;;  %v3669_v28 = vpack.c.bf16 %v3667_v59, %v3667_v59 }
0x1cdb   :  { %4712 = vmatmul.mubr.msk.bf16.vlgmr.msra.gmra.mrb[120].mxu1 %vm401_vm4, %v3669_v28  ;;  %v3670_v31 = vpack.c.bf16 %v3668_v27, %v3668_v27 }
0x1cdc   :  { %4722 = vmatpush3.bf16.msra.mxu1 %v3770_v29  ;;  %4723 = vmatprep.mubr.msk.bf16.mxu1 %vm4880_vm0, %v4879_v1 }
0x1cdd   :  { %4718 = vmatmul.mubr.msk.bf16.vlgmr.msra.gmra.mrb[124].mxu0 %vm401_vm4, %v3670_v31 }
0x1dae   :  { %v3711_v33 = vpop.f32.mrb[120].mxu1 }
0x1daf   :  { %v4713_v35 = vpop.f32.mrb[121].mxu1 }
0x1db0   :  { %v3714_v62 = vpop.f32.mrb[122].mxu1  ;;  %v3757_v38 = vpop.f32.mrb[124].mxu0 }
0x1db1   :  { %v3763_v4 = vpack.c.bf16 %v3757_v38, %v3711_v33  ;;  %v4714_v40 = vpop.f32.mrb[123].mxu1  ;;  %v4719_v42 = vpop.f32.mrb[125].mxu0 }
0x1db2   :  { %v3760_v43 = vpop.f32.mrb[126].mxu0 }
0x1db3   :  { %v4720_v0 = vpop.f32.mrb[127].mxu0  ;;  %4724 = vmatmul.mubr.msk.bf16.vlgmr.msra.gmra.mrb[124].mxu1 %vm308_vm2, %v3763_v4 }
0x1e86   :  { %v3806_v45 = vpop.f32.mrb[124].mxu1 }
0x1e87   :  { %v3813_v1 = vadd.f32 %v3806_v45, %v5628_v30  ;;  %v4725_v48 = vpop.f32.mrb[125].mxu1 }
0x1e88   :  { %v3809_v5 = vpop.f32.mrb[126].mxu1 }
0x1e89   :  { %v3822_v11 = vadd.f32 %v4140_v46, %v3813_v1  ;;  %v3814_v49 = vadd.f32 %v3809_v5, %v5631_v34  ;;  %v4726_v6 = vpop.f32.mrb[127].mxu1 }
0x1e8b   :  { %v3823_v50 = vadd.f32 %v4140_v46, %v3814_v49  ;;  %v3824_v52 = vadd.f32 %v4853_v51, %v3822_v11 }
0x1e8d   :  { %v3826_v10 = vsel %vm103_vm1, %v3824_v52, 0.0  ;;  %v3825_v21 = vadd.f32 %v4854_v32, %v3823_v50 }
0x1e8e   :  { %3827 = vadd.xlane.f32.xlu0 %v3826_v10 }
0x1e8f   :  { %v3829_v30 = vsel %vm103_vm1, %v3825_v21, 0.0 }
0x1e90   :  { %3830 = vadd.xlane.f32.xlu1 %v3829_v30 }
0x1f1b   :  { %v3828_v36 = vpop.xlane.xlu0 %3827 }
0x1f1c   :  { %v3833_v34 = vmul.f32 0.03125, %v3828_v36 }
0x1f1d   :  { %v3831_v37 = vpop.xlane.xlu1 %3830 }
0x1f1e   :  { %v3835_v53 = vsub.f32 %v3824_v52, %v3833_v34  ;;  %v3834_v24 = vmul.f32 0.03125, %v3831_v37 }
0x1f20   :  { %v3836_v55 = vsub.f32 %v3825_v21, %v3834_v24  ;;  %v3837_v57 = vmul.f32 %v3835_v53, %v3835_v53 }
0x1f22   :  { %v3839_v58 = vsel %vm103_vm1, %v3837_v57, 0.0  ;;  %v3838_v60 = vmul.f32 %v3836_v55, %v3836_v55 }
0x1f23   :  { %3840 = vadd.xlane.f32.xlu0 %v3839_v58 }
0x1f24   :  { %v3842_v61 = vsel %vm103_vm1, %v3838_v60, 0.0 }
0x1f25   :  { %3843 = vadd.xlane.f32.xlu1 %v3842_v61 }
0x1fb0   :  { %v3841_v63 = vpop.xlane.xlu0 %3840 }
0x1fb1   :  { %v3845_v2 = vmul.f32 0.03125, %v3841_v63 }
0x1fb2   :  { %v3844_v3 = vpop.xlane.xlu1 %3843 }
0x1fb3   :  { %v3847_v7 = vadd.f32 1e-05, %v3845_v2  ;;  %v3846_v9 = vmul.f32 0.03125, %v3844_v3 }
0x1fb5   :  { %4847 = vrsqrt.f32 %v3847_v7  ;;  %v3848_v12 = vadd.f32 1e-05, %v3846_v9 }
0x1fb7   :  { %4849 = vrsqrt.f32 %v3848_v12 }
0x1fbf   :  { %v4848_v13 = vpop.eup %4847 }
0x1fc0   :  { %v3851_v15 = vmul.f32 %v4848_v13, %v3835_v53 }
0x1fc1   :  { %v4850_v16 = vpop.eup %4849 }
0x1fc2   :  { %v3852_v17 = vmul.f32 %v4850_v16, %v3836_v55  ;;  %v3860_v18 = vmul.f32 %v4141_v14, %v3851_v15 }
0x1fc4   :  { %v3861_v44 = vmul.f32 %v4141_v14, %v3852_v17  ;;  %v3869_v56 = vadd.f32 %v4142_v39, %v3860_v18 }
0x1fc6   :  { %v3870_v41 = vadd.f32 %v4142_v39, %v3861_v44  ;;  %3871 = vst.msk [vmem:[#allocation2] sm:$0xff] %vm103_vm1, %v3869_v56 }
0x1fc8   :  { %3872 = vst.msk [vmem:[#allocation2 + $0x8] sm:$0xff] %vm103_vm1, %v3870_v41 }
0x1fc9   :  { %4866 = shalt.err (!%p4863_p4)
}
0x1fca   :  { %s4867_s30 = scalar_lea.hbm %s5719_s14, 256 }
0x1fcb   :  { %p4868_p5 = scmp.ne.s32.totalorder %s5719_s14, %s4867_s30  ;;  %p4871_p6 = scmp.lt.u32.totalorder %s4867_s30, %s5719_s14 }
0x1fcd   :  { %p4873_p7 = pnand %p4871_p6, %p4868_p5 }
0x1fcf   :  { %4876 = shalt.err (!%p4873_p7)
}
0x1fd0   :  { %s4883_s5 = smov 128   ;;  %s4884_s2 = smov 8  }
0x1fd1   :  { %3884 = dma.vmem_to_hbm [thread:$0]  %s3879_s28, 256, %s5719_s14, [#allocation3], %s4883_s5, %s4883_s5, %s4884_s2  }
0x1fd2   :  { %4877 = dma.done.wait [#allocation3], 256  }
0x1fd3   :  { %4878 = vsyncadd [#allocation3], 4294967040 }
0x1fd4   :  { %3888 = vsyncpa [#allocation3], 1 }

// kernel: tpu_custom_call.1
= control target key start
LH: loop header
LB: loop body
LE: loop exit
PB: predicated region body
PF: predicated region fallthrough
CT: control target
= control target key end

     0   :  { %v4879_v1 = vmov 0.0   ;;  %vm4880_vm0 = vmmov 0   ;;  %vm103_vm1 = vcmask 261120   ;;  %s5705_s0 = inlined_call_operand.vmem [shape: f32[16,32], index: 0, kind: input, shape index: {}]   ;;  %s5706_s1 = inlined_call_operand.vmem [shape: bf16[16,32], index: 1, kind: input, shape index: {}]   ;;  %s5707_s2 = inlined_call_operand.vmem [shape: bf16[16,32], index: 2, kind: input, shape index: {}]   ;;  %s5708_s3 = inlined_call_operand.vmem [shape: f32[2,8], index: 3, kind: input, shape index: {}]   ;;  %s5709_s4 = inlined_call_operand.vmem [shape: bf16[8,32,4], index: 4, kind: input, shape index: {}]   ;;  %s5710_s5 = inlined_call_operand.vmem [shape: bf16[8,32,4], index: 5, kind: input, shape index: {}]   ;;  %s5711_s6 = inlined_call_operand.vmem [shape: bf16[8,32,4], index: 6, kind: input, shape index: {}]   ;;  %s5712_s7 = inlined_call_operand.vmem [shape: f32[8,1,4], index: 7, kind: input, shape index: {}]   ;;  %s5713_s8 = inlined_call_operand.vmem [shape: f32[8,1,4], index: 8, kind: input, shape index: {}]   ;;  %s5714_s9 = inlined_call_operand.vmem [shape: f32[8,1,4], index: 9, kind: input, shape index: {}]   ;;  %s5715_s10 = inlined_call_operand.vmem [shape: bf16[8,4,32], index: 10, kind: input, shape index: {}]   ;;  %s5716_s11 = inlined_call_operand.vmem [shape: f32[1,32], index: 11, kind: input, shape index: {}]   ;;  %s5717_s12 = inlined_call_operand.vmem [shape: f32[1,32], index: 12, kind: input, shape index: {}]   ;;  %s5718_s13 = inlined_call_operand.vmem [shape: f32[1,32], index: 13, kind: input, shape index: {}]   ;;  %s5719_s14 = inlined_call_operand.hbm [shape: f32[16,32], index: 14, kind: output, shape index: {}]  }
   0x1   :  { %v4733_v0 = vld [vmem:[%s5710_s5] sm:$0xff]   ;;  %4303 = vmatprep.subr.bf16.mxu1 %v4879_v1  ;;  %4295 = vmatprep.subr.bf16.mxu0 %v4879_v1  ;;  %v4734_v2 = vld [vmem:[%s5710_s5 + $0x8] sm:$0xff]  }
   0x2   :  { %4304 = vmatpush3.bf16.msra.mxu1 %v4733_v0  ;;  %v4735_v3 = vld [vmem:[%s5709_s4] sm:$0xff]   ;;  %4307 = vmatprep.mubr.msk.bf16.mxu1 %vm4880_vm0, %v4879_v1  ;;  %v4737_v5 = vld [vmem:[%s5709_s4 + $0x8] sm:$0xff]  }
   0x3   :  { %4305 = vmatprep.subr.bf16.mxu1 %v4879_v1  ;;  %v4977_v4 = vld [vmem:[%s5706_s1] sm:$0xff]   ;;  %4299 = vmatprep.mubr.msk.bf16.mxu0 %vm4880_vm0, %v4879_v1  ;;  %v50_v7 = vld [vmem:[%s5705_s0 + $0x8] sm:$0xff] }
   0x4   :  { %4296 = vmatpush3.bf16.msra.mxu0 %v4735_v3  ;;  %v49_v6 = vld [vmem:[%s5705_s0] sm:$0xff]  ;;  %v4739_v10 = vld [vmem:[%s5711_s6 + $0x8] sm:$0xff]  }
   0x5   :  { %4297 = vmatprep.subr.bf16.mxu0 %v4879_v1  ;;  %v4991_v8 = vpack.c.bf16 %v50_v7, %v49_v6  ;;  %v4738_v9 = vld [vmem:[%s5711_s6] sm:$0xff]  }
   0x6   :  { %4306 = vmatpush3.bf16.msra.mxu1 %v4734_v2 }
   0x7   :  { %4319 = vmatprep.subr.bf16.mxu1 %v4879_v1 }
   0x8   :  { %4298 = vmatpush3.bf16.msra.mxu0 %v4737_v5 }
   0x9   :  { %4308 = vmatmul.mubr.msk.bf16.vlgmr.msra.gmra.mrb[0].mxu1 %vm103_vm1, %v4977_v4  ;;  %4311 = vmatprep.subr.bf16.mxu0 %v4879_v1 }
   0xa   :  { %4321 = vmatprep.mubr.msk.bf16.mxu1 %vm4880_vm0, %v4879_v1 }
   0xb   :  { %4300 = vmatmul.mubr.msk.bf16.vlgmr.msra.gmra.mrb[0].mxu0 %vm103_vm1, %v4991_v8 }
   0xc   :  { %4312 = vmatpush3.bf16.msra.mxu0 %v4738_v9  ;;  %4315 = vmatprep.mubr.msk.bf16.mxu0 %vm4880_vm0, %v4879_v1 }
   0xd   :  { %4313 = vmatprep.subr.bf16.mxu0 %v4879_v1 }
  0x10   :  { %4314 = vmatpush3.bf16.msra.mxu0 %v4739_v10 }
  0x11   :  { %4325 = vmatprep.subr.bf16.mxu0 %v4879_v1 }
  0x12   :  { %19 = vsyncpa [#allocation3], 0  ;;  %v5014_v11 = vld [vmem:[%s5707_s2] sm:$0xff]   ;;  %vm308_vm2 = vcmask 31744   ;;  %vm429_vm3 = vcmask 1043456   ;;  %v69_v45 = vlaneseq  ;;  %vm401_vm4 = vcmask 64512  }
  0x13   :  { %4316 = vmatmul.mubr.msk.bf16.vlgmr.msra.gmra.mrb[4].mxu0 %vm103_vm1, %v5014_v11  ;;  %v3894_v12 = vld [vmem:[%s5713_s8] ss:$0 sm:$0xff]  ;;  %v4881_v43 = vmov 1966171168   ;;  %vm939_vm5 = vcmask 1041408   ;;  %s4882_s27 = smov [#allocation2]  }
  0x14   :  { %4327 = vmatprep.mubr.msk.bf16.mxu0 %vm4880_vm0, %v4879_v1  ;;  %v3890_v17 = vld [vmem:[%s5712_s7] ss:$0 sm:$0xff]  ;;  %v67_v44 = vunpack.c.l.s4 %v4881_v43  ;;  %v70_v48 = vshrl.u32 %v69_v45, 7  ;;  %s3878_s28 = sshll.u32 %s4882_s27, 4  ;;  %s3879_s28 = int_to_ptr.vmem [resolvable:$true] %s3878_s28 }
  0x15   :  { %v3899_v32 = vld [vmem:[%s5714_s9] ss:$0 sm:$0xff]  ;;  %s4855_s29 = scalar_lea.vmem %s3879_s28, 256  ;;  %p4860_p1 = scmp.lt.s32.totalorder %s3879_s28, %s3879_s28 }
  0x16   :  { %v3889_v46 = vld.sshfl [vmem:[%s5708_s3] sm:$0x11 pattern:$0x75316420]  ;;  %v68_v47 = vunpack.c.0.s8 %v67_v44  ;;  %v300_v53 = vsub.s32 0, %v70_v48  ;;  %p4856_p0 = scmp.ne.s32.totalorder %s3879_s28, %s4855_s29  ;;  %p4861_p2 = scmp.lt.s32.totalorder %s4855_s29, %s4855_s29 }
  0x17   :  { %v65_v49 = vcombine.high %v3889_v46, %v3889_v46 }
  0x18   :  { %v71_v50 = vsub.s32 %v68_v47, %v70_v48  ;;  %p4862_p3 = por %p4861_p2, %p4860_p1 }
  0x1a   :  { %v79_v51 = vrot.slane %v65_v49, %v71_v50  ;;  %v72_v52 = vrot.slane %v3889_v46, %v71_v50  ;;  %v3913_v46 = vld [vmem:[%s5712_s7 + $0x1] ss:$0 sm:$0xff]  ;;  %p4863_p4 = pnand %p4862_p3, %p4856_p0 }
  0x1c   :  { %v5046_v54 = vrot.slane %v79_v51, %v300_v53  ;;  %v5048_v56 = vrot.slane %v72_v52, %v300_v53 }
  0xdc   :  { %v213_v13 = vpop.f32.mrb[0].mxu1 }
  0xdd   :  { %v214_v14 = vadd.f32 %v3894_v12, %v213_v13  ;;  %v4309_v15 = vpop.f32.mrb[1].mxu1 }
  0xde   :  { %v216_v16 = vpop.f32.mrb[2].mxu1  ;;  %v141_v18 = vpop.f32.mrb[0].mxu0 }
  0xdf   :  { %v294_v19 = vpack.c.bf16 %v214_v14, %v214_v14  ;;  %v217_v20 = vadd.f32 %v3894_v12, %v216_v16  ;;  %v4310_v21 = vpop.f32.mrb[3].mxu1  ;;  %v4301_v22 = vpop.f32.mrb[1].mxu0  ;;  %v142_v26 = vadd.f32 %v3890_v17, %v141_v18 }
  0xe0   :  { %v144_v23 = vpop.f32.mrb[2].mxu0  ;;  %v4741_v22 = vld [vmem:[%s5710_s5 + $0x10] sm:$0xff]  }
  0xe1   :  { %v313_v24 = vsel %vm308_vm2, %v294_v19, 0  ;;  %v295_v25 = vpack.c.bf16 %v217_v20, %v217_v20  ;;  %v4302_v27 = vpop.f32.mrb[3].mxu0  ;;  %v292_v29 = vpack.c.bf16 %v142_v26, %v142_v26  ;;  %v145_v30 = vadd.f32 %v3890_v17, %v144_v23  ;;  %v4742_v26 = vld [vmem:[%s5710_s5 + $0x18] sm:$0xff]  }
  0xe2   :  { %4320 = vmatpush3.bf16.xpose.msra.mxu1 %v313_v24  ;;  %v4743_v27 = vld [vmem:[%s5709_s4 + $0x10] sm:$0xff]  }
  0xe3   :  { %v359_v28 = vsel %vm308_vm2, %v295_v25, 0  ;;  %4331 = vmatprep.subr.bf16.mxu1 %v4879_v1  ;;  %v293_v31 = vpack.c.bf16 %v145_v30, %v145_v30  ;;  %v4745_v30 = vld [vmem:[%s5711_s6 + $0x10] sm:$0xff]  }
  0xe4   :  { %4326 = vmatpush3.bf16.xpose.msra.mxu0 %v359_v28 }
  0xe5   :  { %4337 = vmatprep.subr.bf16.mxu0 %v4879_v1 }
  0xe6   :  { %v285_v33 = vpop.f32.mrb[4].mxu0 }
  0xe7   :  { %v286_v34 = vadd.f32 %v3899_v32, %v285_v33  ;;  %v4317_v35 = vpop.f32.mrb[5].mxu0 }
  0xe8   :  { %v288_v36 = vpop.f32.mrb[6].mxu0 }
  0xe9   :  { %4322 = vmatmul.mubr.msk.bf16.vlgmr.msra.gmra.mrb[4].mxu1 %vm308_vm2, %v292_v29  ;;  %v296_v37 = vpack.c.bf16 %v286_v34, %v286_v34  ;;  %v289_v38 = vadd.f32 %v3899_v32, %v288_v36  ;;  %v4318_v39 = vpop.f32.mrb[7].mxu0  ;;  %v4744_v29 = vld [vmem:[%s5709_s4 + $0x18] sm:$0xff]  }
  0xea   :  { %4333 = vmatprep.mubr.msk.bf16.mxu1 %vm4880_vm0, %v4879_v1 }
  0xeb   :  { %4328 = vmatmul.mubr.msk.bf16.vlgmr.msra.gmra.mrb[8].mxu0 %vm308_vm2, %v293_v31  ;;  %v431_v40 = vsel %vm429_vm3, %v296_v37, 0  ;;  %v297_v41 = vpack.c.bf16 %v289_v38, %v289_v38  ;;  %v4746_v31 = vld [vmem:[%s5711_s6 + $0x18] sm:$0xff]  }
  0xec   :  { %4339 = vmatprep.mubr.msk.bf16.mxu0 %vm4880_vm0, %v4879_v1  ;;  %4332 = vmatpush3.bf16.msra.mxu1 %v431_v40  ;;  %v3922_v40 = vld [vmem:[%s5713_s8 + $0x1] ss:$0 sm:$0xff] }
  0xed   :  { %v477_v42 = vsel %vm429_vm3, %v297_v41, 0  ;;  %4343 = vmatprep.subr.bf16.mxu1 %v4879_v1 }
  0xee   :  { %4338 = vmatpush3.bf16.msra.mxu0 %v477_v42 }
  0xef   :  { %4351 = vmatprep.subr.bf16.mxu0 %v4879_v1 }
 0x1bc   :  { %v349_v55 = vpop.f32.mrb[4].mxu1 }
 0x1bd   :  { %v4323_v57 = vpop.f32.mrb[5].mxu1  ;;  %v350_v0 = vadd.f32 %v349_v55, %v5048_v56 }
 0x1be   :  { %v352_v58 = vpop.f32.mrb[6].mxu1  ;;  %v395_v59 = vpop.f32.mrb[8].mxu0 }
 0x1bf   :  { %v396_v60 = vadd.f32 %v395_v59, %v5046_v54  ;;  %v4324_v61 = vpop.f32.mrb[7].mxu1  ;;  %v4329_v62 = vpop.f32.mrb[9].mxu0  ;;  %v402_v5 = vsel %vm401_vm4, %v350_v0, -inf }
 0x1c0   :  { %v398_v63 = vpop.f32.mrb[10].mxu0 }
 0x1c1   :  { %v4330_v2 = vpop.f32.mrb[11].mxu0  ;;  %v405_v3 = vsel %vm401_vm4, %v396_v60, -inf  ;;  %v3931_v63 = vld [vmem:[%s5714_s9 + $0x1] ss:$0 sm:$0xff] }
 0x1c2   :  { %406 = vmax.xlane.f32.xlu0 %v405_v3 }
 0x1c6   :  { %403 = vmax.xlane.f32.xlu0 %v402_v5 }
 0x24f   :  { %v407_v6 = vpop.xlane.xlu0 %406 }
 0x250   :  { %v409_v7 = vsub.f32 %v396_v60, %v407_v6 }
 0x252   :  { %v412_v9 = vmul.f32 1.442695, %v409_v7 }
 0x253   :  { %v404_v10 = vpop.xlane.xlu0 %403 }
 0x254   :  { %4783 = vpow2.f32 %v412_v9  ;;  %v408_v12 = vsub.f32 %v350_v0, %v404_v10 }
 0x256   :  { %v410_v13 = vmul.f32 1.442695, %v408_v12 }
 0x258   :  { %4785 = vpow2.f32 %v410_v13 }
 0x25e   :  { %v4784_v14 = vpop.eup %4783 }
 0x25f   :  { %v417_v15 = vsel %vm401_vm4, %v4784_v14, 0.0 }
 0x260   :  { %418 = vadd.xlane.f32.xlu1 %v417_v15 }
 0x262   :  { %v4786_v16 = vpop.eup %4785 }
 0x263   :  { %v414_v17 = vsel %vm401_vm4, %v4786_v16, 0.0 }
 0x264   :  { %415 = vadd.xlane.f32.xlu1 %v414_v17 }
 0x2ed   :  { %v419_v18 = vpop.xlane.xlu1 %418 }
 0x2ee   :  { %4787 = vrcp.f32 %v419_v18 }
 0x2f1   :  { %v416_v19 = vpop.xlane.xlu1 %415 }
 0x2f2   :  { %4789 = vrcp.f32 %v416_v19 }
 0x2f8   :  { %v4788_v20 = vpop.eup %4787 }
 0x2f9   :  { %v423_v21 = vmul.f32 %v4788_v20, %v4784_v14 }
 0x2fb   :  { %v425_v23 = vpack.c.bf16 %v423_v21, %v423_v21 }
 0x2fc   :  { %v4790_v24 = vpop.eup %4789 }
 0x2fd   :  { %v422_v25 = vmul.f32 %v4790_v24, %v4786_v16  ;;  %4340 = vmatmul.mubr.msk.bf16.vlgmr.msra.gmra.mrb[12].mxu0 %vm401_vm4, %v425_v23 }
 0x2fe   :  { %4352 = vmatpush3.bf16.msra.mxu0 %v4741_v22  ;;  %4355 = vmatprep.mubr.msk.bf16.mxu0 %vm4880_vm0, %v4879_v1 }
 0x2ff   :  { %v424_v28 = vpack.c.bf16 %v422_v25, %v422_v25  ;;  %4353 = vmatprep.subr.bf16.mxu0 %v4879_v1 }
 0x301   :  { %4334 = vmatmul.mubr.msk.bf16.vlgmr.msra.gmra.mrb[8].mxu1 %vm401_vm4, %v424_v28 }
 0x302   :  { %4354 = vmatpush3.bf16.msra.mxu0 %v4742_v26  ;;  %4344 = vmatpush3.bf16.msra.mxu1 %v4743_v27 }
 0x303   :  { %4345 = vmatprep.subr.bf16.mxu1 %v4879_v1  ;;  %4347 = vmatprep.mubr.msk.bf16.mxu1 %vm4880_vm0, %v4879_v1 }
 0x304   :  { %4367 = vmatprep.subr.bf16.mxu0 %v4879_v1 }
 0x305   :  { %4356 = vmatmul.mubr.msk.bf16.vlgmr.msra.gmra.mrb[16].mxu0 %vm103_vm1, %v4977_v4 }
 0x306   :  { %4346 = vmatpush3.bf16.msra.mxu1 %v4744_v29  ;;  %4369 = vmatprep.mubr.msk.bf16.mxu0 %vm4880_vm0, %v4879_v1 }
 0x307   :  { %4359 = vmatprep.subr.bf16.mxu1 %v4879_v1 }
 0x309   :  { %4348 = vmatmul.mubr.msk.bf16.vlgmr.msra.gmra.mrb[12].mxu1 %vm103_vm1, %v4991_v8 }
 0x30a   :  { %4363 = vmatprep.mubr.msk.bf16.mxu1 %vm4880_vm0, %v4879_v1  ;;  %4360 = vmatpush3.bf16.msra.mxu1 %v4745_v30 }
 0x30b   :  { %4361 = vmatprep.subr.bf16.mxu1 %v4879_v1 }
 0x30e   :  { %4362 = vmatpush3.bf16.msra.mxu1 %v4746_v31 }
 0x30f   :  { %4373 = vmatprep.subr.bf16.mxu1 %v4879_v1 }
 0x311   :  { %4364 = vmatmul.mubr.msk.bf16.vlgmr.msra.gmra.mrb[16].mxu1 %vm103_vm1, %v5014_v11 }
 0x312   :  { %4375 = vmatprep.mubr.msk.bf16.mxu1 %vm4880_vm0, %v4879_v1 }
 0x3d0   :  { %v5098_v32 = vpop.f32.mrb[12].mxu0 }
 0x3d1   :  { %v4341_v33 = vpop.f32.mrb[13].mxu0 }
 0x3d2   :  { %v516_v34 = vpop.f32.mrb[14].mxu0 }
 0x3d3   :  { %v4342_v35 = vpop.f32.mrb[15].mxu0 }
 0x3d4   :  { %v5100_v36 = vpop.f32.mrb[8].mxu1 }
 0x3d5   :  { %v519_v37 = vpack.c.bf16 %v5098_v32, %v5100_v36  ;;  %v4335_v38 = vpop.f32.mrb[9].mxu1 }
 0x3d6   :  { %v470_v39 = vpop.f32.mrb[10].mxu1 }
 0x3d7   :  { %v4336_v41 = vpop.f32.mrb[11].mxu1 }
 0x3d8   :  { %v646_v42 = vpop.f32.mrb[16].mxu0 }
 0x3d9   :  { %v647_v43 = vadd.f32 %v3922_v40, %v646_v42  ;;  %v4357_v44 = vpop.f32.mrb[17].mxu0  ;;  %v3939_v42 = vld [vmem:[%s5715_s10 + $0x2] sm:$0x3] }
 0x3da   :  { %v649_v45 = vpop.f32.mrb[18].mxu0 }
 0x3db   :  { %v721_v47 = vpack.c.bf16 %v647_v43, %v647_v43  ;;  %v650_v48 = vadd.f32 %v3922_v40, %v649_v45  ;;  %v4358_v49 = vpop.f32.mrb[19].mxu0  ;;  %v520_v45 = vld [vmem:[%s5715_s10] sm:$0x3] }
 0x3dc   :  { %v580_v50 = vpop.f32.mrb[12].mxu1 }
 0x3dd   :  { %v729_v51 = vsel %vm308_vm2, %v721_v47, 0  ;;  %v722_v52 = vpack.c.bf16 %v650_v48, %v650_v48  ;;  %v581_v53 = vadd.f32 %v3913_v46, %v580_v50  ;;  %v4349_v55 = vpop.f32.mrb[13].mxu1  ;;  %v941_v48 = vsel %vm939_vm5, %v3939_v42, 0 }
 0x3de   :  { %4368 = vmatpush3.bf16.xpose.msra.mxu0 %v729_v51  ;;  %v583_v57 = vpop.f32.mrb[14].mxu1  ;;  %v988_v50 = vsel %vm939_vm5, %v520_v45, 0  ;;  %v4747_v51 = vld [vmem:[%s5710_s5 + $0x20] sm:$0xff]  }
 0x3df   :  { %v775_v58 = vsel %vm308_vm2, %v722_v52, 0  ;;  %v4350_v59 = vpop.f32.mrb[15].mxu1  ;;  %4379 = vmatprep.subr.bf16.mxu0 %v4879_v1  ;;  %v719_v60 = vpack.c.bf16 %v581_v53, %v581_v53  ;;  %v584_v61 = vadd.f32 %v3913_v46, %v583_v57  ;;  %v4748_v52 = vld [vmem:[%s5710_s5 + $0x28] sm:$0xff]   ;;  %v4749_v55 = vld [vmem:[%s5709_s4 + $0x20] sm:$0xff]  }
 0x3e0   :  { %4374 = vmatpush3.bf16.xpose.msra.mxu1 %v775_v58 }
 0x3e1   :  { %4385 = vmatprep.subr.bf16.mxu1 %v4879_v1  ;;  %v720_v62 = vpack.c.bf16 %v584_v61, %v584_v61 }
 0x3e4   :  { %v712_v0 = vpop.f32.mrb[16].mxu1 }
 0x3e5   :  { %4370 = vmatmul.mubr.msk.bf16.vlgmr.msra.gmra.mrb[20].mxu0 %vm308_vm2, %v719_v60  ;;  %v713_v2 = vadd.f32 %v3931_v63, %v712_v0  ;;  %v4365_v3 = vpop.f32.mrb[17].mxu1  ;;  %v4751_v0 = vld [vmem:[%s5711_s6 + $0x20] sm:$0xff]  }
 0x3e6   :  { %4381 = vmatprep.mubr.msk.bf16.mxu0 %vm4880_vm0, %v4879_v1  ;;  %v715_v5 = vpop.f32.mrb[18].mxu1 }
 0x3e7   :  { %4376 = vmatmul.mubr.msk.bf16.vlgmr.msra.gmra.mrb[20].mxu1 %vm308_vm2, %v720_v62  ;;  %v723_v6 = vpack.c.bf16 %v713_v2, %v713_v2  ;;  %v716_v7 = vadd.f32 %v3931_v63, %v715_v5  ;;  %v4366_v9 = vpop.f32.mrb[19].mxu1  ;;  %v4750_v62 = vld [vmem:[%s5709_s4 + $0x28] sm:$0xff]  }
 0x3e8   :  { %4387 = vmatprep.mubr.msk.bf16.mxu1 %vm4880_vm0, %v4879_v1 }
 0x3e9   :  { %v845_v10 = vsel %vm429_vm3, %v723_v6, 0  ;;  %v724_v12 = vpack.c.bf16 %v716_v7, %v716_v7  ;;  %v4752_v6 = vld [vmem:[%s5711_s6 + $0x28] sm:$0xff]   ;;  %v3956_v7 = vld [vmem:[%s5713_s8 + $0x2] ss:$0 sm:$0xff] }
 0x3ea   :  { %4380 = vmatpush3.bf16.msra.mxu0 %v845_v10 }
 0x3eb   :  { %v891_v13 = vsel %vm429_vm3, %v724_v12, 0  ;;  %4391 = vmatprep.subr.bf16.mxu0 %v4879_v1 }
 0x3ec   :  { %4386 = vmatpush3.bf16.msra.mxu1 %v891_v13 }
 0x3ed   :  { %4397 = vmatprep.subr.bf16.mxu1 %v4879_v1 }
 0x4b8   :  { %v765_v14 = vpop.f32.mrb[20].mxu0 }
 0x4b9   :  { %v766_v15 = vadd.f32 %v765_v14, %v5048_v56  ;;  %v4371_v16 = vpop.f32.mrb[21].mxu0 }
 0x4ba   :  { %v768_v17 = vpop.f32.mrb[22].mxu0  ;;  %v811_v18 = vpop.f32.mrb[20].mxu1 }
 0x4bb   :  { %v812_v19 = vadd.f32 %v811_v18, %v5046_v54  ;;  %v4372_v20 = vpop.f32.mrb[23].mxu0  ;;  %v4377_v21 = vpop.f32.mrb[21].mxu1  ;;  %v817_v22 = vsel %vm401_vm4, %v766_v15, -inf }
 0x4bc   :  { %v814_v23 = vpop.f32.mrb[22].mxu1  ;;  %818 = vmax.xlane.f32.xlu0 %v817_v22 }
 0x4bd   :  { %v4378_v24 = vpop.f32.mrb[23].mxu1  ;;  %v820_v25 = vsel %vm401_vm4, %v812_v19, -inf }
 0x4be   :  { %821 = vmax.xlane.f32.xlu1 %v820_v25 }
 0x549   :  { %v819_v26 = vpop.xlane.xlu0 %818 }
 0x54a   :  { %v823_v27 = vsub.f32 %v766_v15, %v819_v26  ;;  %v3947_v26 = vld [vmem:[%s5712_s7 + $0x2] ss:$0 sm:$0xff] }
 0x54b   :  { %v822_v28 = vpop.xlane.xlu1 %821 }
 0x54c   :  { %v825_v29 = vmul.f32 1.442695, %v823_v27  ;;  %v824_v30 = vsub.f32 %v812_v19, %v822_v28 }
 0x54e   :  { %4791 = vpow2.f32 %v825_v29  ;;  %v827_v31 = vmul.f32 1.442695, %v824_v30 }
 0x550   :  { %4793 = vpow2.f32 %v827_v31 }
 0x558   :  { %v4792_v33 = vpop.eup %4791 }
 0x559   :  { %v829_v34 = vsel %vm401_vm4, %v4792_v33, 0.0 }
 0x55a   :  { %v4794_v35 = vpop.eup %4793  ;;  %830 = vadd.xlane.f32.xlu0 %v829_v34 }
 0x55b   :  { %v832_v38 = vsel %vm401_vm4, %v4794_v35, 0.0 }
 0x55c   :  { %833 = vadd.xlane.f32.xlu1 %v832_v38  ;;  %v3965_v38 = vld [vmem:[%s5714_s9 + $0x2] ss:$0 sm:$0xff] }
 0x5e7   :  { %v831_v39 = vpop.xlane.xlu0 %830 }
 0x5e8   :  { %4795 = vrcp.f32 %v831_v39 }
 0x5e9   :  { %v834_v40 = vpop.xlane.xlu1 %833 }
 0x5ea   :  { %4797 = vrcp.f32 %v834_v40 }
 0x5f2   :  { %v4796_v41 = vpop.eup %4795 }
 0x5f3   :  { %v837_v43 = vmul.f32 %v4796_v41, %v4792_v33 }
 0x5f4   :  { %v4798_v44 = vpop.eup %4797 }
 0x5f5   :  { %v838_v46 = vmul.f32 %v4798_v44, %v4794_v35  ;;  %v839_v47 = vpack.c.bf16 %v837_v43, %v837_v43 }
 0x5f7   :  { %4382 = vmatmul.mubr.msk.bf16.vlgmr.msra.gmra.mrb[24].mxu0 %vm401_vm4, %v839_v47  ;;  %v840_v49 = vpack.c.bf16 %v838_v46, %v838_v46 }
 0x5f8   :  { %4392 = vmatpush3.bf16.msra.mxu0 %v941_v48  ;;  %4393 = vmatprep.mubr.msk.bf16.mxu0 %vm4880_vm0, %v4879_v1 }
 0x5f9   :  { %4388 = vmatmul.mubr.msk.bf16.vlgmr.msra.gmra.mrb[24].mxu1 %vm401_vm4, %v840_v49  ;;  %4403 = vmatprep.subr.bf16.mxu0 %v4879_v1 }
 0x5fa   :  { %4398 = vmatpush3.bf16.msra.mxu1 %v988_v50  ;;  %4399 = vmatprep.mubr.msk.bf16.mxu1 %vm4880_vm0, %v4879_v1 }
 0x5fb   :  { %4411 = vmatprep.subr.bf16.mxu1 %v4879_v1 }
 0x601   :  { %4400 = vmatmul.mubr.msk.bf16.vlgmr.msra.gmra.mrb[28].mxu1 %vm308_vm2, %v519_v37 }
 0x602   :  { %4412 = vmatpush3.bf16.msra.mxu1 %v4747_v51  ;;  %4415 = vmatprep.mubr.msk.bf16.mxu1 %vm4880_vm0, %v4879_v1 }
 0x603   :  { %4413 = vmatprep.subr.bf16.mxu1 %v4879_v1 }
 0x606   :  { %4414 = vmatpush3.bf16.msra.mxu1 %v4748_v52 }
 0x607   :  { %4427 = vmatprep.subr.bf16.mxu1 %v4879_v1 }
 0x609   :  { %4416 = vmatmul.mubr.msk.bf16.vlgmr.msra.gmra.mrb[32].mxu1 %vm103_vm1, %v4977_v4 }
 0x60a   :  { %4429 = vmatprep.mubr.msk.bf16.mxu1 %vm4880_vm0, %v4879_v1 }
 0x6ca   :  { %v881_v32 = vpop.f32.mrb[24].mxu0 }
 0x6cb   :  { %v4383_v36 = vpop.f32.mrb[25].mxu0 }
 0x6cc   :  { %v884_v37 = vpop.f32.mrb[26].mxu0  ;;  %v927_v53 = vpop.f32.mrb[24].mxu1 }
 0x6cd   :  { %v933_v57 = vpack.c.bf16 %v927_v53, %v881_v32  ;;  %v4384_v58 = vpop.f32.mrb[27].mxu0  ;;  %v4389_v59 = vpop.f32.mrb[25].mxu1 }
 0x6ce   :  { %v930_v60 = vpop.f32.mrb[26].mxu1 }
 0x6cf   :  { %v4390_v61 = vpop.f32.mrb[27].mxu1  ;;  %4394 = vmatmul.mubr.msk.bf16.vlgmr.msra.gmra.mrb[28].mxu0 %vm308_vm2, %v933_v57 }
 0x6d0   :  { %4404 = vmatpush3.bf16.msra.mxu0 %v4749_v55  ;;  %4407 = vmatprep.mubr.msk.bf16.mxu0 %vm4880_vm0, %v4879_v1 }
 0x6d1   :  { %4405 = vmatprep.subr.bf16.mxu0 %v4879_v1 }
 0x6d4   :  { %v1024_v63 = vpop.f32.mrb[28].mxu1  ;;  %4406 = vmatpush3.bf16.msra.mxu0 %v4750_v62 }
 0x6d5   :  { %v4401_v2 = vpop.f32.mrb[29].mxu1  ;;  %4419 = vmatprep.subr.bf16.mxu0 %v4879_v1 }
 0x6d6   :  { %v1027_v3 = vpop.f32.mrb[30].mxu1 }
 0x6d7   :  { %v4402_v5 = vpop.f32.mrb[31].mxu1  ;;  %4408 = vmatmul.mubr.msk.bf16.vlgmr.msra.gmra.mrb[32].mxu0 %vm103_vm1, %v4991_v8 }
 0x6d8   :  { %4420 = vmatpush3.bf16.msra.mxu0 %v4751_v0  ;;  %4423 = vmatprep.mubr.msk.bf16.mxu0 %vm4880_vm0, %v4879_v1 }
 0x6d9   :  { %4421 = vmatprep.subr.bf16.mxu0 %v4879_v1 }
 0x6dc   :  { %v1156_v9 = vpop.f32.mrb[32].mxu1  ;;  %4422 = vmatpush3.bf16.msra.mxu0 %v4752_v6 }
 0x6dd   :  { %v1157_v10 = vadd.f32 %v3956_v7, %v1156_v9  ;;  %v4417_v12 = vpop.f32.mrb[33].mxu1  ;;  %4433 = vmatprep.subr.bf16.mxu0 %v4879_v1 }
 0x6de   :  { %v1159_v13 = vpop.f32.mrb[34].mxu1 }
 0x6df   :  { %v1231_v14 = vpack.c.bf16 %v1157_v10, %v1157_v10  ;;  %v1160_v15 = vadd.f32 %v3956_v7, %v1159_v13  ;;  %v4418_v16 = vpop.f32.mrb[35].mxu1  ;;  %4424 = vmatmul.mubr.msk.bf16.vlgmr.msra.gmra.mrb[36].mxu0 %vm103_vm1, %v5014_v11  ;;  %v3973_v13 = vld [vmem:[%s5715_s10 + $0x4] sm:$0x3] }
 0x6e0   :  { %4435 = vmatprep.mubr.msk.bf16.mxu0 %vm4880_vm0, %v4879_v1 }
 0x6e1   :  { %v1239_v17 = vsel %vm308_vm2, %v1231_v14, 0  ;;  %v1232_v18 = vpack.c.bf16 %v1160_v15, %v1160_v15 }
 0x6e2   :  { %4428 = vmatpush3.bf16.xpose.msra.mxu1 %v1239_v17 }
 0x6e3   :  { %v1285_v19 = vsel %vm308_vm2, %v1232_v18, 0  ;;  %4439 = vmatprep.subr.bf16.mxu1 %v4879_v1  ;;  %v1450_v18 = vsel %vm939_vm5, %v3973_v13, 0 }
 0x6e5   :  { %4434 = vmatpush3.bf16.xpose.msra.mxu0 %v1285_v19 }
 0x6e6   :  { %4445 = vmatprep.subr.bf16.mxu0 %v4879_v1 }
 0x7a2   :  { %v977_v20 = vpop.f32.mrb[28].mxu0 }
 0x7a3   :  { %v5201_v21 = vadd.f32 %v1024_v63, %v977_v20  ;;  %v4395_v22 = vpop.f32.mrb[29].mxu0  ;;  %v4755_v20 = vld [vmem:[%s5709_s4 + $0x30] sm:$0xff]  }
 0x7a4   :  { %v980_v23 = vpop.f32.mrb[30].mxu0  ;;  %v4756_v22 = vld [vmem:[%s5709_s4 + $0x38] sm:$0xff]  }
 0x7a5   :  { %v5203_v24 = vadd.f32 %v1027_v3, %v980_v23  ;;  %v4396_v25 = vpop.f32.mrb[31].mxu0 }
 0x7aa   :  { %v1090_v27 = vpop.f32.mrb[32].mxu0 }
 0x7ab   :  { %v1091_v28 = vadd.f32 %v3947_v26, %v1090_v27  ;;  %v4409_v29 = vpop.f32.mrb[33].mxu0 }
 0x7ac   :  { %v1093_v30 = vpop.f32.mrb[34].mxu0 }
 0x7ad   :  { %v1229_v31 = vpack.c.bf16 %v1091_v28, %v1091_v28  ;;  %v1094_v33 = vadd.f32 %v3947_v26, %v1093_v30  ;;  %v4410_v34 = vpop.f32.mrb[35].mxu0  ;;  %v4753_v28 = vld [vmem:[%s5710_s5 + $0x30] sm:$0xff]  }
 0x7af   :  { %v1230_v35 = vpack.c.bf16 %v1094_v33, %v1094_v33  ;;  %4430 = vmatmul.mubr.msk.bf16.vlgmr.msra.gmra.mrb[36].mxu1 %vm308_vm2, %v1229_v31 }
 0x7b0   :  { %4441 = vmatprep.mubr.msk.bf16.mxu1 %vm4880_vm0, %v4879_v1 }
 0x7b1   :  { %4436 = vmatmul.mubr.msk.bf16.vlgmr.msra.gmra.mrb[40].mxu0 %vm308_vm2, %v1230_v35  ;;  %v4754_v35 = vld [vmem:[%s5710_s5 + $0x38] sm:$0xff]  }
 0x7b2   :  { %v1222_v39 = vpop.f32.mrb[36].mxu0  ;;  %4447 = vmatprep.mubr.msk.bf16.mxu0 %vm4880_vm0, %v4879_v1 }
 0x7b3   :  { %v1223_v40 = vadd.f32 %v3965_v38, %v1222_v39  ;;  %v4425_v41 = vpop.f32.mrb[37].mxu0  ;;  %v4758_v39 = vld [vmem:[%s5711_s6 + $0x38] sm:$0xff]  }
 0x7b4   :  { %v1225_v42 = vpop.f32.mrb[38].mxu0 }
 0x7b5   :  { %v1233_v43 = vpack.c.bf16 %v1223_v40, %v1223_v40  ;;  %v1226_v44 = vadd.f32 %v3965_v38, %v1225_v42  ;;  %v4426_v45 = vpop.f32.mrb[39].mxu0  ;;  %v4757_v38 = vld [vmem:[%s5711_s6 + $0x30] sm:$0xff]  }
 0x7b7   :  { %v1355_v46 = vsel %vm429_vm3, %v1233_v43, 0  ;;  %v1234_v47 = vpack.c.bf16 %v1226_v44, %v1226_v44 }
 0x7b8   :  { %4440 = vmatpush3.bf16.msra.mxu1 %v1355_v46 }
 0x7b9   :  { %v1401_v48 = vsel %vm429_vm3, %v1234_v47, 0  ;;  %4451 = vmatprep.subr.bf16.mxu1 %v4879_v1 }
 0x7ba   :  { %4446 = vmatpush3.bf16.msra.mxu0 %v1401_v48 }
 0x7bb   :  { %4457 = vmatprep.subr.bf16.mxu0 %v4879_v1 }
 0x882   :  { %v1275_v49 = vpop.f32.mrb[36].mxu1 }
 0x883   :  { %v1276_v50 = vadd.f32 %v1275_v49, %v5048_v56  ;;  %v4431_v51 = vpop.f32.mrb[37].mxu1 }
 0x884   :  { %v1278_v52 = vpop.f32.mrb[38].mxu1  ;;  %v1321_v32 = vpop.f32.mrb[40].mxu0 }
 0x885   :  { %v1322_v36 = vadd.f32 %v1321_v32, %v5046_v54  ;;  %v4432_v37 = vpop.f32.mrb[39].mxu1  ;;  %v4437_v53 = vpop.f32.mrb[41].mxu0  ;;  %v1327_v55 = vsel %vm401_vm4, %v1276_v50, -inf  ;;  %v3980_v32 = vld [vmem:[%s5712_s7 + $0x3] ss:$0 sm:$0xff] }
 0x886   :  { %1328 = vmax.xlane.f32.xlu0 %v1327_v55  ;;  %v1324_v57 = vpop.f32.mrb[42].mxu0 }
 0x887   :  { %v4438_v58 = vpop.f32.mrb[43].mxu0  ;;  %v1330_v59 = vsel %vm401_vm4, %v1322_v36, -inf }
 0x888   :  { %1331 = vmax.xlane.f32.xlu1 %v1330_v59 }
 0x913   :  { %v1329_v60 = vpop.xlane.xlu0 %1328 }
 0x914   :  { %v1333_v61 = vsub.f32 %v1276_v50, %v1329_v60 }
 0x915   :  { %v1332_v62 = vpop.xlane.xlu1 %1331 }
 0x916   :  { %v1335_v63 = vmul.f32 1.442695, %v1333_v61  ;;  %v1334_v0 = vsub.f32 %v1322_v36, %v1332_v62  ;;  %v3998_v61 = vld [vmem:[%s5714_s9 + $0x3] ss:$0 sm:$0xff] }
 0x918   :  { %4799 = vpow2.f32 %v1335_v63  ;;  %v1337_v2 = vmul.f32 1.442695, %v1334_v0 }
 0x91a   :  { %4801 = vpow2.f32 %v1337_v2 }
 0x922   :  { %v4800_v3 = vpop.eup %4799 }
 0x923   :  { %v1339_v5 = vsel %vm401_vm4, %v4800_v3, 0.0 }
 0x924   :  { %v4802_v6 = vpop.eup %4801  ;;  %1340 = vadd.xlane.f32.xlu0 %v1339_v5 }
 0x925   :  { %v1342_v7 = vsel %vm401_vm4, %v4802_v6, 0.0 }
 0x926   :  { %1343 = vadd.xlane.f32.xlu1 %v1342_v7 }
 0x9b1   :  { %v1341_v9 = vpop.xlane.xlu0 %1340 }
 0x9b2   :  { %4803 = vrcp.f32 %v1341_v9 }
 0x9b3   :  { %v1344_v10 = vpop.xlane.xlu1 %1343 }
 0x9b4   :  { %4805 = vrcp.f32 %v1344_v10 }
 0x9bc   :  { %v4804_v12 = vpop.eup %4803 }
 0x9bd   :  { %v1347_v14 = vmul.f32 %v4804_v12, %v4800_v3 }
 0x9be   :  { %v4806_v15 = vpop.eup %4805 }
 0x9bf   :  { %v1348_v16 = vmul.f32 %v4806_v15, %v4802_v6  ;;  %v1349_v17 = vpack.c.bf16 %v1347_v14, %v1347_v14 }
 0x9c1   :  { %4442 = vmatmul.mubr.msk.bf16.vlgmr.msra.gmra.mrb[40].mxu1 %vm401_vm4, %v1349_v17  ;;  %v1350_v19 = vpack.c.bf16 %v1348_v16, %v1348_v16 }
 0x9c2   :  { %4452 = vmatpush3.bf16.msra.mxu1 %v1450_v18  ;;  %4453 = vmatprep.mubr.msk.bf16.mxu1 %vm4880_vm0, %v4879_v1 }
 0x9c3   :  { %4448 = vmatmul.mubr.msk.bf16.vlgmr.msra.gmra.mrb[44].mxu0 %vm401_vm4, %v1350_v19  ;;  %4465 = vmatprep.subr.bf16.mxu1 %v4879_v1 }
 0x9c4   :  { %4461 = vmatprep.mubr.msk.bf16.mxu0 %vm4880_vm0, %v4879_v1  ;;  %4458 = vmatpush3.bf16.msra.mxu0 %v4755_v20 }
 0x9c5   :  { %4459 = vmatprep.subr.bf16.mxu0 %v4879_v1 }
 0x9c8   :  { %4460 = vmatpush3.bf16.msra.mxu0 %v4756_v22 }
 0x9c9   :  { %4473 = vmatprep.subr.bf16.mxu0 %v4879_v1 }
 0x9cb   :  { %4462 = vmatmul.mubr.msk.bf16.vlgmr.msra.gmra.mrb[48].mxu0 %vm103_vm1, %v4991_v8 }
 0x9cc   :  { %4477 = vmatprep.mubr.msk.bf16.mxu0 %vm4880_vm0, %v4879_v1  ;;  %4474 = vmatpush3.bf16.msra.mxu0 %v4757_v38 }
 0x9cd   :  { %4475 = vmatprep.subr.bf16.mxu0 %v4879_v1 }
 0x9d0   :  { %4476 = vmatpush3.bf16.msra.mxu0 %v4758_v39 }
 0x9d1   :  { %4487 = vmatprep.subr.bf16.mxu0 %v4879_v1 }
 0x9d3   :  { %4478 = vmatmul.mubr.msk.bf16.vlgmr.msra.gmra.mrb[52].mxu0 %vm103_vm1, %v5014_v11  ;;  %v3989_v11 = vld [vmem:[%s5713_s8 + $0x3] ss:$0 sm:$0xff] }
 0x9d4   :  { %4489 = vmatprep.mubr.msk.bf16.mxu0 %vm4880_vm0, %v4879_v1 }
 0xa94   :  { %v1391_v23 = vpop.f32.mrb[40].mxu1 }
 0xa95   :  { %v4443_v25 = vpop.f32.mrb[41].mxu1 }
 0xa96   :  { %v1394_v26 = vpop.f32.mrb[42].mxu1  ;;  %v1437_v27 = vpop.f32.mrb[44].mxu0 }
 0xa97   :  { %v1443_v29 = vpack.c.bf16 %v1437_v27, %v1391_v23  ;;  %v4444_v30 = vpop.f32.mrb[43].mxu1  ;;  %v4449_v31 = vpop.f32.mrb[45].mxu0 }
 0xa98   :  { %v1440_v33 = vpop.f32.mrb[46].mxu0 }
 0xa99   :  { %v4450_v34 = vpop.f32.mrb[47].mxu0  ;;  %4454 = vmatmul.mubr.msk.bf16.vlgmr.msra.gmra.mrb[44].mxu1 %vm308_vm2, %v1443_v29 }
 0xa9a   :  { %4466 = vmatpush3.bf16.msra.mxu1 %v4753_v28  ;;  %4469 = vmatprep.mubr.msk.bf16.mxu1 %vm4880_vm0, %v4879_v1 }
 0xa9b   :  { %4467 = vmatprep.subr.bf16.mxu1 %v4879_v1 }
 0xa9e   :  { %4468 = vmatpush3.bf16.msra.mxu1 %v4754_v35 }
 0xa9f   :  { %4481 = vmatprep.subr.bf16.mxu1 %v4879_v1 }
 0xaa1   :  { %4470 = vmatmul.mubr.msk.bf16.vlgmr.msra.gmra.mrb[48].mxu1 %vm103_vm1, %v4977_v4  ;;  %v1554_v4 = vpop.f32.mrb[48].mxu0 }
 0xaa2   :  { %4483 = vmatprep.mubr.msk.bf16.mxu1 %vm4880_vm0, %v4879_v1  ;;  %v4463_v40 = vpop.f32.mrb[49].mxu0  ;;  %v1555_v55 = vadd.f32 %v3980_v32, %v1554_v4 }
 0xaa3   :  { %v1557_v41 = vpop.f32.mrb[50].mxu0 }
 0xaa4   :  { %v4464_v42 = vpop.f32.mrb[51].mxu0  ;;  %v1693_v58 = vpack.c.bf16 %v1555_v55, %v1555_v55  ;;  %v1558_v59 = vadd.f32 %v3980_v32, %v1557_v41  ;;  %v4006_v41 = vld [vmem:[%s5715_s10 + $0x6] sm:$0x3] }
 0xaa6   :  { %v1694_v60 = vpack.c.bf16 %v1558_v59, %v1558_v59  ;;  %v1686_v62 = vpop.f32.mrb[52].mxu0  ;;  %v5349_v59 = vld [vmem:[%s5706_s1] sm:$0xff]  }
 0xaa7   :  { %v1687_v63 = vadd.f32 %v3998_v61, %v1686_v62  ;;  %v4479_v0 = vpop.f32.mrb[53].mxu0  ;;  %v5366_v62 = vld [vmem:[%s5707_s2] sm:$0xff]  }
 0xaa8   :  { %v1689_v2 = vpop.f32.mrb[54].mxu0 }
 0xaa9   :  { %v1697_v3 = vpack.c.bf16 %v1687_v63, %v1687_v63  ;;  %v1690_v5 = vadd.f32 %v3998_v61, %v1689_v2  ;;  %v4480_v6 = vpop.f32.mrb[55].mxu0  ;;  %v4764_v61 = vld [vmem:[%s5711_s6 + $0x48] sm:$0xff]  }
 0xaab   :  { %v1819_v7 = vsel %vm429_vm3, %v1697_v3, 0  ;;  %v1698_v9 = vpack.c.bf16 %v1690_v5, %v1690_v5 }
 0xaad   :  { %v1865_v10 = vsel %vm429_vm3, %v1698_v9, 0 }
 0xb6c   :  { %v1486_v43 = vpop.f32.mrb[44].mxu1 }
 0xb6d   :  { %v5278_v44 = vadd.f32 %v1486_v43, %v5201_v21  ;;  %v4455_v45 = vpop.f32.mrb[45].mxu1 }
 0xb6e   :  { %v1489_v46 = vpop.f32.mrb[46].mxu1 }
 0xb6f   :  { %v5281_v47 = vadd.f32 %v1489_v46, %v5203_v24  ;;  %v4456_v48 = vpop.f32.mrb[47].mxu1 }
 0xb70   :  { %v1914_v48 = vsel %vm939_vm5, %v4006_v41, 0 }
 0xb74   :  { %v1620_v49 = vpop.f32.mrb[48].mxu1 }
 0xb75   :  { %v1621_v50 = vadd.f32 %v3989_v11, %v1620_v49  ;;  %v4471_v51 = vpop.f32.mrb[49].mxu1  ;;  %v4761_v49 = vld [vmem:[%s5709_s4 + $0x40] sm:$0xff]  }
 0xb76   :  { %v1623_v52 = vpop.f32.mrb[50].mxu1 }
 0xb77   :  { %v1695_v21 = vpack.c.bf16 %v1621_v50, %v1621_v50  ;;  %v1624_v36 = vadd.f32 %v3989_v11, %v1623_v52  ;;  %v4472_v37 = vpop.f32.mrb[51].mxu1  ;;  %v4762_v50 = vld [vmem:[%s5709_s4 + $0x48] sm:$0xff]  }
 0xb79   :  { %v1703_v53 = vsel %vm308_vm2, %v1695_v21, 0  ;;  %v1696_v24 = vpack.c.bf16 %v1624_v36, %v1624_v36  ;;  %v4759_v36 = vld [vmem:[%s5710_s5 + $0x40] sm:$0xff]  }
 0xb7a   :  { %4482 = vmatpush3.bf16.xpose.msra.mxu1 %v1703_v53 }
 0xb7b   :  { %v1749_v57 = vsel %vm308_vm2, %v1696_v24, 0  ;;  %4493 = vmatprep.subr.bf16.mxu1 %v4879_v1 }
 0xb7c   :  { %4488 = vmatpush3.bf16.xpose.msra.mxu0 %v1749_v57 }
 0xb7d   :  { %4499 = vmatprep.subr.bf16.mxu0 %v4879_v1 }
 0xb81   :  { %4484 = vmatmul.mubr.msk.bf16.vlgmr.msra.gmra.mrb[52].mxu1 %vm308_vm2, %v1693_v58  ;;  %v4760_v58 = vld [vmem:[%s5710_s5 + $0x48] sm:$0xff]  }
 0xb82   :  { %4495 = vmatprep.mubr.msk.bf16.mxu1 %vm4880_vm0, %v4879_v1  ;;  %4494 = vmatpush3.bf16.msra.mxu1 %v1819_v7 }
 0xb83   :  { %4490 = vmatmul.mubr.msk.bf16.vlgmr.msra.gmra.mrb[56].mxu0 %vm308_vm2, %v1694_v60  ;;  %4505 = vmatprep.subr.bf16.mxu1 %v4879_v1  ;;  %v4763_v60 = vld [vmem:[%s5711_s6 + $0x40] sm:$0xff]  }
 0xb84   :  { %4501 = vmatprep.mubr.msk.bf16.mxu0 %vm4880_vm0, %v4879_v1  ;;  %4500 = vmatpush3.bf16.msra.mxu0 %v1865_v10 }
 0xb85   :  { %4511 = vmatprep.subr.bf16.mxu0 %v4879_v1 }
 0xc54   :  { %v1739_v12 = vpop.f32.mrb[52].mxu1 }
 0xc55   :  { %v1740_v13 = vadd.f32 %v1739_v12, %v5048_v56  ;;  %v4485_v14 = vpop.f32.mrb[53].mxu1 }
 0xc56   :  { %v1742_v15 = vpop.f32.mrb[54].mxu1  ;;  %v1785_v16 = vpop.f32.mrb[56].mxu0 }
 0xc57   :  { %v1786_v17 = vadd.f32 %v1785_v16, %v5046_v54  ;;  %v4486_v18 = vpop.f32.mrb[55].mxu1  ;;  %v4491_v19 = vpop.f32.mrb[57].mxu0  ;;  %v1791_v20 = vsel %vm401_vm4, %v1740_v13, -inf }
 0xc58   :  { %1792 = vmax.xlane.f32.xlu0 %v1791_v20  ;;  %v1788_v22 = vpop.f32.mrb[58].mxu0  ;;  %v4013_v18 = vld [vmem:[%s5712_s7 + $0x4] ss:$0 sm:$0xff] }
 0xc59   :  { %v4492_v23 = vpop.f32.mrb[59].mxu0  ;;  %v1794_v25 = vsel %vm401_vm4, %v1786_v17, -inf }
 0xc5a   :  { %1795 = vmax.xlane.f32.xlu1 %v1794_v25 }
 0xce5   :  { %v1793_v26 = vpop.xlane.xlu0 %1792 }
 0xce6   :  { %v1797_v27 = vsub.f32 %v1740_v13, %v1793_v26  ;;  %v4022_v13 = vld [vmem:[%s5713_s8 + $0x4] ss:$0 sm:$0xff] }
 0xce7   :  { %v1796_v28 = vpop.xlane.xlu1 %1795 }
 0xce8   :  { %v1799_v29 = vmul.f32 1.442695, %v1797_v27  ;;  %v1798_v30 = vsub.f32 %v1786_v17, %v1796_v28 }
 0xcea   :  { %4807 = vpow2.f32 %v1799_v29  ;;  %v1801_v31 = vmul.f32 1.442695, %v1798_v30  ;;  %v4031_v29 = vld [vmem:[%s5714_s9 + $0x4] ss:$0 sm:$0xff] }
 0xcec   :  { %4809 = vpow2.f32 %v1801_v31 }
 0xcf4   :  { %v4808_v33 = vpop.eup %4807 }
 0xcf5   :  { %v1803_v34 = vsel %vm401_vm4, %v4808_v33, 0.0 }
 0xcf6   :  { %v4810_v35 = vpop.eup %4809  ;;  %1804 = vadd.xlane.f32.xlu0 %v1803_v34 }
 0xcf7   :  { %v1806_v38 = vsel %vm401_vm4, %v4810_v35, 0.0 }
 0xcf8   :  { %1807 = vadd.xlane.f32.xlu1 %v1806_v38 }
 0xd83   :  { %v1805_v39 = vpop.xlane.xlu0 %1804 }
 0xd84   :  { %4811 = vrcp.f32 %v1805_v39 }
 0xd85   :  { %v1808_v4 = vpop.xlane.xlu1 %1807 }
 0xd86   :  { %4813 = vrcp.f32 %v1808_v4 }
 0xd8e   :  { %v4812_v40 = vpop.eup %4811 }
 0xd8f   :  { %v1811_v42 = vmul.f32 %v4812_v40, %v4808_v33 }
 0xd90   :  { %v4814_v43 = vpop.eup %4813 }
 0xd91   :  { %v1812_v45 = vmul.f32 %v4814_v43, %v4810_v35  ;;  %v1813_v46 = vpack.c.bf16 %v1811_v42, %v1811_v42 }
 0xd93   :  { %4496 = vmatmul.mubr.msk.bf16.vlgmr.msra.gmra.mrb[56].mxu1 %vm401_vm4, %v1813_v46  ;;  %v1814_v11 = vpack.c.bf16 %v1812_v45, %v1812_v45 }
 0xd94   :  { %4506 = vmatpush3.bf16.msra.mxu1 %v1914_v48  ;;  %4507 = vmatprep.mubr.msk.bf16.mxu1 %vm4880_vm0, %v4879_v1 }
 0xd95   :  { %4502 = vmatmul.mubr.msk.bf16.vlgmr.msra.gmra.mrb[60].mxu0 %vm401_vm4, %v1814_v11  ;;  %4519 = vmatprep.subr.bf16.mxu1 %v4879_v1 }
 0xd96   :  { %4515 = vmatprep.mubr.msk.bf16.mxu0 %vm4880_vm0, %v4879_v1  ;;  %4512 = vmatpush3.bf16.msra.mxu0 %v4761_v49 }
 0xd97   :  { %4513 = vmatprep.subr.bf16.mxu0 %v4879_v1 }
 0xd9a   :  { %4514 = vmatpush3.bf16.msra.mxu0 %v4762_v50 }
 0xd9b   :  { %4527 = vmatprep.subr.bf16.mxu0 %v4879_v1 }
 0xd9d   :  { %4516 = vmatmul.mubr.msk.bf16.vlgmr.msra.gmra.mrb[64].mxu0 %vm103_vm1, %v4991_v8 }
 0xd9e   :  { %4531 = vmatprep.mubr.msk.bf16.mxu0 %vm4880_vm0, %v4879_v1  ;;  %4528 = vmatpush3.bf16.msra.mxu0 %v4763_v60 }
 0xd9f   :  { %4529 = vmatprep.subr.bf16.mxu0 %v4879_v1 }
 0xda2   :  { %4530 = vmatpush3.bf16.msra.mxu0 %v4764_v61 }
 0xda3   :  { %4541 = vmatprep.subr.bf16.mxu0 %v4879_v1 }
 0xda5   :  { %4532 = vmatmul.mubr.msk.bf16.vlgmr.msra.gmra.mrb[68].mxu0 %vm103_vm1, %v5366_v62 }
 0xda6   :  { %4543 = vmatprep.mubr.msk.bf16.mxu0 %vm4880_vm0, %v4879_v1 }
 0xe66   :  { %v1855_v51 = vpop.f32.mrb[56].mxu1 }
 0xe67   :  { %v4497_v52 = vpop.f32.mrb[57].mxu1 }
 0xe68   :  { %v1858_v32 = vpop.f32.mrb[58].mxu1  ;;  %v1901_v21 = vpop.f32.mrb[60].mxu0 }
 0xe69   :  { %v1907_v37 = vpack.c.bf16 %v1901_v21, %v1855_v51  ;;  %v4498_v53 = vpop.f32.mrb[59].mxu1  ;;  %v4503_v24 = vpop.f32.mrb[61].mxu0 }
 0xe6a   :  { %v1904_v55 = vpop.f32.mrb[62].mxu0 }
 0xe6b   :  { %v4504_v57 = vpop.f32.mrb[63].mxu0  ;;  %4508 = vmatmul.mubr.msk.bf16.vlgmr.msra.gmra.mrb[60].mxu1 %vm308_vm2, %v1907_v37 }
 0xe6c   :  { %4520 = vmatpush3.bf16.msra.mxu1 %v4759_v36  ;;  %4523 = vmatprep.mubr.msk.bf16.mxu1 %vm4880_vm0, %v4879_v1 }
 0xe6d   :  { %4521 = vmatprep.subr.bf16.mxu1 %v4879_v1 }
 0xe70   :  { %4522 = vmatpush3.bf16.msra.mxu1 %v4760_v58  ;;  %v2018_v63 = vpop.f32.mrb[64].mxu0 }
 0xe71   :  { %4535 = vmatprep.subr.bf16.mxu1 %v4879_v1  ;;  %v4517_v0 = vpop.f32.mrb[65].mxu0  ;;  %v2019_v23 = vadd.f32 %v4013_v18, %v2018_v63 }
 0xe72   :  { %v2021_v2 = vpop.f32.mrb[66].mxu0 }
 0xe73   :  { %4524 = vmatmul.mubr.msk.bf16.vlgmr.msra.gmra.mrb[64].mxu1 %vm103_vm1, %v5349_v59  ;;  %v4518_v3 = vpop.f32.mrb[67].mxu0  ;;  %v2157_v26 = vpack.c.bf16 %v2019_v23, %v2019_v23  ;;  %v2022_v27 = vadd.f32 %v4013_v18, %v2021_v2 }
 0xe74   :  { %4537 = vmatprep.mubr.msk.bf16.mxu1 %vm4880_vm0, %v4879_v1 }
 0xe75   :  { %v2158_v28 = vpack.c.bf16 %v2022_v27, %v2022_v27 }
 0xe78   :  { %v2150_v30 = vpop.f32.mrb[68].mxu0 }
 0xe79   :  { %v2151_v31 = vadd.f32 %v4031_v29, %v2150_v30  ;;  %v4533_v33 = vpop.f32.mrb[69].mxu0  ;;  %v4770_v30 = vld [vmem:[%s5711_s6 + $0x58] sm:$0xff]  }
 0xe7a   :  { %v2153_v34 = vpop.f32.mrb[70].mxu0 }
 0xe7b   :  { %v2161_v35 = vpack.c.bf16 %v2151_v31, %v2151_v31  ;;  %v2154_v38 = vadd.f32 %v4031_v29, %v2153_v34  ;;  %v4534_v39 = vpop.f32.mrb[71].mxu0  ;;  %v4769_v29 = vld [vmem:[%s5711_s6 + $0x50] sm:$0xff]  }
 0xe7d   :  { %v2283_v4 = vsel %vm429_vm3, %v2161_v35, 0  ;;  %v2162_v40 = vpack.c.bf16 %v2154_v38, %v2154_v38 }
 0xe7f   :  { %v2329_v41 = vsel %vm429_vm3, %v2162_v40, 0 }
 0xf3e   :  { %v1950_v5 = vpop.f32.mrb[60].mxu1 }
 0xf3f   :  { %v5373_v6 = vadd.f32 %v1950_v5, %v5278_v44  ;;  %v4509_v7 = vpop.f32.mrb[61].mxu1  ;;  %v4039_v5 = vld [vmem:[%s5715_s10 + $0x8] sm:$0x3] }
 0xf40   :  { %v1953_v9 = vpop.f32.mrb[62].mxu1 }
 0xf41   :  { %v5376_v10 = vadd.f32 %v1953_v9, %v5281_v47  ;;  %v4510_v12 = vpop.f32.mrb[63].mxu1 }
 0xf46   :  { %v2084_v14 = vpop.f32.mrb[64].mxu1 }
 0xf47   :  { %v2085_v15 = vadd.f32 %v4022_v13, %v2084_v14  ;;  %v4525_v16 = vpop.f32.mrb[65].mxu1  ;;  %v2378_v14 = vsel %vm939_vm5, %v4039_v5, 0 }
 0xf48   :  { %v2087_v17 = vpop.f32.mrb[66].mxu1  ;;  %v4767_v16 = vld [vmem:[%s5709_s4 + $0x50] sm:$0xff]  }
 0xf49   :  { %v2159_v44 = vpack.c.bf16 %v2085_v15, %v2085_v15  ;;  %v2088_v19 = vadd.f32 %v4022_v13, %v2087_v17  ;;  %v4526_v20 = vpop.f32.mrb[67].mxu1  ;;  %v4768_v17 = vld [vmem:[%s5709_s4 + $0x58] sm:$0xff]  }
 0xf4b   :  { %v2167_v22 = vsel %vm308_vm2, %v2159_v44, 0  ;;  %v2160_v47 = vpack.c.bf16 %v2088_v19, %v2088_v19 }
 0xf4c   :  { %4536 = vmatpush3.bf16.xpose.msra.mxu1 %v2167_v22  ;;  %v4765_v22 = vld [vmem:[%s5710_s5 + $0x50] sm:$0xff]  }
 0xf4d   :  { %v2213_v25 = vsel %vm308_vm2, %v2160_v47, 0  ;;  %4547 = vmatprep.subr.bf16.mxu1 %v4879_v1 }
 0xf4e   :  { %4542 = vmatpush3.bf16.xpose.msra.mxu0 %v2213_v25 }
 0xf4f   :  { %4553 = vmatprep.subr.bf16.mxu0 %v4879_v1 }
 0xf53   :  { %4538 = vmatmul.mubr.msk.bf16.vlgmr.msra.gmra.mrb[68].mxu1 %vm308_vm2, %v2157_v26 }
 0xf54   :  { %4549 = vmatprep.mubr.msk.bf16.mxu1 %vm4880_vm0, %v4879_v1  ;;  %4548 = vmatpush3.bf16.msra.mxu1 %v2283_v4 }
 0xf55   :  { %4544 = vmatmul.mubr.msk.bf16.vlgmr.msra.gmra.mrb[72].mxu0 %vm308_vm2, %v2158_v28  ;;  %4559 = vmatprep.subr.bf16.mxu1 %v4879_v1  ;;  %v4766_v28 = vld [vmem:[%s5710_s5 + $0x58] sm:$0xff]  }
 0xf56   :  { %4555 = vmatprep.mubr.msk.bf16.mxu0 %vm4880_vm0, %v4879_v1  ;;  %4554 = vmatpush3.bf16.msra.mxu0 %v2329_v41 }
 0xf57   :  { %4565 = vmatprep.subr.bf16.mxu0 %v4879_v1 }
0x1026   :  { %v2203_v42 = vpop.f32.mrb[68].mxu1 }
0x1027   :  { %v2204_v43 = vadd.f32 %v2203_v42, %v5048_v56  ;;  %v4539_v45 = vpop.f32.mrb[69].mxu1 }
0x1028   :  { %v2206_v46 = vpop.f32.mrb[70].mxu1  ;;  %v2249_v48 = vpop.f32.mrb[72].mxu0 }
0x1029   :  { %v2250_v11 = vadd.f32 %v2249_v48, %v5046_v54  ;;  %v4540_v49 = vpop.f32.mrb[71].mxu1  ;;  %v4545_v50 = vpop.f32.mrb[73].mxu0  ;;  %v2255_v51 = vsel %vm401_vm4, %v2204_v43, -inf }
0x102a   :  { %2256 = vmax.xlane.f32.xlu0 %v2255_v51  ;;  %v2252_v52 = vpop.f32.mrb[74].mxu0  ;;  %v4046_v49 = vld [vmem:[%s5712_s7 + $0x5] ss:$0 sm:$0xff] }
0x102b   :  { %v4546_v32 = vpop.f32.mrb[75].mxu0  ;;  %v2258_v21 = vsel %vm401_vm4, %v2250_v11, -inf }
0x102c   :  { %2259 = vmax.xlane.f32.xlu1 %v2258_v21 }
0x10b7   :  { %v2257_v36 = vpop.xlane.xlu0 %2256 }
0x10b8   :  { %v2261_v37 = vsub.f32 %v2204_v43, %v2257_v36  ;;  %v4055_v43 = vld [vmem:[%s5713_s8 + $0x5] ss:$0 sm:$0xff] }
0x10b9   :  { %v2260_v53 = vpop.xlane.xlu1 %2259 }
0x10ba   :  { %v2263_v24 = vmul.f32 1.442695, %v2261_v37  ;;  %v2262_v55 = vsub.f32 %v2250_v11, %v2260_v53 }
0x10bc   :  { %4815 = vpow2.f32 %v2263_v24  ;;  %v2265_v57 = vmul.f32 1.442695, %v2262_v55  ;;  %v4064_v24 = vld [vmem:[%s5714_s9 + $0x5] ss:$0 sm:$0xff] }
0x10be   :  { %4817 = vpow2.f32 %v2265_v57 }
0x10c6   :  { %v4816_v58 = vpop.eup %4815 }
0x10c7   :  { %v2267_v60 = vsel %vm401_vm4, %v4816_v58, 0.0 }
0x10c8   :  { %v4818_v61 = vpop.eup %4817  ;;  %2268 = vadd.xlane.f32.xlu0 %v2267_v60 }
0x10c9   :  { %v2270_v63 = vsel %vm401_vm4, %v4818_v61, 0.0 }
0x10ca   :  { %2271 = vadd.xlane.f32.xlu1 %v2270_v63 }
0x1155   :  { %v2269_v0 = vpop.xlane.xlu0 %2268 }
0x1156   :  { %4819 = vrcp.f32 %v2269_v0 }
0x1157   :  { %v2272_v2 = vpop.xlane.xlu1 %2271 }
0x1158   :  { %4821 = vrcp.f32 %v2272_v2 }
0x1160   :  { %v4820_v3 = vpop.eup %4819 }
0x1161   :  { %v2275_v7 = vmul.f32 %v4820_v3, %v4816_v58 }
0x1162   :  { %v4822_v9 = vpop.eup %4821 }
0x1163   :  { %v2276_v12 = vmul.f32 %v4822_v9, %v4818_v61  ;;  %v2277_v13 = vpack.c.bf16 %v2275_v7, %v2275_v7 }
0x1165   :  { %4550 = vmatmul.mubr.msk.bf16.vlgmr.msra.gmra.mrb[72].mxu1 %vm401_vm4, %v2277_v13  ;;  %v2278_v15 = vpack.c.bf16 %v2276_v12, %v2276_v12 }
0x1166   :  { %4560 = vmatpush3.bf16.msra.mxu1 %v2378_v14  ;;  %4561 = vmatprep.mubr.msk.bf16.mxu1 %vm4880_vm0, %v4879_v1 }
0x1167   :  { %4556 = vmatmul.mubr.msk.bf16.vlgmr.msra.gmra.mrb[76].mxu0 %vm401_vm4, %v2278_v15  ;;  %4573 = vmatprep.subr.bf16.mxu1 %v4879_v1 }
0x1168   :  { %4569 = vmatprep.mubr.msk.bf16.mxu0 %vm4880_vm0, %v4879_v1  ;;  %4566 = vmatpush3.bf16.msra.mxu0 %v4767_v16 }
0x1169   :  { %4567 = vmatprep.subr.bf16.mxu0 %v4879_v1 }
0x116c   :  { %4568 = vmatpush3.bf16.msra.mxu0 %v4768_v17 }
0x116d   :  { %4581 = vmatprep.subr.bf16.mxu0 %v4879_v1 }
0x116f   :  { %4570 = vmatmul.mubr.msk.bf16.vlgmr.msra.gmra.mrb[80].mxu0 %vm103_vm1, %v4991_v8 }
0x1170   :  { %4585 = vmatprep.mubr.msk.bf16.mxu0 %vm4880_vm0, %v4879_v1  ;;  %4582 = vmatpush3.bf16.msra.mxu0 %v4769_v29 }
0x1171   :  { %4583 = vmatprep.subr.bf16.mxu0 %v4879_v1 }
0x1174   :  { %4584 = vmatpush3.bf16.msra.mxu0 %v4770_v30 }
0x1175   :  { %4595 = vmatprep.subr.bf16.mxu0 %v4879_v1 }
0x1177   :  { %4586 = vmatmul.mubr.msk.bf16.vlgmr.msra.gmra.mrb[84].mxu0 %vm103_vm1, %v5366_v62 }
0x1178   :  { %4597 = vmatprep.mubr.msk.bf16.mxu0 %vm4880_vm0, %v4879_v1 }
0x1238   :  { %v2319_v18 = vpop.f32.mrb[72].mxu1 }
0x1239   :  { %v4551_v44 = vpop.f32.mrb[73].mxu1 }
0x123a   :  { %v2322_v19 = vpop.f32.mrb[74].mxu1  ;;  %v2365_v20 = vpop.f32.mrb[76].mxu0 }
0x123b   :  { %v2371_v47 = vpack.c.bf16 %v2365_v20, %v2319_v18  ;;  %v4552_v23 = vpop.f32.mrb[75].mxu1  ;;  %v4557_v25 = vpop.f32.mrb[77].mxu0 }
0x123c   :  { %v2368_v26 = vpop.f32.mrb[78].mxu0 }
0x123d   :  { %v4558_v27 = vpop.f32.mrb[79].mxu0  ;;  %4562 = vmatmul.mubr.msk.bf16.vlgmr.msra.gmra.mrb[76].mxu1 %vm308_vm2, %v2371_v47 }
0x123e   :  { %4574 = vmatpush3.bf16.msra.mxu1 %v4765_v22  ;;  %4577 = vmatprep.mubr.msk.bf16.mxu1 %vm4880_vm0, %v4879_v1 }
0x123f   :  { %4575 = vmatprep.subr.bf16.mxu1 %v4879_v1 }
0x1242   :  { %4576 = vmatpush3.bf16.msra.mxu1 %v4766_v28  ;;  %v2482_v31 = vpop.f32.mrb[80].mxu0 }
0x1243   :  { %4589 = vmatprep.subr.bf16.mxu1 %v4879_v1  ;;  %v4571_v33 = vpop.f32.mrb[81].mxu0  ;;  %v2483_v32 = vadd.f32 %v4046_v49, %v2482_v31 }
0x1244   :  { %v2485_v34 = vpop.f32.mrb[82].mxu0 }
0x1245   :  { %4578 = vmatmul.mubr.msk.bf16.vlgmr.msra.gmra.mrb[80].mxu1 %vm103_vm1, %v5349_v59  ;;  %v4572_v35 = vpop.f32.mrb[83].mxu0  ;;  %v2621_v36 = vpack.c.bf16 %v2483_v32, %v2483_v32  ;;  %v2486_v37 = vadd.f32 %v4046_v49, %v2485_v34 }
0x1246   :  { %4591 = vmatprep.mubr.msk.bf16.mxu1 %vm4880_vm0, %v4879_v1 }
0x1247   :  { %v2622_v53 = vpack.c.bf16 %v2486_v37, %v2486_v37 }
0x124a   :  { %v2614_v55 = vpop.f32.mrb[84].mxu0 }
0x124b   :  { %v2615_v57 = vadd.f32 %v4064_v24, %v2614_v55  ;;  %v4587_v58 = vpop.f32.mrb[85].mxu0  ;;  %v4776_v55 = vld [vmem:[%s5711_s6 + $0x68] sm:$0xff]  }
0x124c   :  { %v2617_v60 = vpop.f32.mrb[86].mxu0 }
0x124d   :  { %v2625_v61 = vpack.c.bf16 %v2615_v57, %v2615_v57  ;;  %v2618_v63 = vadd.f32 %v4064_v24, %v2617_v60  ;;  %v4588_v0 = vpop.f32.mrb[87].mxu0  ;;  %v4775_v24 = vld [vmem:[%s5711_s6 + $0x60] sm:$0xff]  }
0x124f   :  { %v2747_v2 = vsel %vm429_vm3, %v2625_v61, 0  ;;  %v2626_v3 = vpack.c.bf16 %v2618_v63, %v2618_v63 }
0x1251   :  { %v2793_v5 = vsel %vm429_vm3, %v2626_v3, 0 }
0x1310   :  { %v2414_v38 = vpop.f32.mrb[76].mxu1 }
0x1311   :  { %v5458_v39 = vadd.f32 %v2414_v38, %v5373_v6  ;;  %v4563_v4 = vpop.f32.mrb[77].mxu1  ;;  %v4072_v38 = vld [vmem:[%s5715_s10 + $0xa] sm:$0x3] }
0x1312   :  { %v2417_v40 = vpop.f32.mrb[78].mxu1 }
0x1313   :  { %v5461_v41 = vadd.f32 %v2417_v40, %v5376_v10  ;;  %v4564_v42 = vpop.f32.mrb[79].mxu1 }
0x1318   :  { %v2548_v45 = vpop.f32.mrb[80].mxu1 }
0x1319   :  { %v2549_v46 = vadd.f32 %v4055_v43, %v2548_v45  ;;  %v4579_v48 = vpop.f32.mrb[81].mxu1  ;;  %v2842_v45 = vsel %vm939_vm5, %v4072_v38, 0 }
0x131a   :  { %v2551_v11 = vpop.f32.mrb[82].mxu1  ;;  %v4773_v48 = vld [vmem:[%s5709_s4 + $0x60] sm:$0xff]  }
0x131b   :  { %v2623_v6 = vpack.c.bf16 %v2549_v46, %v2549_v46  ;;  %v2552_v50 = vadd.f32 %v4055_v43, %v2551_v11  ;;  %v4580_v51 = vpop.f32.mrb[83].mxu1  ;;  %v4774_v11 = vld [vmem:[%s5709_s4 + $0x68] sm:$0xff]  }
0x131d   :  { %v2631_v52 = vsel %vm308_vm2, %v2623_v6, 0  ;;  %v2624_v10 = vpack.c.bf16 %v2552_v50, %v2552_v50 }
0x131e   :  { %4590 = vmatpush3.bf16.xpose.msra.mxu1 %v2631_v52  ;;  %v4771_v52 = vld [vmem:[%s5710_s5 + $0x60] sm:$0xff]  }
0x131f   :  { %v2677_v21 = vsel %vm308_vm2, %v2624_v10, 0  ;;  %4601 = vmatprep.subr.bf16.mxu1 %v4879_v1 }
0x1320   :  { %4596 = vmatpush3.bf16.xpose.msra.mxu0 %v2677_v21 }
0x1321   :  { %4607 = vmatprep.subr.bf16.mxu0 %v4879_v1 }
0x1325   :  { %4592 = vmatmul.mubr.msk.bf16.vlgmr.msra.gmra.mrb[84].mxu1 %vm308_vm2, %v2621_v36 }
0x1326   :  { %4603 = vmatprep.mubr.msk.bf16.mxu1 %vm4880_vm0, %v4879_v1  ;;  %4602 = vmatpush3.bf16.msra.mxu1 %v2747_v2 }
0x1327   :  { %4598 = vmatmul.mubr.msk.bf16.vlgmr.msra.gmra.mrb[88].mxu0 %vm308_vm2, %v2622_v53  ;;  %4613 = vmatprep.subr.bf16.mxu1 %v4879_v1  ;;  %v4772_v53 = vld [vmem:[%s5710_s5 + $0x68] sm:$0xff]  }
0x1328   :  { %4609 = vmatprep.mubr.msk.bf16.mxu0 %vm4880_vm0, %v4879_v1  ;;  %4608 = vmatpush3.bf16.msra.mxu0 %v2793_v5 }
0x1329   :  { %4619 = vmatprep.subr.bf16.mxu0 %v4879_v1 }
0x13f8   :  { %v2667_v7 = vpop.f32.mrb[84].mxu1 }
0x13f9   :  { %v2668_v9 = vadd.f32 %v2667_v7, %v5048_v56  ;;  %v4593_v12 = vpop.f32.mrb[85].mxu1 }
0x13fa   :  { %v2670_v13 = vpop.f32.mrb[86].mxu1  ;;  %v2713_v14 = vpop.f32.mrb[88].mxu0 }
0x13fb   :  { %v2714_v15 = vadd.f32 %v2713_v14, %v5046_v54  ;;  %v4594_v16 = vpop.f32.mrb[87].mxu1  ;;  %v4599_v17 = vpop.f32.mrb[89].mxu0  ;;  %v2719_v18 = vsel %vm401_vm4, %v2668_v9, -inf }
0x13fc   :  { %2720 = vmax.xlane.f32.xlu0 %v2719_v18  ;;  %v2716_v44 = vpop.f32.mrb[90].mxu0  ;;  %v4079_v16 = vld [vmem:[%s5712_s7 + $0x6] ss:$0 sm:$0xff] }
0x13fd   :  { %v4600_v19 = vpop.f32.mrb[91].mxu0  ;;  %v2722_v20 = vsel %vm401_vm4, %v2714_v15, -inf }
0x13fe   :  { %2723 = vmax.xlane.f32.xlu1 %v2722_v20 }
0x1489   :  { %v2721_v22 = vpop.xlane.xlu0 %2720 }
0x148a   :  { %v2725_v47 = vsub.f32 %v2668_v9, %v2721_v22  ;;  %v4088_v9 = vld [vmem:[%s5713_s8 + $0x6] ss:$0 sm:$0xff] }
0x148b   :  { %v2724_v23 = vpop.xlane.xlu1 %2723 }
0x148c   :  { %v2727_v25 = vmul.f32 1.442695, %v2725_v47  ;;  %v2726_v26 = vsub.f32 %v2714_v15, %v2724_v23 }
0x148e   :  { %4823 = vpow2.f32 %v2727_v25  ;;  %v2729_v27 = vmul.f32 1.442695, %v2726_v26  ;;  %v4097_v25 = vld [vmem:[%s5714_s9 + $0x6] ss:$0 sm:$0xff] }
0x1490   :  { %4825 = vpow2.f32 %v2729_v27 }
0x1498   :  { %v4824_v28 = vpop.eup %4823 }
0x1499   :  { %v2731_v29 = vsel %vm401_vm4, %v4824_v28, 0.0 }
0x149a   :  { %v4826_v30 = vpop.eup %4825  ;;  %2732 = vadd.xlane.f32.xlu0 %v2731_v29 }
0x149b   :  { %v2734_v31 = vsel %vm401_vm4, %v4826_v30, 0.0 }
0x149c   :  { %2735 = vadd.xlane.f32.xlu1 %v2734_v31 }
0x1527   :  { %v2733_v33 = vpop.xlane.xlu0 %2732 }
0x1528   :  { %4827 = vrcp.f32 %v2733_v33 }
0x1529   :  { %v2736_v34 = vpop.xlane.xlu1 %2735 }
0x152a   :  { %4829 = vrcp.f32 %v2736_v34 }
0x1532   :  { %v4828_v35 = vpop.eup %4827 }
0x1533   :  { %v2739_v4 = vmul.f32 %v4828_v35, %v4824_v28 }
0x1534   :  { %v4830_v40 = vpop.eup %4829 }
0x1535   :  { %v2740_v42 = vmul.f32 %v4830_v40, %v4826_v30  ;;  %v2741_v43 = vpack.c.bf16 %v2739_v4, %v2739_v4 }
0x1537   :  { %4604 = vmatmul.mubr.msk.bf16.vlgmr.msra.gmra.mrb[88].mxu1 %vm401_vm4, %v2741_v43  ;;  %v2742_v46 = vpack.c.bf16 %v2740_v42, %v2740_v42 }
0x1538   :  { %4614 = vmatpush3.bf16.msra.mxu1 %v2842_v45  ;;  %4615 = vmatprep.mubr.msk.bf16.mxu1 %vm4880_vm0, %v4879_v1 }
0x1539   :  { %4610 = vmatmul.mubr.msk.bf16.vlgmr.msra.gmra.mrb[92].mxu0 %vm401_vm4, %v2742_v46  ;;  %4627 = vmatprep.subr.bf16.mxu1 %v4879_v1 }
0x153a   :  { %4623 = vmatprep.mubr.msk.bf16.mxu0 %vm4880_vm0, %v4879_v1  ;;  %4620 = vmatpush3.bf16.msra.mxu0 %v4773_v48 }
0x153b   :  { %4621 = vmatprep.subr.bf16.mxu0 %v4879_v1 }
0x153e   :  { %4622 = vmatpush3.bf16.msra.mxu0 %v4774_v11 }
0x153f   :  { %4635 = vmatprep.subr.bf16.mxu0 %v4879_v1 }
0x1541   :  { %4624 = vmatmul.mubr.msk.bf16.vlgmr.msra.gmra.mrb[96].mxu0 %vm103_vm1, %v4991_v8 }
0x1542   :  { %4639 = vmatprep.mubr.msk.bf16.mxu0 %vm4880_vm0, %v4879_v1  ;;  %4636 = vmatpush3.bf16.msra.mxu0 %v4775_v24 }
0x1543   :  { %4637 = vmatprep.subr.bf16.mxu0 %v4879_v1 }
0x1546   :  { %4638 = vmatpush3.bf16.msra.mxu0 %v4776_v55 }
0x1547   :  { %4649 = vmatprep.subr.bf16.mxu0 %v4879_v1 }
0x1549   :  { %4640 = vmatmul.mubr.msk.bf16.vlgmr.msra.gmra.mrb[100].mxu0 %vm103_vm1, %v5366_v62 }
0x154a   :  { %4651 = vmatprep.mubr.msk.bf16.mxu0 %vm4880_vm0, %v4879_v1 }
0x160a   :  { %v2783_v49 = vpop.f32.mrb[88].mxu1 }
0x160b   :  { %v4605_v6 = vpop.f32.mrb[89].mxu1 }
0x160c   :  { %v2786_v50 = vpop.f32.mrb[90].mxu1  ;;  %v2829_v51 = vpop.f32.mrb[92].mxu0 }
0x160d   :  { %v2835_v10 = vpack.c.bf16 %v2829_v51, %v2783_v49  ;;  %v4606_v32 = vpop.f32.mrb[91].mxu1  ;;  %v4611_v21 = vpop.f32.mrb[93].mxu0 }
0x160e   :  { %v2832_v36 = vpop.f32.mrb[94].mxu0 }
0x160f   :  { %v4612_v37 = vpop.f32.mrb[95].mxu0  ;;  %4616 = vmatmul.mubr.msk.bf16.vlgmr.msra.gmra.mrb[92].mxu1 %vm308_vm2, %v2835_v10 }
0x1610   :  { %4628 = vmatpush3.bf16.msra.mxu1 %v4771_v52  ;;  %4631 = vmatprep.mubr.msk.bf16.mxu1 %vm4880_vm0, %v4879_v1 }
0x1611   :  { %4629 = vmatprep.subr.bf16.mxu1 %v4879_v1 }
0x1614   :  { %4630 = vmatpush3.bf16.msra.mxu1 %v4772_v53  ;;  %v2946_v57 = vpop.f32.mrb[96].mxu0 }
0x1615   :  { %4643 = vmatprep.subr.bf16.mxu1 %v4879_v1  ;;  %v4625_v58 = vpop.f32.mrb[97].mxu0  ;;  %v2947_v19 = vadd.f32 %v4079_v16, %v2946_v57 }
0x1616   :  { %v2949_v60 = vpop.f32.mrb[98].mxu0 }
0x1617   :  { %4632 = vmatmul.mubr.msk.bf16.vlgmr.msra.gmra.mrb[96].mxu1 %vm103_vm1, %v5349_v59  ;;  %v4626_v61 = vpop.f32.mrb[99].mxu0  ;;  %v3085_v22 = vpack.c.bf16 %v2947_v19, %v2947_v19  ;;  %v2950_v47 = vadd.f32 %v4079_v16, %v2949_v60 }
0x1618   :  { %4645 = vmatprep.mubr.msk.bf16.mxu1 %vm4880_vm0, %v4879_v1 }
0x1619   :  { %v3086_v23 = vpack.c.bf16 %v2950_v47, %v2950_v47 }
0x161c   :  { %v3078_v26 = vpop.f32.mrb[100].mxu0 }
0x161d   :  { %v3079_v27 = vadd.f32 %v4097_v25, %v3078_v26  ;;  %v4641_v28 = vpop.f32.mrb[101].mxu0 }
0x161e   :  { %v3081_v29 = vpop.f32.mrb[102].mxu0 }
0x161f   :  { %v3089_v30 = vpack.c.bf16 %v3079_v27, %v3079_v27  ;;  %v3082_v31 = vadd.f32 %v4097_v25, %v3081_v29  ;;  %v4642_v33 = vpop.f32.mrb[103].mxu0  ;;  %v4782_v25 = vld [vmem:[%s5711_s6 + $0x78] sm:$0xff]  }
0x1621   :  { %v3211_v34 = vsel %vm429_vm3, %v3089_v30, 0  ;;  %v3090_v35 = vpack.c.bf16 %v3082_v31, %v3082_v31 }
0x1623   :  { %v3257_v38 = vsel %vm429_vm3, %v3090_v35, 0 }
0x16e2   :  { %v2878_v63 = vpop.f32.mrb[92].mxu1 }
0x16e3   :  { %v5543_v0 = vadd.f32 %v2878_v63, %v5458_v39  ;;  %v4617_v2 = vpop.f32.mrb[93].mxu1  ;;  %v4105_v63 = vld [vmem:[%s5715_s10 + $0xc] sm:$0x3] }
0x16e4   :  { %v2881_v3 = vpop.f32.mrb[94].mxu1 }
0x16e5   :  { %v5546_v5 = vadd.f32 %v2881_v3, %v5461_v41  ;;  %v4618_v7 = vpop.f32.mrb[95].mxu1 }
0x16ea   :  { %v3012_v12 = vpop.f32.mrb[96].mxu1 }
0x16eb   :  { %v3013_v13 = vadd.f32 %v4088_v9, %v3012_v12  ;;  %v4633_v14 = vpop.f32.mrb[97].mxu1  ;;  %v3306_v12 = vsel %vm939_vm5, %v4105_v63, 0 }
0x16ec   :  { %v3015_v15 = vpop.f32.mrb[98].mxu1  ;;  %v4779_v14 = vld [vmem:[%s5709_s4 + $0x70] sm:$0xff]  }
0x16ed   :  { %v3087_v39 = vpack.c.bf16 %v3013_v13, %v3013_v13  ;;  %v3016_v17 = vadd.f32 %v4088_v9, %v3015_v15  ;;  %v4634_v18 = vpop.f32.mrb[99].mxu1  ;;  %v4780_v15 = vld [vmem:[%s5709_s4 + $0x78] sm:$0xff]  }
0x16ef   :  { %v3095_v44 = vsel %vm308_vm2, %v3087_v39, 0  ;;  %v3088_v41 = vpack.c.bf16 %v3016_v17, %v3016_v17 }
0x16f0   :  { %4644 = vmatpush3.bf16.xpose.msra.mxu1 %v3095_v44  ;;  %v4777_v44 = vld [vmem:[%s5710_s5 + $0x70] sm:$0xff]  }
0x16f1   :  { %v3141_v20 = vsel %vm308_vm2, %v3088_v41, 0  ;;  %4655 = vmatprep.subr.bf16.mxu1 %v4879_v1 }
0x16f2   :  { %4650 = vmatpush3.bf16.xpose.msra.mxu0 %v3141_v20 }
0x16f3   :  { %4661 = vmatprep.subr.bf16.mxu0 %v4879_v1 }
0x16f7   :  { %4646 = vmatmul.mubr.msk.bf16.vlgmr.msra.gmra.mrb[100].mxu1 %vm308_vm2, %v3085_v22 }
0x16f8   :  { %4657 = vmatprep.mubr.msk.bf16.mxu1 %vm4880_vm0, %v4879_v1  ;;  %4656 = vmatpush3.bf16.msra.mxu1 %v3211_v34 }
0x16f9   :  { %4652 = vmatmul.mubr.msk.bf16.vlgmr.msra.gmra.mrb[104].mxu0 %vm308_vm2, %v3086_v23  ;;  %4667 = vmatprep.subr.bf16.mxu1 %v4879_v1  ;;  %v4781_v23 = vld [vmem:[%s5711_s6 + $0x70] sm:$0xff]  }
0x16fa   :  { %4663 = vmatprep.mubr.msk.bf16.mxu0 %vm4880_vm0, %v4879_v1  ;;  %4662 = vmatpush3.bf16.msra.mxu0 %v3257_v38 }
0x16fb   :  { %4673 = vmatprep.subr.bf16.mxu0 %v4879_v1 }
0x17ca   :  { %v3131_v4 = vpop.f32.mrb[100].mxu1 }
0x17cb   :  { %v3132_v40 = vadd.f32 %v3131_v4, %v5048_v56  ;;  %v4647_v42 = vpop.f32.mrb[101].mxu1 }
0x17cc   :  { %v3134_v43 = vpop.f32.mrb[102].mxu1  ;;  %v3177_v45 = vpop.f32.mrb[104].mxu0 }
0x17cd   :  { %v3178_v46 = vadd.f32 %v3177_v45, %v5046_v54  ;;  %v4648_v48 = vpop.f32.mrb[103].mxu1  ;;  %v4653_v11 = vpop.f32.mrb[105].mxu0  ;;  %v3183_v49 = vsel %vm401_vm4, %v3132_v40, -inf  ;;  %v4112_v43 = vld [vmem:[%s5712_s7 + $0x7] ss:$0 sm:$0xff] }
0x17ce   :  { %3184 = vmax.xlane.f32.xlu0 %v3183_v49  ;;  %v3180_v6 = vpop.f32.mrb[106].mxu0 }
0x17cf   :  { %v4654_v50 = vpop.f32.mrb[107].mxu0  ;;  %v3186_v51 = vsel %vm401_vm4, %v3178_v46, -inf }
0x17d0   :  { %3187 = vmax.xlane.f32.xlu1 %v3186_v51 }
0x185b   :  { %v3185_v52 = vpop.xlane.xlu0 %3184 }
0x185c   :  { %v3189_v10 = vsub.f32 %v3132_v40, %v3185_v52  ;;  %v4130_v52 = vld [vmem:[%s5714_s9 + $0x7] ss:$0 sm:$0xff] }
0x185d   :  { %v3188_v32 = vpop.xlane.xlu1 %3187 }
0x185e   :  { %v3191_v21 = vmul.f32 1.442695, %v3189_v10  ;;  %v3190_v36 = vsub.f32 %v3178_v46, %v3188_v32 }
0x1860   :  { %4831 = vpow2.f32 %v3191_v21  ;;  %v3193_v37 = vmul.f32 1.442695, %v3190_v36 }
0x1862   :  { %4833 = vpow2.f32 %v3193_v37 }
0x186a   :  { %v4832_v53 = vpop.eup %4831 }
0x186b   :  { %v3195_v24 = vsel %vm401_vm4, %v4832_v53, 0.0 }
0x186c   :  { %v4834_v55 = vpop.eup %4833  ;;  %3196 = vadd.xlane.f32.xlu0 %v3195_v24 }
0x186d   :  { %v3198_v57 = vsel %vm401_vm4, %v4834_v55, 0.0 }
0x186e   :  { %3199 = vadd.xlane.f32.xlu1 %v3198_v57 }
0x18f9   :  { %v3197_v58 = vpop.xlane.xlu0 %3196 }
0x18fa   :  { %4835 = vrcp.f32 %v3197_v58 }
0x18fb   :  { %v3200_v60 = vpop.xlane.xlu1 %3199 }
0x18fc   :  { %4837 = vrcp.f32 %v3200_v60 }
0x1904   :  { %v4836_v61 = vpop.eup %4835 }
0x1905   :  { %v3203_v2 = vmul.f32 %v4836_v61, %v4832_v53 }
0x1906   :  { %v4838_v3 = vpop.eup %4837 }
0x1907   :  { %v3204_v7 = vmul.f32 %v4838_v3, %v4834_v55  ;;  %v3205_v9 = vpack.c.bf16 %v3203_v2, %v3203_v2 }
0x1909   :  { %4658 = vmatmul.mubr.msk.bf16.vlgmr.msra.gmra.mrb[104].mxu1 %vm401_vm4, %v3205_v9  ;;  %v3206_v13 = vpack.c.bf16 %v3204_v7, %v3204_v7 }
0x190a   :  { %4668 = vmatpush3.bf16.msra.mxu1 %v3306_v12  ;;  %4669 = vmatprep.mubr.msk.bf16.mxu1 %vm4880_vm0, %v4879_v1 }
0x190b   :  { %4664 = vmatmul.mubr.msk.bf16.vlgmr.msra.gmra.mrb[108].mxu0 %vm401_vm4, %v3206_v13  ;;  %4681 = vmatprep.subr.bf16.mxu1 %v4879_v1 }
0x190c   :  { %4677 = vmatprep.mubr.msk.bf16.mxu0 %vm4880_vm0, %v4879_v1  ;;  %4674 = vmatpush3.bf16.msra.mxu0 %v4779_v14 }
0x190d   :  { %4675 = vmatprep.subr.bf16.mxu0 %v4879_v1 }
0x1910   :  { %4676 = vmatpush3.bf16.msra.mxu0 %v4780_v15 }
0x1911   :  { %4689 = vmatprep.subr.bf16.mxu0 %v4879_v1 }
0x1913   :  { %4678 = vmatmul.mubr.msk.bf16.vlgmr.msra.gmra.mrb[112].mxu0 %vm103_vm1, %v4991_v8  ;;  %v4778_v8 = vld [vmem:[%s5710_s5 + $0x78] sm:$0xff]  }
0x1914   :  { %4693 = vmatprep.mubr.msk.bf16.mxu0 %vm4880_vm0, %v4879_v1  ;;  %4690 = vmatpush3.bf16.msra.mxu0 %v4781_v23 }
0x1915   :  { %4691 = vmatprep.subr.bf16.mxu0 %v4879_v1 }
0x1918   :  { %4692 = vmatpush3.bf16.msra.mxu0 %v4782_v25  ;;  %v4138_v25 = vld [vmem:[%s5715_s10 + $0xe] sm:$0x3] }
0x1919   :  { %4703 = vmatprep.subr.bf16.mxu0 %v4879_v1 }
0x191b   :  { %4694 = vmatmul.mubr.msk.bf16.vlgmr.msra.gmra.mrb[116].mxu0 %vm103_vm1, %v5366_v62  ;;  %v4121_v62 = vld [vmem:[%s5713_s8 + $0x7] ss:$0 sm:$0xff] }
0x191c   :  { %4705 = vmatprep.mubr.msk.bf16.mxu0 %vm4880_vm0, %v4879_v1 }
0x19dc   :  { %v3247_v16 = vpop.f32.mrb[104].mxu1 }
0x19dd   :  { %v4659_v39 = vpop.f32.mrb[105].mxu1 }
0x19de   :  { %v3250_v17 = vpop.f32.mrb[106].mxu1  ;;  %v3293_v18 = vpop.f32.mrb[108].mxu0 }
0x19df   :  { %v3299_v41 = vpack.c.bf16 %v3293_v18, %v3247_v16  ;;  %v4660_v19 = vpop.f32.mrb[107].mxu1  ;;  %v4665_v20 = vpop.f32.mrb[109].mxu0 }
0x19e0   :  { %v3296_v22 = vpop.f32.mrb[110].mxu0 }
0x19e1   :  { %v4666_v47 = vpop.f32.mrb[111].mxu0  ;;  %4670 = vmatmul.mubr.msk.bf16.vlgmr.msra.gmra.mrb[108].mxu1 %vm308_vm2, %v3299_v41 }
0x19e2   :  { %4682 = vmatpush3.bf16.msra.mxu1 %v4777_v44  ;;  %4685 = vmatprep.mubr.msk.bf16.mxu1 %vm4880_vm0, %v4879_v1 }
0x19e3   :  { %4683 = vmatprep.subr.bf16.mxu1 %v4879_v1 }
0x19e6   :  { %4684 = vmatpush3.bf16.msra.mxu1 %v4778_v8 }
0x19e7   :  { %4697 = vmatprep.subr.bf16.mxu1 %v4879_v1 }
0x19e9   :  { %4686 = vmatmul.mubr.msk.bf16.vlgmr.msra.gmra.mrb[112].mxu1 %vm103_vm1, %v5349_v59  ;;  %v3410_v59 = vpop.f32.mrb[112].mxu0 }
0x19ea   :  { %4699 = vmatprep.mubr.msk.bf16.mxu1 %vm4880_vm0, %v4879_v1  ;;  %v4679_v26 = vpop.f32.mrb[113].mxu0  ;;  %v3411_v11 = vadd.f32 %v4112_v43, %v3410_v59 }
0x19eb   :  { %v3413_v27 = vpop.f32.mrb[114].mxu0 }
0x19ec   :  { %v4680_v28 = vpop.f32.mrb[115].mxu0  ;;  %v3549_v6 = vpack.c.bf16 %v3411_v11, %v3411_v11  ;;  %v3414_v50 = vadd.f32 %v4112_v43, %v3413_v27 }
0x19ee   :  { %v3550_v51 = vpack.c.bf16 %v3414_v50, %v3414_v50  ;;  %v3542_v10 = vpop.f32.mrb[116].mxu0 }
0x19ef   :  { %v3543_v32 = vadd.f32 %v4130_v52, %v3542_v10  ;;  %v4695_v21 = vpop.f32.mrb[117].mxu0 }
0x19f0   :  { %v3545_v36 = vpop.f32.mrb[118].mxu0 }
0x19f1   :  { %v3553_v37 = vpack.c.bf16 %v3543_v32, %v3543_v32  ;;  %v3546_v53 = vadd.f32 %v4130_v52, %v3545_v36  ;;  %v4696_v24 = vpop.f32.mrb[119].mxu0  ;;  %v4854_v32 = vld [vmem:[%s5705_s0 + $0x8] sm:$0xff] }
0x19f3   :  { %v3675_v55 = vsel %vm429_vm3, %v3553_v37, 0  ;;  %v3554_v57 = vpack.c.bf16 %v3546_v53, %v3546_v53 }
0x19f5   :  { %v3721_v58 = vsel %vm429_vm3, %v3554_v57, 0 }
0x1ab4   :  { %v3342_v29 = vpop.f32.mrb[108].mxu1 }
0x1ab5   :  { %v5628_v30 = vadd.f32 %v3342_v29, %v5543_v0  ;;  %v4671_v31 = vpop.f32.mrb[109].mxu1  ;;  %v3770_v29 = vsel %vm939_vm5, %v4138_v25, 0 }
0x1ab6   :  { %v3345_v33 = vpop.f32.mrb[110].mxu1 }
0x1ab7   :  { %v5631_v34 = vadd.f32 %v3345_v33, %v5546_v5  ;;  %v4672_v35 = vpop.f32.mrb[111].mxu1 }
0x1abc   :  { %v3476_v38 = vpop.f32.mrb[112].mxu1 }
0x1abd   :  { %v3477_v4 = vadd.f32 %v4121_v62, %v3476_v38  ;;  %v4687_v40 = vpop.f32.mrb[113].mxu1 }
0x1abe   :  { %v3479_v42 = vpop.f32.mrb[114].mxu1 }
0x1abf   :  { %v3551_v0 = vpack.c.bf16 %v3477_v4, %v3477_v4  ;;  %v3480_v45 = vadd.f32 %v4121_v62, %v3479_v42  ;;  %v4688_v46 = vpop.f32.mrb[115].mxu1 }
0x1ac0   :  { %v4140_v46 = vld [vmem:[%s5716_s11] ss:$0 sm:$0xff] }
0x1ac1   :  { %v3559_v48 = vsel %vm308_vm2, %v3551_v0, 0  ;;  %v3552_v5 = vpack.c.bf16 %v3480_v45, %v3480_v45 }
0x1ac2   :  { %4698 = vmatpush3.bf16.xpose.msra.mxu1 %v3559_v48 }
0x1ac3   :  { %v3605_v49 = vsel %vm308_vm2, %v3552_v5, 0  ;;  %4709 = vmatprep.subr.bf16.mxu1 %v4879_v1 }
0x1ac4   :  { %4704 = vmatpush3.bf16.xpose.msra.mxu0 %v3605_v49 }
0x1ac5   :  { %4715 = vmatprep.subr.bf16.mxu0 %v4879_v1 }
0x1ac9   :  { %4700 = vmatmul.mubr.msk.bf16.vlgmr.msra.gmra.mrb[116].mxu1 %vm308_vm2, %v3549_v6 }
0x1aca   :  { %4711 = vmatprep.mubr.msk.bf16.mxu1 %vm4880_vm0, %v4879_v1  ;;  %4710 = vmatpush3.bf16.msra.mxu1 %v3675_v55 }
0x1acb   :  { %4706 = vmatmul.mubr.msk.bf16.vlgmr.msra.gmra.mrb[120].mxu0 %vm308_vm2, %v3550_v51  ;;  %4721 = vmatprep.subr.bf16.mxu1 %v4879_v1  ;;  %v4853_v51 = vld [vmem:[%s5705_s0] sm:$0xff] }
0x1acc   :  { %4717 = vmatprep.mubr.msk.bf16.mxu0 %vm4880_vm0, %v4879_v1  ;;  %4716 = vmatpush3.bf16.msra.mxu0 %v3721_v58 }
0x1b9c   :  { %v3595_v60 = vpop.f32.mrb[116].mxu1 }
0x1b9d   :  { %v3596_v61 = vadd.f32 %v3595_v60, %v5048_v56  ;;  %v4701_v63 = vpop.f32.mrb[117].mxu1 }
0x1b9e   :  { %v3598_v2 = vpop.f32.mrb[118].mxu1  ;;  %v3641_v3 = vpop.f32.mrb[120].mxu0 }
0x1b9f   :  { %v3642_v7 = vadd.f32 %v3641_v3, %v5046_v54  ;;  %v4702_v9 = vpop.f32.mrb[119].mxu1  ;;  %v4707_v12 = vpop.f32.mrb[121].mxu0  ;;  %v3647_v13 = vsel %vm401_vm4, %v3596_v61, -inf }
0x1ba0   :  { %3648 = vmax.xlane.f32.xlu0 %v3647_v13  ;;  %v3644_v14 = vpop.f32.mrb[122].mxu0 }
0x1ba1   :  { %v4708_v15 = vpop.f32.mrb[123].mxu0  ;;  %v3650_v16 = vsel %vm401_vm4, %v3642_v7, -inf  ;;  %v4141_v14 = vld [vmem:[%s5717_s12] ss:$0 sm:$0xff] }
0x1ba2   :  { %3651 = vmax.xlane.f32.xlu1 %v3650_v16 }
0x1c2d   :  { %v3649_v39 = vpop.xlane.xlu0 %3648 }
0x1c2e   :  { %v3653_v17 = vsub.f32 %v3596_v61, %v3649_v39  ;;  %v4142_v39 = vld [vmem:[%s5718_s13] ss:$0 sm:$0xff] }
0x1c2f   :  { %v3652_v18 = vpop.xlane.xlu1 %3651 }
0x1c30   :  { %v3655_v44 = vmul.f32 1.442695, %v3653_v17  ;;  %v3654_v56 = vsub.f32 %v3642_v7, %v3652_v18 }
0x1c32   :  { %4839 = vpow2.f32 %v3655_v44  ;;  %v3657_v41 = vmul.f32 1.442695, %v3654_v56 }
0x1c34   :  { %4841 = vpow2.f32 %v3657_v41 }
0x1c3c   :  { %v4840_v19 = vpop.eup %4839 }
0x1c3d   :  { %v3659_v54 = vsel %vm401_vm4, %v4840_v19, 0.0 }
0x1c3e   :  { %v4842_v20 = vpop.eup %4841  ;;  %3660 = vadd.xlane.f32.xlu0 %v3659_v54 }
0x1c3f   :  { %v3662_v22 = vsel %vm401_vm4, %v4842_v20, 0.0 }
0x1c40   :  { %3663 = vadd.xlane.f32.xlu1 %v3662_v22 }
0x1ccb   :  { %v3661_v47 = vpop.xlane.xlu0 %3660 }
0x1ccc   :  { %4843 = vrcp.f32 %v3661_v47 }
0x1ccd   :  { %v3664_v8 = vpop.xlane.xlu1 %3663 }
0x1cce   :  { %4845 = vrcp.f32 %v3664_v8 }
0x1cd6   :  { %v4844_v23 = vpop.eup %4843 }
0x1cd7   :  { %v3667_v59 = vmul.f32 %v4844_v23, %v4840_v19 }
0x1cd8   :  { %v4846_v26 = vpop.eup %4845 }
0x1cd9   :  { %v3668_v27 = vmul.f32 %v4846_v26, %v4842_v20  ;;  %v3669_v28 = vpack.c.bf16 %v3667_v59, %v3667_v59 }
0x1cdb   :  { %4712 = vmatmul.mubr.msk.bf16.vlgmr.msra.gmra.mrb[120].mxu1 %vm401_vm4, %v3669_v28  ;;  %v3670_v31 = vpack.c.bf16 %v3668_v27, %v3668_v27 }
0x1cdc   :  { %4722 = vmatpush3.bf16.msra.mxu1 %v3770_v29  ;;  %4723 = vmatprep.mubr.msk.bf16.mxu1 %vm4880_vm0, %v4879_v1 }
0x1cdd   :  { %4718 = vmatmul.mubr.msk.bf16.vlgmr.msra.gmra.mrb[124].mxu0 %vm401_vm4, %v3670_v31 }
0x1dae   :  { %v3711_v33 = vpop.f32.mrb[120].mxu1 }
0x1daf   :  { %v4713_v35 = vpop.f32.mrb[121].mxu1 }
0x1db0   :  { %v3714_v62 = vpop.f32.mrb[122].mxu1  ;;  %v3757_v38 = vpop.f32.mrb[124].mxu0 }
0x1db1   :  { %v3763_v4 = vpack.c.bf16 %v3757_v38, %v3711_v33  ;;  %v4714_v40 = vpop.f32.mrb[123].mxu1  ;;  %v4719_v42 = vpop.f32.mrb[125].mxu0 }
0x1db2   :  { %v3760_v43 = vpop.f32.mrb[126].mxu0 }
0x1db3   :  { %v4720_v0 = vpop.f32.mrb[127].mxu0  ;;  %4724 = vmatmul.mubr.msk.bf16.vlgmr.msra.gmra.mrb[124].mxu1 %vm308_vm2, %v3763_v4 }
0x1e86   :  { %v3806_v45 = vpop.f32.mrb[124].mxu1 }
0x1e87   :  { %v3813_v1 = vadd.f32 %v3806_v45, %v5628_v30  ;;  %v4725_v48 = vpop.f32.mrb[125].mxu1 }
0x1e88   :  { %v3809_v5 = vpop.f32.mrb[126].mxu1 }
0x1e89   :  { %v3822_v11 = vadd.f32 %v4140_v46, %v3813_v1  ;;  %v3814_v49 = vadd.f32 %v3809_v5, %v5631_v34  ;;  %v4726_v6 = vpop.f32.mrb[127].mxu1 }
0x1e8b   :  { %v3823_v50 = vadd.f32 %v4140_v46, %v3814_v49  ;;  %v3824_v52 = vadd.f32 %v4853_v51, %v3822_v11 }
0x1e8d   :  { %v3826_v10 = vsel %vm103_vm1, %v3824_v52, 0.0  ;;  %v3825_v21 = vadd.f32 %v4854_v32, %v3823_v50 }
0x1e8e   :  { %3827 = vadd.xlane.f32.xlu0 %v3826_v10 }
0x1e8f   :  { %v3829_v30 = vsel %vm103_vm1, %v3825_v21, 0.0 }
0x1e90   :  { %3830 = vadd.xlane.f32.xlu1 %v3829_v30 }
0x1f1b   :  { %v3828_v36 = vpop.xlane.xlu0 %3827 }
0x1f1c   :  { %v3833_v34 = vmul.f32 0.03125, %v3828_v36 }
0x1f1d   :  { %v3831_v37 = vpop.xlane.xlu1 %3830 }
0x1f1e   :  { %v3835_v53 = vsub.f32 %v3824_v52, %v3833_v34  ;;  %v3834_v24 = vmul.f32 0.03125, %v3831_v37 }
0x1f20   :  { %v3836_v55 = vsub.f32 %v3825_v21, %v3834_v24  ;;  %v3837_v57 = vmul.f32 %v3835_v53, %v3835_v53 }
0x1f22   :  { %v3839_v58 = vsel %vm103_vm1, %v3837_v57, 0.0  ;;  %v3838_v60 = vmul.f32 %v3836_v55, %v3836_v55 }
0x1f23   :  { %3840 = vadd.xlane.f32.xlu0 %v3839_v58 }
0x1f24   :  { %v3842_v61 = vsel %vm103_vm1, %v3838_v60, 0.0 }
0x1f25   :  { %3843 = vadd.xlane.f32.xlu1 %v3842_v61 }
0x1fb0   :  { %v3841_v63 = vpop.xlane.xlu0 %3840 }
0x1fb1   :  { %v3845_v2 = vmul.f32 0.03125, %v3841_v63 }
0x1fb2   :  { %v3844_v3 = vpop.xlane.xlu1 %3843 }
0x1fb3   :  { %v3847_v7 = vadd.f32 1e-05, %v3845_v2  ;;  %v3846_v9 = vmul.f32 0.03125, %v3844_v3 }
0x1fb5   :  { %4847 = vrsqrt.f32 %v3847_v7  ;;  %v3848_v12 = vadd.f32 1e-05, %v3846_v9 }
0x1fb7   :  { %4849 = vrsqrt.f32 %v3848_v12 }
0x1fbf   :  { %v4848_v13 = vpop.eup %4847 }
0x1fc0   :  { %v3851_v15 = vmul.f32 %v4848_v13, %v3835_v53 }
0x1fc1   :  { %v4850_v16 = vpop.eup %4849 }
0x1fc2   :  { %v3852_v17 = vmul.f32 %v4850_v16, %v3836_v55  ;;  %v3860_v18 = vmul.f32 %v4141_v14, %v3851_v15 }
0x1fc4   :  { %v3861_v44 = vmul.f32 %v4141_v14, %v3852_v17  ;;  %v3869_v56 = vadd.f32 %v4142_v39, %v3860_v18 }
0x1fc6   :  { %v3870_v41 = vadd.f32 %v4142_v39, %v3861_v44  ;;  %3871 = vst.msk [vmem:[#allocation2] sm:$0xff] %vm103_vm1, %v3869_v56 }
0x1fc8   :  { %3872 = vst.msk [vmem:[#allocation2 + $0x8] sm:$0xff] %vm103_vm1, %v3870_v41 }
0x1fc9   :  { %4866 = shalt.err (!%p4863_p4)
}
0x1fca   :  { %s4867_s30 = scalar_lea.hbm %s5719_s14, 256 }
0x1fcb   :  { %p4868_p5 = scmp.ne.s32.totalorder %s5719_s14, %s4867_s30  ;;  %p4871_p6 = scmp.lt.u32.totalorder %s4867_s30, %s5719_s14 }
0x1fcd   :  { %p4873_p7 = pnand %p4871_p6, %p4868_p5 }
0x1fcf   :  { %4876 = shalt.err (!%p4873_p7)
}
0x1fd0   :  { %s4883_s5 = smov 128   ;;  %s4884_s2 = smov 8  }
0x1fd1   :  { %3884 = dma.vmem_to_hbm [thread:$0]  %s3879_s28, 256, %s5719_s14, [#allocation3], %s4883_s5, %s4883_s5, %s4884_s2  }
0x1fd2   :  { %4877 = dma.done.wait [#allocation3], 256  }
0x1fd3   :  { %4878 = vsyncadd [#allocation3], 4294967040 }
0x1fd4   :  { %3888 = vsyncpa [#allocation3], 1 }

</bundles_post_ra>
